<compile_context>
chip_gen: v7x
topology: tpu7x:2x2x1
jax: 0.10.0
libtpu: 0.0.40
codegen_flags: <defaults>
</compile_context>

<pallas_src>
import functools

import jax
import jax.numpy as jnp
from jax.experimental import pallas as pl
from jax.experimental.pallas import tpu as pltpu


# ----------------------------------------------------------------------------
# Single fused kernel: [conv3x3 -> maxpool2x2 -> bias -> ReLU] x 2 stages,
# one image per grid step.  No scratch buffers.
# ----------------------------------------------------------------------------
def _rep_unet_down2_kernel(x_ref, w1_ref, b1_ref, w2_ref, b2_ref, o_ref,
                           *, H, W, C0, C1, C2):
    # x_ref : (H, W, C0)        f32   one NHWC image (batch dim squeezed)
    # w1_ref: (9*C0, C1)        bf16  im2col stage-1 weights (resident)
    # b1_ref: (1, C1)           f32
    # w2_ref: (9*C1, C2)        bf16  im2col stage-2 weights (resident)
    # b2_ref: (1, C2)           f32
    # o_ref : (H//4, W//4, C2)  f32
    H2, W2 = H // 2, W // 2

    def conv3x3_im2col(x_pix, hs, ws, cin, w_ref):
        """3x3 SAME conv as ONE im2col matmul on a pixel-major activation.

        x_pix : (hs*ws, cin) f32, row-major pixels, channels in lanes.
        Each tap (dy, dx) is a sublane shift of the flattened image by
        dy*ws + dx, built with pltpu.roll (no padded scratch, no misaligned
        stores); out-of-image positions are zeroed with iota-derived masks.
        Returns the raw f32 conv accumulator (hs*ws, cout) -- no bias / ReLU.
        """
        npix = hs * ws
        hh = jax.lax.broadcasted_iota(jnp.int32, (hs, ws, 1), 0).reshape(npix, 1)
        ww = jax.lax.broadcasted_iota(jnp.int32, (hs, ws, 1), 1).reshape(npix, 1)
        taps = []
        for dy in (-1, 0, 1):
            vy = jnp.logical_and(hh + dy >= 0, hh + dy < hs)
            for dx in (-1, 0, 1):
                if dy == 0 and dx == 0:
                    taps.append(x_pix)
                    continue
                vx = jnp.logical_and(ww + dx >= 0, ww + dx < ws)
                s = dy * ws + dx
                # want t[p] = x_pix[p + s]; pltpu.roll follows np.roll
                # semantics (positive shift moves data to higher indices).
                t = pltpu.roll(x_pix, shift=(-s) % npix, axis=0)
                taps.append(jnp.where(jnp.logical_and(vy, vx), t, 0.0))
        patches = jnp.concatenate(taps, axis=-1)              # (npix, 9*cin) f32
        # Single MXU matmul per stage; bf16 operands, f32 accumulation.
        return jnp.dot(patches.astype(jnp.bfloat16), w_ref[...],
                       preferred_element_type=jnp.float32)     # (npix, cout) f32

    def maxpool2x2(y, hs, ws, c):
        # y: (hs*ws, c) row-major -> (hs//2, ws//2, c)
        y = y.reshape(hs, ws // 2, 2, c)
        y = jnp.max(y, axis=2)                                 # horizontal pool
        y = y.reshape(hs // 2, 2, ws // 2, c)
        y = jnp.max(y, axis=1)                                 # vertical pool
        return y

    def bias_relu(y, b_ref):
        # Bias + ReLU on the *pooled* tensor (4x fewer elements than pre-pool;
        # exactly equal: max-pool commutes with a per-channel constant add and
        # ReLU is monotone).
        return jnp.maximum(y + b_ref[...].astype(jnp.float32), 0.0)

    # ---- stage 1: (H, W, C0) -> (H/2, W/2, C1) ----
    x1 = x_ref[...].reshape(H * W, C0)                     # lane dim unchanged
    acc1 = conv3x3_im2col(x1, H, W, C0, w1_ref)            # (H*W, C1) raw conv
    p1 = bias_relu(maxpool2x2(acc1, H, W, C1), b1_ref)     # (H2, W2, C1)

    # ---- stage 2: (H/2, W/2, C1) -> (H/4, W/4, C2) ----
    x2 = p1.reshape(H2 * W2, C1)
    acc2 = conv3x3_im2col(x2, H2, W2, C1, w2_ref)          # (H2*W2, C2)
    p2 = bias_relu(maxpool2x2(acc2, H2, W2, C2), b2_ref)   # (H//4, W//4, C2)

    o_ref[...] = p2.astype(o_ref.dtype)


# ----------------------------------------------------------------------------
# Parameters & model
# ----------------------------------------------------------------------------
IN_CHANNELS = 3
STAGE_CHANNELS = (16, 32)     # 2 down stages  <->  Rep_UNET_down(2)


def init_params(seed=0):
    key = jax.random.PRNGKey(seed)
    params = []
    c_prev = IN_CHANNELS
    for c in STAGE_CHANNELS:
        key, kw, kb = jax.random.split(key, 3)
        w = 0.1 * jax.random.normal(kw, (3, 3, c_prev, c), jnp.float32)  # HWIO
        b = 0.1 * jax.random.normal(kb, (1, c), jnp.float32)
        params.append((w, b))
        c_prev = c
    return params


def tp_model_forward(x_nchw, params):
    """Forward pass of TPModel (Rep_UNET_down(2), deploy form).

    Input  : NCHW float32 (PyTorch convention)
    Output : NCHW float32, spatial /4, channels = STAGE_CHANNELS[-1]
    """
    x = jnp.transpose(x_nchw, (0, 2, 3, 1))              # NCHW -> NHWC (tiny)
    N, H, W, C0 = x.shape
    # TODO(synk): odd H/W would need floor-cropping to match MaxPool2d; the
    #             model is used with /4-divisible inputs here.
    assert H % 4 == 0 and W % 4 == 0, "spatial dims must be divisible by 4"

    (w1, b1), (w2, b2) = params
    C1, C2 = w1.shape[-1], w2.shape[-1]
    # HWIO (3,3,Cin,Cout) -> im2col (9*Cin, Cout); bf16 for the MXU only.
    w1f = w1.reshape(9 * C0, C1).astype(jnp.bfloat16)
    w2f = w2.reshape(9 * C1, C2).astype(jnp.bfloat16)

    kern = functools.partial(_rep_unet_down2_kernel,
                             H=H, W=W, C0=C0, C1=C1, C2=C2)
    out_nhwc = pl.pallas_call(
        kern,
        out_shape=jax.ShapeDtypeStruct((N, H // 4, W // 4, C2), x.dtype),
        grid=(N,),
        in_specs=[
            pl.BlockSpec((pl.Squeezed(), H, W, C0), lambda n: (n, 0, 0, 0)),
            pl.BlockSpec((9 * C0, C1), lambda n: (0, 0)),   # weights resident
            pl.BlockSpec((1, C1), lambda n: (0, 0)),
            pl.BlockSpec((9 * C1, C2), lambda n: (0, 0)),
            pl.BlockSpec((1, C2), lambda n: (0, 0)),
        ],
        out_specs=pl.BlockSpec((pl.Squeezed(), H // 4, W // 4, C2),
                               lambda n: (n, 0, 0, 0)),
        compiler_params=pltpu.CompilerParams(
            dimension_semantics=("parallel",),        # batch across TCs (v7x)
            vmem_limit_bytes=48 * 1024 * 1024),        # > default scoped limits
    )(x, w1f, b1, w2f, b2)
    return jnp.transpose(out_nhwc, (0, 3, 1, 2))          # NHWC -> NCHW


# ----------------------------------------------------------------------------
# Pure-JAX reference (for correctness check only)
# ----------------------------------------------------------------------------
def _reference_forward(x_nchw, params):
    x = jnp.transpose(x_nchw, (0, 2, 3, 1))
    for (w, b) in params:
        y = jax.lax.conv_general_dilated(
            x, w, window_strides=(1, 1), padding="SAME",
            dimension_numbers=("NHWC", "HWIO", "NHWC"))
        x = jnp.maximum(y + b[0][None, None, None, :], 0.0)
        x = jax.lax.reduce_window(
            x, -jnp.inf, jax.lax.max,
            window_dimensions=(1, 2, 2, 1), window_strides=(1, 2, 2, 1),
            padding="VALID")
    return jnp.transpose(x, (0, 3, 1, 2))


if __name__ == "__main__":
    key = jax.random.PRNGKey(0)
    x = jax.random.normal(key, (2, IN_CHANNELS, 16, 16), jnp.float32)  # NCHW

    params = init_params(seed=0)

    out = tp_model_forward(x, params)
    out = jax.block_until_ready(out)

    ref = jax.block_until_ready(_reference_forward(x, params))
    assert out.shape == (2, STAGE_CHANNELS[-1], 4, 4), out.shape
    # bf16 MXU operands with f32 accumulation: ~1e-2 rel error vs f32 reference.
    assert jnp.allclose(out, ref, rtol=2e-2, atol=2e-2), "mismatch vs reference"

    print("KERNEL_OK")
</pallas_src>

<mosaic_0001>
module attributes {stable_mosaic.version = 11 : i64} {
  func.func @_rep_unet_down2_kernel(%arg0: i32, %arg1: memref<1x16x16x3xf32, #tpu.memory_space<vmem>>, %arg2: memref<27x16xbf16, #tpu.memory_space<vmem>>, %arg3: memref<1x16xf32, #tpu.memory_space<vmem>>, %arg4: memref<144x32xbf16, #tpu.memory_space<vmem>>, %arg5: memref<1x32xf32, #tpu.memory_space<vmem>>, %arg6: memref<1x4x4x32xf32, #tpu.memory_space<vmem>>) attributes {dimension_semantics = [#tpu.dimension_semantics<parallel>], iteration_bounds = array<i64: 2>, scalar_prefetch = 0 : i64, scratch_operands = 0 : i64, tpu.core_type = #tpu.core_type<tc>, window_params = [{transform_indices = @transform_0, window_bounds = array<i64: 1, 16, 16, 3>}, {pipeline_mode = #tpu.pipeline_mode<synchronous>, transform_indices = @transform_1, window_bounds = array<i64: 27, 16>}, {pipeline_mode = #tpu.pipeline_mode<synchronous>, transform_indices = @transform_2, window_bounds = array<i64: 1, 16>}, {pipeline_mode = #tpu.pipeline_mode<synchronous>, transform_indices = @transform_3, window_bounds = array<i64: 144, 32>}, {pipeline_mode = #tpu.pipeline_mode<synchronous>, transform_indices = @transform_4, window_bounds = array<i64: 1, 32>}, {transform_indices = @transform_5, window_bounds = array<i64: 1, 4, 4, 32>}]} {
    %c0 = arith.constant 0 : index
    %c0_0 = arith.constant 0 : index
    %c0_1 = arith.constant 0 : index
    %c0_2 = arith.constant 0 : index
    %0 = vector.load %arg1[%c0, %c0_0, %c0_1, %c0_2] : memref<1x16x16x3xf32, #tpu.memory_space<vmem>>, vector<1x16x16x3xf32>
    %1 = vector.shape_cast %0 : vector<1x16x16x3xf32> to vector<16x16x3xf32>
    %2 = vector.shape_cast %1 : vector<16x16x3xf32> to vector<256x3xf32>
    %3 = tpu.iota {dimensions = array<i32: 0>} : vector<16x16x1xi32>
    %4 = vector.shape_cast %3 : vector<16x16x1xi32> to vector<256x1xi32>
    %5 = tpu.iota {dimensions = array<i32: 1>} : vector<16x16x1xi32>
    %6 = vector.shape_cast %5 : vector<16x16x1xi32> to vector<256x1xi32>
    %c-1_i32 = arith.constant -1 : i32
    %7 = vector.broadcast %c-1_i32 : i32 to vector<256x1xi32>
    %8 = arith.addi %4, %7 : vector<256x1xi32>
    %c0_i32 = arith.constant 0 : i32
    %9 = vector.broadcast %c0_i32 : i32 to vector<256x1xi32>
    %10 = arith.cmpi sge, %8, %9 : vector<256x1xi32>
    %c-1_i32_3 = arith.constant -1 : i32
    %11 = vector.broadcast %c-1_i32_3 : i32 to vector<256x1xi32>
    %12 = arith.addi %4, %11 : vector<256x1xi32>
    %c16_i32 = arith.constant 16 : i32
    %13 = vector.broadcast %c16_i32 : i32 to vector<256x1xi32>
    %14 = arith.cmpi slt, %12, %13 : vector<256x1xi32>
    %15 = arith.andi %10, %14 : vector<256x1xi1>
    %c-1_i32_4 = arith.constant -1 : i32
    %16 = vector.broadcast %c-1_i32_4 : i32 to vector<256x1xi32>
    %17 = arith.addi %6, %16 : vector<256x1xi32>
    %c0_i32_5 = arith.constant 0 : i32
    %18 = vector.broadcast %c0_i32_5 : i32 to vector<256x1xi32>
    %19 = arith.cmpi sge, %17, %18 : vector<256x1xi32>
    %c-1_i32_6 = arith.constant -1 : i32
    %20 = vector.broadcast %c-1_i32_6 : i32 to vector<256x1xi32>
    %21 = arith.addi %6, %20 : vector<256x1xi32>
    %c16_i32_7 = arith.constant 16 : i32
    %22 = vector.broadcast %c16_i32_7 : i32 to vector<256x1xi32>
    %23 = arith.cmpi slt, %21, %22 : vector<256x1xi32>
    %24 = arith.andi %19, %23 : vector<256x1xi1>
    %c17_i32 = arith.constant 17 : i32
    %25 = tpu.dynamic_rotate %2 by %c17_i32 dim 0 : vector<256x3xf32>, i32 -> vector<256x3xf32>
    %26 = arith.andi %15, %24 : vector<256x1xi1>
    %cst = arith.constant 0.000000e+00 : f32
    %27 = vector.shape_cast %26 : vector<256x1xi1> to vector<256x1xi1>
    %28 = vector.broadcast %27 : vector<256x1xi1> to vector<256x3xi1>
    %29 = vector.broadcast %cst : f32 to vector<256x3xf32>
    %30 = arith.select %28, %25, %29 : vector<256x3xi1>, vector<256x3xf32>
    %c0_i32_8 = arith.constant 0 : i32
    %31 = vector.broadcast %c0_i32_8 : i32 to vector<256x1xi32>
    %32 = arith.addi %6, %31 : vector<256x1xi32>
    %c0_i32_9 = arith.constant 0 : i32
    %33 = vector.broadcast %c0_i32_9 : i32 to vector<256x1xi32>
    %34 = arith.cmpi sge, %32, %33 : vector<256x1xi32>
    %c0_i32_10 = arith.constant 0 : i32
    %35 = vector.broadcast %c0_i32_10 : i32 to vector<256x1xi32>
    %36 = arith.addi %6, %35 : vector<256x1xi32>
    %c16_i32_11 = arith.constant 16 : i32
    %37 = vector.broadcast %c16_i32_11 : i32 to vector<256x1xi32>
    %38 = arith.cmpi slt, %36, %37 : vector<256x1xi32>
    %39 = arith.andi %34, %38 : vector<256x1xi1>
    %c16_i32_12 = arith.constant 16 : i32
    %40 = tpu.dynamic_rotate %2 by %c16_i32_12 dim 0 : vector<256x3xf32>, i32 -> vector<256x3xf32>
    %41 = arith.andi %15, %39 : vector<256x1xi1>
    %cst_13 = arith.constant 0.000000e+00 : f32
    %42 = vector.shape_cast %41 : vector<256x1xi1> to vector<256x1xi1>
    %43 = vector.broadcast %42 : vector<256x1xi1> to vector<256x3xi1>
    %44 = vector.broadcast %cst_13 : f32 to vector<256x3xf32>
    %45 = arith.select %43, %40, %44 : vector<256x3xi1>, vector<256x3xf32>
    %c1_i32 = arith.constant 1 : i32
    %46 = vector.broadcast %c1_i32 : i32 to vector<256x1xi32>
    %47 = arith.addi %6, %46 : vector<256x1xi32>
    %c0_i32_14 = arith.constant 0 : i32
    %48 = vector.broadcast %c0_i32_14 : i32 to vector<256x1xi32>
    %49 = arith.cmpi sge, %47, %48 : vector<256x1xi32>
    %c1_i32_15 = arith.constant 1 : i32
    %50 = vector.broadcast %c1_i32_15 : i32 to vector<256x1xi32>
    %51 = arith.addi %6, %50 : vector<256x1xi32>
    %c16_i32_16 = arith.constant 16 : i32
    %52 = vector.broadcast %c16_i32_16 : i32 to vector<256x1xi32>
    %53 = arith.cmpi slt, %51, %52 : vector<256x1xi32>
    %54 = arith.andi %49, %53 : vector<256x1xi1>
    %c15_i32 = arith.constant 15 : i32
    %55 = tpu.dynamic_rotate %2 by %c15_i32 dim 0 : vector<256x3xf32>, i32 -> vector<256x3xf32>
    %56 = arith.andi %15, %54 : vector<256x1xi1>
    %cst_17 = arith.constant 0.000000e+00 : f32
    %57 = vector.shape_cast %56 : vector<256x1xi1> to vector<256x1xi1>
    %58 = vector.broadcast %57 : vector<256x1xi1> to vector<256x3xi1>
    %59 = vector.broadcast %cst_17 : f32 to vector<256x3xf32>
    %60 = arith.select %58, %55, %59 : vector<256x3xi1>, vector<256x3xf32>
    %c0_i32_18 = arith.constant 0 : i32
    %61 = vector.broadcast %c0_i32_18 : i32 to vector<256x1xi32>
    %62 = arith.addi %4, %61 : vector<256x1xi32>
    %c0_i32_19 = arith.constant 0 : i32
    %63 = vector.broadcast %c0_i32_19 : i32 to vector<256x1xi32>
    %64 = arith.cmpi sge, %62, %63 : vector<256x1xi32>
    %c0_i32_20 = arith.constant 0 : i32
    %65 = vector.broadcast %c0_i32_20 : i32 to vector<256x1xi32>
    %66 = arith.addi %4, %65 : vector<256x1xi32>
    %c16_i32_21 = arith.constant 16 : i32
    %67 = vector.broadcast %c16_i32_21 : i32 to vector<256x1xi32>
    %68 = arith.cmpi slt, %66, %67 : vector<256x1xi32>
    %69 = arith.andi %64, %68 : vector<256x1xi1>
    %c-1_i32_22 = arith.constant -1 : i32
    %70 = vector.broadcast %c-1_i32_22 : i32 to vector<256x1xi32>
    %71 = arith.addi %6, %70 : vector<256x1xi32>
    %c0_i32_23 = arith.constant 0 : i32
    %72 = vector.broadcast %c0_i32_23 : i32 to vector<256x1xi32>
    %73 = arith.cmpi sge, %71, %72 : vector<256x1xi32>
    %c-1_i32_24 = arith.constant -1 : i32
    %74 = vector.broadcast %c-1_i32_24 : i32 to vector<256x1xi32>
    %75 = arith.addi %6, %74 : vector<256x1xi32>
    %c16_i32_25 = arith.constant 16 : i32
    %76 = vector.broadcast %c16_i32_25 : i32 to vector<256x1xi32>
    %77 = arith.cmpi slt, %75, %76 : vector<256x1xi32>
    %78 = arith.andi %73, %77 : vector<256x1xi1>
    %c1_i32_26 = arith.constant 1 : i32
    %79 = tpu.dynamic_rotate %2 by %c1_i32_26 dim 0 : vector<256x3xf32>, i32 -> vector<256x3xf32>
    %80 = arith.andi %69, %78 : vector<256x1xi1>
    %cst_27 = arith.constant 0.000000e+00 : f32
    %81 = vector.shape_cast %80 : vector<256x1xi1> to vector<256x1xi1>
    %82 = vector.broadcast %81 : vector<256x1xi1> to vector<256x3xi1>
    %83 = vector.broadcast %cst_27 : f32 to vector<256x3xf32>
    %84 = arith.select %82, %79, %83 : vector<256x3xi1>, vector<256x3xf32>
    %c1_i32_28 = arith.constant 1 : i32
    %85 = vector.broadcast %c1_i32_28 : i32 to vector<256x1xi32>
    %86 = arith.addi %6, %85 : vector<256x1xi32>
    %c0_i32_29 = arith.constant 0 : i32
    %87 = vector.broadcast %c0_i32_29 : i32 to vector<256x1xi32>
    %88 = arith.cmpi sge, %86, %87 : vector<256x1xi32>
    %c1_i32_30 = arith.constant 1 : i32
    %89 = vector.broadcast %c1_i32_30 : i32 to vector<256x1xi32>
    %90 = arith.addi %6, %89 : vector<256x1xi32>
    %c16_i32_31 = arith.constant 16 : i32
    %91 = vector.broadcast %c16_i32_31 : i32 to vector<256x1xi32>
    %92 = arith.cmpi slt, %90, %91 : vector<256x1xi32>
    %93 = arith.andi %88, %92 : vector<256x1xi1>
    %c255_i32 = arith.constant 255 : i32
    %94 = tpu.dynamic_rotate %2 by %c255_i32 dim 0 : vector<256x3xf32>, i32 -> vector<256x3xf32>
    %95 = arith.andi %69, %93 : vector<256x1xi1>
    %cst_32 = arith.constant 0.000000e+00 : f32
    %96 = vector.shape_cast %95 : vector<256x1xi1> to vector<256x1xi1>
    %97 = vector.broadcast %96 : vector<256x1xi1> to vector<256x3xi1>
    %98 = vector.broadcast %cst_32 : f32 to vector<256x3xf32>
    %99 = arith.select %97, %94, %98 : vector<256x3xi1>, vector<256x3xf32>
    %c1_i32_33 = arith.constant 1 : i32
    %100 = vector.broadcast %c1_i32_33 : i32 to vector<256x1xi32>
    %101 = arith.addi %4, %100 : vector<256x1xi32>
    %c0_i32_34 = arith.constant 0 : i32
    %102 = vector.broadcast %c0_i32_34 : i32 to vector<256x1xi32>
    %103 = arith.cmpi sge, %101, %102 : vector<256x1xi32>
    %c1_i32_35 = arith.constant 1 : i32
    %104 = vector.broadcast %c1_i32_35 : i32 to vector<256x1xi32>
    %105 = arith.addi %4, %104 : vector<256x1xi32>
    %c16_i32_36 = arith.constant 16 : i32
    %106 = vector.broadcast %c16_i32_36 : i32 to vector<256x1xi32>
    %107 = arith.cmpi slt, %105, %106 : vector<256x1xi32>
    %108 = arith.andi %103, %107 : vector<256x1xi1>
    %c-1_i32_37 = arith.constant -1 : i32
    %109 = vector.broadcast %c-1_i32_37 : i32 to vector<256x1xi32>
    %110 = arith.addi %6, %109 : vector<256x1xi32>
    %c0_i32_38 = arith.constant 0 : i32
    %111 = vector.broadcast %c0_i32_38 : i32 to vector<256x1xi32>
    %112 = arith.cmpi sge, %110, %111 : vector<256x1xi32>
    %c-1_i32_39 = arith.constant -1 : i32
    %113 = vector.broadcast %c-1_i32_39 : i32 to vector<256x1xi32>
    %114 = arith.addi %6, %113 : vector<256x1xi32>
    %c16_i32_40 = arith.constant 16 : i32
    %115 = vector.broadcast %c16_i32_40 : i32 to vector<256x1xi32>
    %116 = arith.cmpi slt, %114, %115 : vector<256x1xi32>
    %117 = arith.andi %112, %116 : vector<256x1xi1>
    %c241_i32 = arith.constant 241 : i32
    %118 = tpu.dynamic_rotate %2 by %c241_i32 dim 0 : vector<256x3xf32>, i32 -> vector<256x3xf32>
    %119 = arith.andi %108, %117 : vector<256x1xi1>
    %cst_41 = arith.constant 0.000000e+00 : f32
    %120 = vector.shape_cast %119 : vector<256x1xi1> to vector<256x1xi1>
    %121 = vector.broadcast %120 : vector<256x1xi1> to vector<256x3xi1>
    %122 = vector.broadcast %cst_41 : f32 to vector<256x3xf32>
    %123 = arith.select %121, %118, %122 : vector<256x3xi1>, vector<256x3xf32>
    %c0_i32_42 = arith.constant 0 : i32
    %124 = vector.broadcast %c0_i32_42 : i32 to vector<256x1xi32>
    %125 = arith.addi %6, %124 : vector<256x1xi32>
    %c0_i32_43 = arith.constant 0 : i32
    %126 = vector.broadcast %c0_i32_43 : i32 to vector<256x1xi32>
    %127 = arith.cmpi sge, %125, %126 : vector<256x1xi32>
    %c0_i32_44 = arith.constant 0 : i32
    %128 = vector.broadcast %c0_i32_44 : i32 to vector<256x1xi32>
    %129 = arith.addi %6, %128 : vector<256x1xi32>
    %c16_i32_45 = arith.constant 16 : i32
    %130 = vector.broadcast %c16_i32_45 : i32 to vector<256x1xi32>
    %131 = arith.cmpi slt, %129, %130 : vector<256x1xi32>
    %132 = arith.andi %127, %131 : vector<256x1xi1>
    %c240_i32 = arith.constant 240 : i32
    %133 = tpu.dynamic_rotate %2 by %c240_i32 dim 0 : vector<256x3xf32>, i32 -> vector<256x3xf32>
    %134 = arith.andi %108, %132 : vector<256x1xi1>
    %cst_46 = arith.constant 0.000000e+00 : f32
    %135 = vector.shape_cast %134 : vector<256x1xi1> to vector<256x1xi1>
    %136 = vector.broadcast %135 : vector<256x1xi1> to vector<256x3xi1>
    %137 = vector.broadcast %cst_46 : f32 to vector<256x3xf32>
    %138 = arith.select %136, %133, %137 : vector<256x3xi1>, vector<256x3xf32>
    %c1_i32_47 = arith.constant 1 : i32
    %139 = vector.broadcast %c1_i32_47 : i32 to vector<256x1xi32>
    %140 = arith.addi %6, %139 : vector<256x1xi32>
    %c0_i32_48 = arith.constant 0 : i32
    %141 = vector.broadcast %c0_i32_48 : i32 to vector<256x1xi32>
    %142 = arith.cmpi sge, %140, %141 : vector<256x1xi32>
    %c1_i32_49 = arith.constant 1 : i32
    %143 = vector.broadcast %c1_i32_49 : i32 to vector<256x1xi32>
    %144 = arith.addi %6, %143 : vector<256x1xi32>
    %c16_i32_50 = arith.constant 16 : i32
    %145 = vector.broadcast %c16_i32_50 : i32 to vector<256x1xi32>
    %146 = arith.cmpi slt, %144, %145 : vector<256x1xi32>
    %147 = arith.andi %142, %146 : vector<256x1xi1>
    %c239_i32 = arith.constant 239 : i32
    %148 = tpu.dynamic_rotate %2 by %c239_i32 dim 0 : vector<256x3xf32>, i32 -> vector<256x3xf32>
    %149 = arith.andi %108, %147 : vector<256x1xi1>
    %cst_51 = arith.constant 0.000000e+00 : f32
    %150 = vector.shape_cast %149 : vector<256x1xi1> to vector<256x1xi1>
    %151 = vector.broadcast %150 : vector<256x1xi1> to vector<256x3xi1>
    %152 = vector.broadcast %cst_51 : f32 to vector<256x3xf32>
    %153 = arith.select %151, %148, %152 : vector<256x3xi1>, vector<256x3xf32>
    %154 = tpu.concatenate %30, %45, %60, %84, %2, %99, %123, %138, %153 in 1 : vector<256x3xf32>, vector<256x3xf32>, vector<256x3xf32>, vector<256x3xf32>, vector<256x3xf32>, vector<256x3xf32>, vector<256x3xf32>, vector<256x3xf32>, vector<256x3xf32> -> vector<256x27xf32>
    %155 = arith.truncf %154 : vector<256x27xf32> to vector<256x27xbf16>
    %c0_52 = arith.constant 0 : index
    %c0_53 = arith.constant 0 : index
    %156 = vector.load %arg2[%c0_52, %c0_53] : memref<27x16xbf16, #tpu.memory_space<vmem>>, vector<27x16xbf16>
    %cst_54 = arith.constant dense<0.000000e+00> : vector<256x16xf32>
    %157 = tpu.matmul %155, %156, %cst_54 {dimension_numbers = #tpu.dot_dimension_numbers<[1], [0], [0], [1], [0, 0, 1, 1], [], []>} : vector<256x27xbf16>, vector<27x16xbf16>, vector<256x16xf32> -> vector<256x16xf32>
    %158 = vector.shape_cast %157 : vector<256x16xf32> to vector<16x8x2x16xf32>
    %cst_55 = arith.constant dense<0xFF800000> : vector<16x8x16xf32>
    %159 = vector.multi_reduction <maximumf>, %158, %cst_55 [2] : vector<16x8x2x16xf32> to vector<16x8x16xf32>
    %160 = vector.shape_cast %159 : vector<16x8x16xf32> to vector<8x2x8x16xf32>
    %cst_56 = arith.constant dense<0xFF800000> : vector<8x8x16xf32>
    %161 = vector.multi_reduction <maximumf>, %160, %cst_56 [1] : vector<8x2x8x16xf32> to vector<8x8x16xf32>
    %c0_57 = arith.constant 0 : index
    %c0_58 = arith.constant 0 : index
    %162 = vector.load %arg3[%c0_57, %c0_58] : memref<1x16xf32, #tpu.memory_space<vmem>>, vector<1x16xf32>
    %163 = vector.shape_cast %162 : vector<1x16xf32> to vector<1x1x16xf32>
    %164 = vector.broadcast %163 : vector<1x1x16xf32> to vector<8x8x16xf32>
    %165 = arith.addf %161, %164 : vector<8x8x16xf32>
    %cst_59 = arith.constant 0.000000e+00 : f32
    %166 = vector.broadcast %cst_59 : f32 to vector<8x8x16xf32>
    %167 = arith.maximumf %165, %166 : vector<8x8x16xf32>
    %168 = vector.shape_cast %167 : vector<8x8x16xf32> to vector<64x16xf32>
    %169 = tpu.iota {dimensions = array<i32: 0>} : vector<8x8x1xi32>
    %170 = vector.shape_cast %169 : vector<8x8x1xi32> to vector<64x1xi32>
    %171 = tpu.iota {dimensions = array<i32: 1>} : vector<8x8x1xi32>
    %172 = vector.shape_cast %171 : vector<8x8x1xi32> to vector<64x1xi32>
    %c-1_i32_60 = arith.constant -1 : i32
    %173 = vector.broadcast %c-1_i32_60 : i32 to vector<64x1xi32>
    %174 = arith.addi %170, %173 : vector<64x1xi32>
    %c0_i32_61 = arith.constant 0 : i32
    %175 = vector.broadcast %c0_i32_61 : i32 to vector<64x1xi32>
    %176 = arith.cmpi sge, %174, %175 : vector<64x1xi32>
    %c-1_i32_62 = arith.constant -1 : i32
    %177 = vector.broadcast %c-1_i32_62 : i32 to vector<64x1xi32>
    %178 = arith.addi %170, %177 : vector<64x1xi32>
    %c8_i32 = arith.constant 8 : i32
    %179 = vector.broadcast %c8_i32 : i32 to vector<64x1xi32>
    %180 = arith.cmpi slt, %178, %179 : vector<64x1xi32>
    %181 = arith.andi %176, %180 : vector<64x1xi1>
    %c-1_i32_63 = arith.constant -1 : i32
    %182 = vector.broadcast %c-1_i32_63 : i32 to vector<64x1xi32>
    %183 = arith.addi %172, %182 : vector<64x1xi32>
    %c0_i32_64 = arith.constant 0 : i32
    %184 = vector.broadcast %c0_i32_64 : i32 to vector<64x1xi32>
    %185 = arith.cmpi sge, %183, %184 : vector<64x1xi32>
    %c-1_i32_65 = arith.constant -1 : i32
    %186 = vector.broadcast %c-1_i32_65 : i32 to vector<64x1xi32>
    %187 = arith.addi %172, %186 : vector<64x1xi32>
    %c8_i32_66 = arith.constant 8 : i32
    %188 = vector.broadcast %c8_i32_66 : i32 to vector<64x1xi32>
    %189 = arith.cmpi slt, %187, %188 : vector<64x1xi32>
    %190 = arith.andi %185, %189 : vector<64x1xi1>
    %c9_i32 = arith.constant 9 : i32
    %191 = tpu.dynamic_rotate %168 by %c9_i32 dim 0 : vector<64x16xf32>, i32 -> vector<64x16xf32>
    %192 = arith.andi %181, %190 : vector<64x1xi1>
    %cst_67 = arith.constant 0.000000e+00 : f32
    %193 = vector.shape_cast %192 : vector<64x1xi1> to vector<64x1xi1>
    %194 = vector.broadcast %193 : vector<64x1xi1> to vector<64x16xi1>
    %195 = vector.broadcast %cst_67 : f32 to vector<64x16xf32>
    %196 = arith.select %194, %191, %195 : vector<64x16xi1>, vector<64x16xf32>
    %c0_i32_68 = arith.constant 0 : i32
    %197 = vector.broadcast %c0_i32_68 : i32 to vector<64x1xi32>
    %198 = arith.addi %172, %197 : vector<64x1xi32>
    %c0_i32_69 = arith.constant 0 : i32
    %199 = vector.broadcast %c0_i32_69 : i32 to vector<64x1xi32>
    %200 = arith.cmpi sge, %198, %199 : vector<64x1xi32>
    %c0_i32_70 = arith.constant 0 : i32
    %201 = vector.broadcast %c0_i32_70 : i32 to vector<64x1xi32>
    %202 = arith.addi %172, %201 : vector<64x1xi32>
    %c8_i32_71 = arith.constant 8 : i32
    %203 = vector.broadcast %c8_i32_71 : i32 to vector<64x1xi32>
    %204 = arith.cmpi slt, %202, %203 : vector<64x1xi32>
    %205 = arith.andi %200, %204 : vector<64x1xi1>
    %c8_i32_72 = arith.constant 8 : i32
    %206 = tpu.dynamic_rotate %168 by %c8_i32_72 dim 0 : vector<64x16xf32>, i32 -> vector<64x16xf32>
    %207 = arith.andi %181, %205 : vector<64x1xi1>
    %cst_73 = arith.constant 0.000000e+00 : f32
    %208 = vector.shape_cast %207 : vector<64x1xi1> to vector<64x1xi1>
    %209 = vector.broadcast %208 : vector<64x1xi1> to vector<64x16xi1>
    %210 = vector.broadcast %cst_73 : f32 to vector<64x16xf32>
    %211 = arith.select %209, %206, %210 : vector<64x16xi1>, vector<64x16xf32>
    %c1_i32_74 = arith.constant 1 : i32
    %212 = vector.broadcast %c1_i32_74 : i32 to vector<64x1xi32>
    %213 = arith.addi %172, %212 : vector<64x1xi32>
    %c0_i32_75 = arith.constant 0 : i32
    %214 = vector.broadcast %c0_i32_75 : i32 to vector<64x1xi32>
    %215 = arith.cmpi sge, %213, %214 : vector<64x1xi32>
    %c1_i32_76 = arith.constant 1 : i32
    %216 = vector.broadcast %c1_i32_76 : i32 to vector<64x1xi32>
    %217 = arith.addi %172, %216 : vector<64x1xi32>
    %c8_i32_77 = arith.constant 8 : i32
    %218 = vector.broadcast %c8_i32_77 : i32 to vector<64x1xi32>
    %219 = arith.cmpi slt, %217, %218 : vector<64x1xi32>
    %220 = arith.andi %215, %219 : vector<64x1xi1>
    %c7_i32 = arith.constant 7 : i32
    %221 = tpu.dynamic_rotate %168 by %c7_i32 dim 0 : vector<64x16xf32>, i32 -> vector<64x16xf32>
    %222 = arith.andi %181, %220 : vector<64x1xi1>
    %cst_78 = arith.constant 0.000000e+00 : f32
    %223 = vector.shape_cast %222 : vector<64x1xi1> to vector<64x1xi1>
    %224 = vector.broadcast %223 : vector<64x1xi1> to vector<64x16xi1>
    %225 = vector.broadcast %cst_78 : f32 to vector<64x16xf32>
    %226 = arith.select %224, %221, %225 : vector<64x16xi1>, vector<64x16xf32>
    %c0_i32_79 = arith.constant 0 : i32
    %227 = vector.broadcast %c0_i32_79 : i32 to vector<64x1xi32>
    %228 = arith.addi %170, %227 : vector<64x1xi32>
    %c0_i32_80 = arith.constant 0 : i32
    %229 = vector.broadcast %c0_i32_80 : i32 to vector<64x1xi32>
    %230 = arith.cmpi sge, %228, %229 : vector<64x1xi32>
    %c0_i32_81 = arith.constant 0 : i32
    %231 = vector.broadcast %c0_i32_81 : i32 to vector<64x1xi32>
    %232 = arith.addi %170, %231 : vector<64x1xi32>
    %c8_i32_82 = arith.constant 8 : i32
    %233 = vector.broadcast %c8_i32_82 : i32 to vector<64x1xi32>
    %234 = arith.cmpi slt, %232, %233 : vector<64x1xi32>
    %235 = arith.andi %230, %234 : vector<64x1xi1>
    %c-1_i32_83 = arith.constant -1 : i32
    %236 = vector.broadcast %c-1_i32_83 : i32 to vector<64x1xi32>
    %237 = arith.addi %172, %236 : vector<64x1xi32>
    %c0_i32_84 = arith.constant 0 : i32
    %238 = vector.broadcast %c0_i32_84 : i32 to vector<64x1xi32>
    %239 = arith.cmpi sge, %237, %238 : vector<64x1xi32>
    %c-1_i32_85 = arith.constant -1 : i32
    %240 = vector.broadcast %c-1_i32_85 : i32 to vector<64x1xi32>
    %241 = arith.addi %172, %240 : vector<64x1xi32>
    %c8_i32_86 = arith.constant 8 : i32
    %242 = vector.broadcast %c8_i32_86 : i32 to vector<64x1xi32>
    %243 = arith.cmpi slt, %241, %242 : vector<64x1xi32>
    %244 = arith.andi %239, %243 : vector<64x1xi1>
    %c1_i32_87 = arith.constant 1 : i32
    %245 = tpu.dynamic_rotate %168 by %c1_i32_87 dim 0 : vector<64x16xf32>, i32 -> vector<64x16xf32>
    %246 = arith.andi %235, %244 : vector<64x1xi1>
    %cst_88 = arith.constant 0.000000e+00 : f32
    %247 = vector.shape_cast %246 : vector<64x1xi1> to vector<64x1xi1>
    %248 = vector.broadcast %247 : vector<64x1xi1> to vector<64x16xi1>
    %249 = vector.broadcast %cst_88 : f32 to vector<64x16xf32>
    %250 = arith.select %248, %245, %249 : vector<64x16xi1>, vector<64x16xf32>
    %c1_i32_89 = arith.constant 1 : i32
    %251 = vector.broadcast %c1_i32_89 : i32 to vector<64x1xi32>
    %252 = arith.addi %172, %251 : vector<64x1xi32>
    %c0_i32_90 = arith.constant 0 : i32
    %253 = vector.broadcast %c0_i32_90 : i32 to vector<64x1xi32>
    %254 = arith.cmpi sge, %252, %253 : vector<64x1xi32>
    %c1_i32_91 = arith.constant 1 : i32
    %255 = vector.broadcast %c1_i32_91 : i32 to vector<64x1xi32>
    %256 = arith.addi %172, %255 : vector<64x1xi32>
    %c8_i32_92 = arith.constant 8 : i32
    %257 = vector.broadcast %c8_i32_92 : i32 to vector<64x1xi32>
    %258 = arith.cmpi slt, %256, %257 : vector<64x1xi32>
    %259 = arith.andi %254, %258 : vector<64x1xi1>
    %c63_i32 = arith.constant 63 : i32
    %260 = tpu.dynamic_rotate %168 by %c63_i32 dim 0 : vector<64x16xf32>, i32 -> vector<64x16xf32>
    %261 = arith.andi %235, %259 : vector<64x1xi1>
    %cst_93 = arith.constant 0.000000e+00 : f32
    %262 = vector.shape_cast %261 : vector<64x1xi1> to vector<64x1xi1>
    %263 = vector.broadcast %262 : vector<64x1xi1> to vector<64x16xi1>
    %264 = vector.broadcast %cst_93 : f32 to vector<64x16xf32>
    %265 = arith.select %263, %260, %264 : vector<64x16xi1>, vector<64x16xf32>
    %c1_i32_94 = arith.constant 1 : i32
    %266 = vector.broadcast %c1_i32_94 : i32 to vector<64x1xi32>
    %267 = arith.addi %170, %266 : vector<64x1xi32>
    %c0_i32_95 = arith.constant 0 : i32
    %268 = vector.broadcast %c0_i32_95 : i32 to vector<64x1xi32>
    %269 = arith.cmpi sge, %267, %268 : vector<64x1xi32>
    %c1_i32_96 = arith.constant 1 : i32
    %270 = vector.broadcast %c1_i32_96 : i32 to vector<64x1xi32>
    %271 = arith.addi %170, %270 : vector<64x1xi32>
    %c8_i32_97 = arith.constant 8 : i32
    %272 = vector.broadcast %c8_i32_97 : i32 to vector<64x1xi32>
    %273 = arith.cmpi slt, %271, %272 : vector<64x1xi32>
    %274 = arith.andi %269, %273 : vector<64x1xi1>
    %c-1_i32_98 = arith.constant -1 : i32
    %275 = vector.broadcast %c-1_i32_98 : i32 to vector<64x1xi32>
    %276 = arith.addi %172, %275 : vector<64x1xi32>
    %c0_i32_99 = arith.constant 0 : i32
    %277 = vector.broadcast %c0_i32_99 : i32 to vector<64x1xi32>
    %278 = arith.cmpi sge, %276, %277 : vector<64x1xi32>
    %c-1_i32_100 = arith.constant -1 : i32
    %279 = vector.broadcast %c-1_i32_100 : i32 to vector<64x1xi32>
    %280 = arith.addi %172, %279 : vector<64x1xi32>
    %c8_i32_101 = arith.constant 8 : i32
    %281 = vector.broadcast %c8_i32_101 : i32 to vector<64x1xi32>
    %282 = arith.cmpi slt, %280, %281 : vector<64x1xi32>
    %283 = arith.andi %278, %282 : vector<64x1xi1>
    %c57_i32 = arith.constant 57 : i32
    %284 = tpu.dynamic_rotate %168 by %c57_i32 dim 0 : vector<64x16xf32>, i32 -> vector<64x16xf32>
    %285 = arith.andi %274, %283 : vector<64x1xi1>
    %cst_102 = arith.constant 0.000000e+00 : f32
    %286 = vector.shape_cast %285 : vector<64x1xi1> to vector<64x1xi1>
    %287 = vector.broadcast %286 : vector<64x1xi1> to vector<64x16xi1>
    %288 = vector.broadcast %cst_102 : f32 to vector<64x16xf32>
    %289 = arith.select %287, %284, %288 : vector<64x16xi1>, vector<64x16xf32>
    %c0_i32_103 = arith.constant 0 : i32
    %290 = vector.broadcast %c0_i32_103 : i32 to vector<64x1xi32>
    %291 = arith.addi %172, %290 : vector<64x1xi32>
    %c0_i32_104 = arith.constant 0 : i32
    %292 = vector.broadcast %c0_i32_104 : i32 to vector<64x1xi32>
    %293 = arith.cmpi sge, %291, %292 : vector<64x1xi32>
    %c0_i32_105 = arith.constant 0 : i32
    %294 = vector.broadcast %c0_i32_105 : i32 to vector<64x1xi32>
    %295 = arith.addi %172, %294 : vector<64x1xi32>
    %c8_i32_106 = arith.constant 8 : i32
    %296 = vector.broadcast %c8_i32_106 : i32 to vector<64x1xi32>
    %297 = arith.cmpi slt, %295, %296 : vector<64x1xi32>
    %298 = arith.andi %293, %297 : vector<64x1xi1>
    %c56_i32 = arith.constant 56 : i32
    %299 = tpu.dynamic_rotate %168 by %c56_i32 dim 0 : vector<64x16xf32>, i32 -> vector<64x16xf32>
    %300 = arith.andi %274, %298 : vector<64x1xi1>
    %cst_107 = arith.constant 0.000000e+00 : f32
    %301 = vector.shape_cast %300 : vector<64x1xi1> to vector<64x1xi1>
    %302 = vector.broadcast %301 : vector<64x1xi1> to vector<64x16xi1>
    %303 = vector.broadcast %cst_107 : f32 to vector<64x16xf32>
    %304 = arith.select %302, %299, %303 : vector<64x16xi1>, vector<64x16xf32>
    %c1_i32_108 = arith.constant 1 : i32
    %305 = vector.broadcast %c1_i32_108 : i32 to vector<64x1xi32>
    %306 = arith.addi %172, %305 : vector<64x1xi32>
    %c0_i32_109 = arith.constant 0 : i32
    %307 = vector.broadcast %c0_i32_109 : i32 to vector<64x1xi32>
    %308 = arith.cmpi sge, %306, %307 : vector<64x1xi32>
    %c1_i32_110 = arith.constant 1 : i32
    %309 = vector.broadcast %c1_i32_110 : i32 to vector<64x1xi32>
    %310 = arith.addi %172, %309 : vector<64x1xi32>
    %c8_i32_111 = arith.constant 8 : i32
    %311 = vector.broadcast %c8_i32_111 : i32 to vector<64x1xi32>
    %312 = arith.cmpi slt, %310, %311 : vector<64x1xi32>
    %313 = arith.andi %308, %312 : vector<64x1xi1>
    %c55_i32 = arith.constant 55 : i32
    %314 = tpu.dynamic_rotate %168 by %c55_i32 dim 0 : vector<64x16xf32>, i32 -> vector<64x16xf32>
    %315 = arith.andi %274, %313 : vector<64x1xi1>
    %cst_112 = arith.constant 0.000000e+00 : f32
    %316 = vector.shape_cast %315 : vector<64x1xi1> to vector<64x1xi1>
    %317 = vector.broadcast %316 : vector<64x1xi1> to vector<64x16xi1>
    %318 = vector.broadcast %cst_112 : f32 to vector<64x16xf32>
    %319 = arith.select %317, %314, %318 : vector<64x16xi1>, vector<64x16xf32>
    %320 = tpu.concatenate %196, %211, %226, %250, %168, %265, %289, %304, %319 in 1 : vector<64x16xf32>, vector<64x16xf32>, vector<64x16xf32>, vector<64x16xf32>, vector<64x16xf32>, vector<64x16xf32>, vector<64x16xf32>, vector<64x16xf32>, vector<64x16xf32> -> vector<64x144xf32>
    %321 = arith.truncf %320 : vector<64x144xf32> to vector<64x144xbf16>
    %c0_113 = arith.constant 0 : index
    %c0_114 = arith.constant 0 : index
    %322 = vector.load %arg4[%c0_113, %c0_114] : memref<144x32xbf16, #tpu.memory_space<vmem>>, vector<144x32xbf16>
    %cst_115 = arith.constant dense<0.000000e+00> : vector<64x32xf32>
    %323 = tpu.matmul %321, %322, %cst_115 {dimension_numbers = #tpu.dot_dimension_numbers<[1], [0], [0], [1], [0, 0, 1, 1], [], []>} : vector<64x144xbf16>, vector<144x32xbf16>, vector<64x32xf32> -> vector<64x32xf32>
    %324 = vector.shape_cast %323 : vector<64x32xf32> to vector<8x4x2x32xf32>
    %cst_116 = arith.constant dense<0xFF800000> : vector<8x4x32xf32>
    %325 = vector.multi_reduction <maximumf>, %324, %cst_116 [2] : vector<8x4x2x32xf32> to vector<8x4x32xf32>
    %326 = vector.shape_cast %325 : vector<8x4x32xf32> to vector<4x2x4x32xf32>
    %cst_117 = arith.constant dense<0xFF800000> : vector<4x4x32xf32>
    %327 = vector.multi_reduction <maximumf>, %326, %cst_117 [1] : vector<4x2x4x32xf32> to vector<4x4x32xf32>
    %c0_118 = arith.constant 0 : index
    %c0_119 = arith.constant 0 : index
    %328 = vector.load %arg5[%c0_118, %c0_119] : memref<1x32xf32, #tpu.memory_space<vmem>>, vector<1x32xf32>
    %329 = vector.shape_cast %328 : vector<1x32xf32> to vector<1x1x32xf32>
    %330 = vector.broadcast %329 : vector<1x1x32xf32> to vector<4x4x32xf32>
    %331 = arith.addf %327, %330 : vector<4x4x32xf32>
    %cst_120 = arith.constant 0.000000e+00 : f32
    %332 = vector.broadcast %cst_120 : f32 to vector<4x4x32xf32>
    %333 = arith.maximumf %331, %332 : vector<4x4x32xf32>
    %c0_121 = arith.constant 0 : index
    %c0_122 = arith.constant 0 : index
    %c0_123 = arith.constant 0 : index
    %c0_124 = arith.constant 0 : index
    %334 = vector.load %arg6[%c0_121, %c0_122, %c0_123, %c0_124] : memref<1x4x4x32xf32, #tpu.memory_space<vmem>>, vector<1x4x4x32xf32>
    %335 = vector.shape_cast %334 : vector<1x4x4x32xf32> to vector<4x4x32xf32>
    %336 = vector.shape_cast %333 : vector<4x4x32xf32> to vector<1x4x4x32xf32>
    tpu.vector_store %arg6[%c0_121, %c0_122, %c0_123, %c0_124], %336 {strides = array<i32>} : memref<1x4x4x32xf32, #tpu.memory_space<vmem>>, vector<1x4x4x32xf32>,
    return
  }
  func.func @transform_0(%arg0: i32) -> (i32, i32, i32, i32) {
    %c0_i32 = arith.constant 0 : i32
    %c0_i32_0 = arith.constant 0 : i32
    %c0_i32_1 = arith.constant 0 : i32
    %c0_i32_2 = arith.constant 0 : i32
    return %arg0, %c0_i32, %c0_i32_0, %c0_i32_1 : i32, i32, i32, i32
  }
  func.func @transform_1(%arg0: i32) -> (i32, i32) {
    %c0_i32 = arith.constant 0 : i32
    %c0_i32_0 = arith.constant 0 : i32
    %c0_i32_1 = arith.constant 0 : i32
    return %c0_i32, %c0_i32_0 : i32, i32
  }
  func.func @transform_2(%arg0: i32) -> (i32, i32) {
    %c0_i32 = arith.constant 0 : i32
    %c0_i32_0 = arith.constant 0 : i32
    %c0_i32_1 = arith.constant 0 : i32
    return %c0_i32, %c0_i32_0 : i32, i32
  }
  func.func @transform_3(%arg0: i32) -> (i32, i32) {
    %c0_i32 = arith.constant 0 : i32
    %c0_i32_0 = arith.constant 0 : i32
    %c0_i32_1 = arith.constant 0 : i32
    return %c0_i32, %c0_i32_0 : i32, i32
  }
  func.func @transform_4(%arg0: i32) -> (i32, i32) {
    %c0_i32 = arith.constant 0 : i32
    %c0_i32_0 = arith.constant 0 : i32
    %c0_i32_1 = arith.constant 0 : i32
    return %c0_i32, %c0_i32_0 : i32, i32
  }
  func.func @transform_5(%arg0: i32) -> (i32, i32, i32, i32) {
    %c0_i32 = arith.constant 0 : i32
    %c0_i32_0 = arith.constant 0 : i32
    %c0_i32_1 = arith.constant 0 : i32
    %c0_i32_2 = arith.constant 0 : i32
    return %arg0, %c0_i32, %c0_i32_0, %c0_i32_1 : i32, i32, i32, i32
  }
}

</mosaic_0001>

<bundles_post_ra>
// kernel: tpu_custom_call.1
= control target key start
LH: loop header
LB: loop body
LE: loop exit
PB: predicated region body
PF: predicated region fallthrough
CT: control target
= control target key end

     0   :  { %10 = vsyncpa [#allocation3], 0  ;;  %s8835_s0 = inlined_call_operand.vmem [shape: f32[2,16,16,3], index: 0, kind: input, shape index: {}]   ;;  %s8836_s1 = inlined_call_operand.vmem [shape: bf16[27,16], index: 1, kind: input, shape index: {}]   ;;  %s8837_s2 = inlined_call_operand.vmem [shape: f32[1,16], index: 2, kind: input, shape index: {}]   ;;  %s8838_s3 = inlined_call_operand.vmem [shape: bf16[144,32], index: 3, kind: input, shape index: {}]   ;;  %s8839_s4 = inlined_call_operand.vmem [shape: f32[1,32], index: 4, kind: input, shape index: {}]   ;;  %s8840_s5 = inlined_call_operand.hbm [shape: f32[2,4,4,32], index: 5, kind: output, shape index: {}]  }
   0x1   :  { %12 = vsyncpa [#allocation3 + $0x1], 0  ;;  %s6167_s18 = smov 0   ;;  %s6169_s19 = smov 0  }
   0x2   :  { %s6171_s20 = smov 0   ;;  %s6173_s21 = smov 0  }
   0x3 LB: > { %s6188_s22 = sadd.s32 4294967295, %s6114_s21   ;;  %s5123_s23 = sadd.s32 4294967294, %s6114_s21   ;;  %s6114_s21 = sphi %s6173_s21, %s8885_s21   ;;  %s6110_s20 = sphi %s6171_s20, %s8884_s20   ;;  %s6106_s19 = sphi %s6169_s19, %s8883_s19   ;;  %s6102_s18 = sphi %s6167_s18, %s8882_s18  }
   0x4   : > { %s6192_s24 = sadd.s32 1, %s6114_s21   ;;  %s135_s25 = sadd.s32 1, %s6110_s20 }
   0x5   : > { %s132_s26 = ssub.s32 %s6114_s21, %s6192_s24  ;;  %p145_p0 = scmp.ne.s32.totalorder %s6110_s20, %s6106_s19 }
   0x6   : > { %p133_p1 = scmp.eq.s32.totalorder %s132_s26, 0  ;;  %p146_p2 = scmp.eq.s32.totalorder %s6188_s22, 1 }
   0x7   : > { %p151_p3 = scmp.ne.s32.totalorder %s6106_s19, %s6102_s18  ;;  %p152_p4 = scmp.eq.s32.totalorder %s5123_s23, 1 }
   0x8   : > { %s6203_s27 = scalar_select %p133_p1, %s6110_s20, %s135_s25  }
   0x9   : > { %p6205_p5 = por %p146_p2, %p145_p0  ;;  %p6209_p6 = por %p152_p4, %p151_p3 }
   0xa   : > { %p5126_p7 = scmp.ge.s32.totalorder %s6114_s21, 1  ;;  %p190_p8 = scmp.lt.s32.totalorder %s6114_s21, 3 }
   0xc   : > { %p191_p9 = pnand %p5126_p7, %p190_p8 }
   0xe   : > { %194 = sbr.rel (%p191_p9) target bundleno = 1251 (0x4e3), region = 40 }
  0x15   : > { %p218_p10 = scmp.lt.s32.totalorder %s6188_s22, 1  ;;  %v256_v0 = vlaneseq  ;;  %v8841_v8 = vmov 0.0   ;;  %s6117_s10 = smov 3   ;;  %v6038_v47 = vld [vmem:[%s8836_s1] sm:$0xff]   ;;  %vm1743_vm4 = vcmask 1044480   ;;  %vm1744_vm5 = vcmask 1045504  }
  0x16   : > { %s6118_s11 = smov 6   ;;  %s6119_s12 = smov 9   ;;  %5188 = vmatprep.subr.bf16.mxu0 %v6038_v47  ;;  %vm1401_vm6 = vcmask 23552   ;;  %vm1433_vm7 = vcmask 48128   ;;  %vm1465_vm8 = vcmask 72704   ;;  %vm1498_vm9 = vcmask 97280  }
  0x17   : > { %s219_s30 = scalar_select %p218_p10, %s6188_s22, 1  ;;  %v6217_v1 = vshrl.u32 %v256_v0, 7  ;;  %5189 = vmatpush3.bf16.msra.mxu0 %v6038_v47  ;;  %vm1531_vm10 = vcmask 121856   ;;  %vm1564_vm11 = vcmask 146432   ;;  %vm1597_vm12 = vcmask 171008  }
  0x18   : > { %s6120_s13 = smov 12   ;;  %s6121_s16 = smov 15   ;;  %vm1630_vm13 = vcmask 195584   ;;  %vm1694_vm14 = vcmask 220160   ;;  %vm2615_vm15 = vcmask 123904  }
  0x19   : > { %s5168_s6 = sshll.u32 %s219_s30, 8  ;;  %v258_v2 = vadd.s32 8, %v6217_v1  ;;  %v6221_v3 = vadd.s32 4294967295, %v6217_v1  ;;  %vm298_vm0 = vcmp.lt.s32.totalorder %v6217_v1, 1  ;;  %vm442_vm2 = vcmp.lt.s32.totalorder %v6217_v1, 7  ;;  %s6122_s17 = smov 18  }
  0x1a   : > { %s6226_s9 = scalar_lea.vmem %s8835_s0, %s5168_s6  ;;  %s6123_s23 = smov 21  }
  0x1b   : > { %v6230_v4 = vld [vmem:[%s6226_s9] sm:$0xff]  ;;  %v225_v5 = vld [vmem:[%s6226_s9 + $0x8] sm:$0xff]  ;;  %v226_v6 = vld [vmem:[%s6226_s9 + $0x10] sm:$0xff]  ;;  %vm261_vm1 = vcmp.ge.s32.totalorder %v6221_v3, 0  ;;  %v6235_v7 = vadd.s32 1, %v258_v2  ;;  %s6124_s25 = smov 24  }
  0x1c   : > { %v5283_v9 = vpack.i.bf16 %v6230_v4, %v8841_v8  ;;  %v8844_v10 = vrot.slane %v6230_v4, 1  ;;  %v412_v11 = vrot.slane %v225_v5, 1  ;;  %v413_v12 = vrot.slane %v226_v6, 1  ;;  %v6242_v13 = vld [vmem:[%s6226_s9 + $0x18] sm:$0xff]  ;;  %v228_v28 = vld [vmem:[%s6226_s9 + $0x20] sm:$0xff]  ;;  %v229_v40 = vld [vmem:[%s6226_s9 + $0x28] sm:$0xff] }
  0x1d   : > { %v6245_v14 = vld [vmem:[%s6226_s9 + $0xf8] sm:$0xff]  ;;  %vm408_vm3 = vcmp.lt.s32.totalorder %v6235_v7, 16  ;;  %v5288_v15 = vpack.i.bf16 %v226_v6, %v225_v5  ;;  %v414_v16 = vrot.slane %v6242_v13, 1  ;;  %v267_v17 = vrot.slane %v6230_v4, 7  ;;  %v230_v49 = vld [vmem:[%s6226_s9 + $0x30] sm:$0xff]  ;;  %s6127_s8 = smov 16  }
  0x1e   : > { %5284 = vrot.lane.b32.xlu0 %v5283_v9, %s6117_s10  ;;  %v471_v18 = vsel %vm442_vm2, %v412_v11, %v413_v12  ;;  %v472_v19 = vsel %vm442_vm2, %v8844_v10, %v412_v11  ;;  %v268_v20 = vrot.slane %v225_v5, 7  ;;  %v8843_v21 = vrot.slane %v6245_v14, 7  ;;  %v6333_v59 = vld [vmem:[%s6226_s9 + $0x38] sm:$0xff]  ;;  %v232_v11 = vld [vmem:[%s6226_s9 + $0x40] sm:$0xff]  ;;  %s6131_s14 = smov 80   ;;  %s6132_s15 = smov 96  }
  0x1f   : > { %v478_v22 = vsel %vm408_vm3, %v471_v18, 0.0  ;;  %v5293_v23 = vpack.i.bf16 %v472_v19, %v8841_v8  ;;  %v470_v24 = vsel %vm442_vm2, %v413_v12, %v414_v16  ;;  %v269_v25 = vrot.slane %v226_v6, 7 }
  0x20   : > { %v6265_v26 = vsel %vm298_vm0, %v267_v17, %v268_v20  ;;  %v328_v27 = vsel %vm298_vm0, %v8843_v21, %v267_v17  ;;  %v5298_v29 = vpack.i.bf16 %v470_v24, %v478_v22  ;;  %v270_v31 = vrot.slane %v6242_v13, 7 }
  0x21   : > { %5294 = vrot.lane.b32.xlu1 %v5293_v23, %s6118_s11  ;;  %v6275_v30 = vsel %vm261_vm1, %v328_v27, 0.0  ;;  %v326_v32 = vsel %vm298_vm0, %v268_v20, %v269_v25  ;;  %v415_v36 = vrot.slane %v228_v28, 1  ;;  %v5308_v38 = vpack.i.bf16 %v225_v5, %v6230_v4 }
  0x22   : > { %5289 = vrot.lane.b32.xlu0 %v5288_v15, %s6117_s10  ;;  %v5303_v33 = vpack.i.bf16 %v6265_v26, %v6275_v30  ;;  %v6285_v34 = vsel %vm261_vm1, %v326_v32, 0.0  ;;  %v6289_v35 = vsel %vm298_vm0, %v269_v25, %v270_v31  ;;  %v271_v41 = vrot.slane %v228_v28, 7 }
  0x23   : > { %v5313_v37 = vpack.i.bf16 %v6289_v35, %v6285_v34  ;;  %v469_v39 = vsel %vm442_vm2, %v414_v16, %v415_v36  ;;  %v5318_v42 = vpack.i.bf16 %v6242_v13, %v226_v6  ;;  %v5323_v43 = vpack.i.bf16 %v478_v22, %v472_v19  ;;  %v233_v19 = vld [vmem:[%s6226_s9 + $0x48] sm:$0xff] }
  0x24   : > { %v480_v44 = vsel %vm408_vm3, %v469_v39, 0.0  ;;  %v272_v45 = vrot.slane %v229_v40, 7  ;;  %v324_v46 = vsel %vm298_vm0, %v270_v31, %v271_v41  ;;  %v416_v52 = vrot.slane %v229_v40, 1  ;;  %v6039_v22 = vld [vmem:[%s8836_s1 + $0x8] sm:$0x3f]  }
  0x25   : > { %5299 = vrot.lane.b32.xlu1 %v5298_v29, %s6118_s11  ;;  %v5328_v48 = vpack.i.bf16 %v480_v44, %v470_v24  ;;  %v6318_v51 = vsel %vm261_vm1, %v324_v46, 0.0  ;;  %v417_v53 = vrot.slane %v230_v49, 1  ;;  %v5348_v56 = vpack.i.bf16 %v229_v40, %v228_v28  ;;  %v235_v46 = vld [vmem:[%s6226_s9 + $0x58] sm:$0xff] }
  0x26   : > { %5304 = vrot.lane.b32.xlu0 %v5303_v33, %s6119_s12  ;;  %v6314_v50 = vsel %vm298_vm0, %v271_v41, %v272_v45  ;;  %v468_v57 = vsel %vm442_vm2, %v415_v36, %v416_v52  ;;  %v5358_v60 = vpack.i.bf16 %v228_v28, %v6242_v13  ;;  %v418_v62 = vrot.slane %v6333_v59, 1  ;;  %v234_v36 = vld [vmem:[%s6226_s9 + $0x50] sm:$0xff] }
  0x27   : > { %v5338_v54 = vpack.i.bf16 %v6314_v50, %v6318_v51  ;;  %v467_v55 = vsel %vm442_vm2, %v416_v52, %v417_v53  ;;  %v273_v63 = vrot.slane %v230_v49, 7  ;;  %v5368_v0 = vpack.i.bf16 %v230_v49, %v229_v40 }
  0x28   : > { %v482_v58 = vsel %vm408_vm3, %v467_v55, 0.0  ;;  %v5373_v2 = vpack.i.bf16 %v468_v57, %v480_v44  ;;  %v466_v5 = vsel %vm442_vm2, %v417_v53, %v418_v62  ;;  %v274_v6 = vrot.slane %v6333_v59, 7 }
  0x29   : > { %5314 = vrot.lane.b32.xlu1 %v5313_v37, %s6119_s12  ;;  %v5363_v61 = vpack.i.bf16 %v482_v58, %v468_v57  ;;  %v322_v9 = vsel %vm298_vm0, %v272_v45, %v273_v63  ;;  %v5378_v12 = vpack.i.bf16 %v466_v5, %v482_v58  ;;  %v419_v16 = vrot.slane %v232_v11, 1  ;;  %v236_v58 = vld [vmem:[%s6226_s9 + $0x60] sm:$0xff] }
  0x2a   : > { %5309 = vrot.lane.b32.xlu0 %v5308_v38, %s6120_s13  ;;  %v6351_v13 = vsel %vm298_vm0, %v273_v63, %v274_v6  ;;  %v6355_v15 = vsel %vm261_vm1, %v322_v9, 0.0  ;;  %v275_v20 = vrot.slane %v232_v11, 7  ;;  %v5398_v23 = vpack.i.bf16 %v6333_v59, %v230_v49 }
  0x2b   : > { %v5388_v17 = vpack.i.bf16 %v6351_v13, %v6355_v15  ;;  %v465_v18 = vsel %vm442_vm2, %v418_v62, %v419_v16  ;;  %v276_v25 = vrot.slane %v233_v19, 7  ;;  %v6125_v27 = vmov 65535  }
  0x2c   : > { %v484_v24 = vsel %vm408_vm3, %v465_v18, 0.0  ;;  %v1745_v28 = vsel %vm1743_vm4, 4294967295, %v6125_v27  ;;  %v320_v29 = vsel %vm298_vm0, %v274_v6, %v275_v20  ;;  %v420_v39 = vrot.slane %v233_v19, 1 }
  0x2d   : > { %5319 = vrot.lane.b32.xlu1 %v5318_v42, %s6120_s13  ;;  %v1746_v31 = vsel %vm1744_vm5, %v1745_v28, 0  ;;  %v5408_v33 = vpack.i.bf16 %v484_v24, %v466_v5  ;;  %v6383_v38 = vsel %vm261_vm1, %v320_v29, 0.0  ;;  %v421_v40 = vrot.slane %v234_v36, 1  ;;  %v6455_v29 = vld [vmem:[%s6226_s9 + $0x78] sm:$0xff] }
  0x2e   : > { %5324 = vrot.lane.b32.xlu0 %v5323_v43, %s6121_s16  ;;  %v1748_v32 = vand.u32 %v6039_v22, %v1746_v31  ;;  %v5428_v43 = vpack.i.bf16 %v233_v19, %v232_v11  ;;  %v464_v44 = vsel %vm442_vm2, %v419_v16, %v420_v39  ;;  %v5438_v47 = vpack.i.bf16 %v232_v11, %v6333_v59 }
  0x2f   : > { %v422_v49 = vrot.slane %v235_v46, 1  ;;  %v277_v52 = vrot.slane %v234_v36, 7  ;;  %v5448_v53 = vpack.i.bf16 %v234_v36, %v233_v19  ;;  %v423_v62 = vrot.slane %v236_v58, 1 }
  0x30   : > { %5190 = vmatprep.subr.bf16.mxu0 %v1748_v32  ;;  %v279_v5 = vrot.slane %v236_v58, 7  ;;  %v5478_v6 = vpack.i.bf16 %v235_v46, %v234_v36  ;;  %v5518_v31 = vpack.i.bf16 %v236_v58, %v235_v46  ;;  %vm3907_vm4 = vcmask 1041409  }
  0x31   : > { %5329 = vrot.lane.b32.xlu1 %v5328_v48, %s6121_s16  ;;  %5191 = vmatpush3.bf16.msra.mxu0 %v1748_v32  ;;  %v462_v55 = vsel %vm442_vm2, %v421_v40, %v422_v49  ;;  %v318_v57 = vsel %vm298_vm0, %v276_v25, %v277_v52  ;;  %vm3910_vm5 = vcmask 1042434  }
  0x32   : > { %5334 = vrot.lane.b32.xlu0 %v5313_v37, %s6122_s17  ;;  %v6379_v37 = vsel %vm298_vm0, %v275_v20, %v276_v25 }
  0x33   : > { %v5418_v41 = vpack.i.bf16 %v6379_v37, %v6383_v38 }
  0x35   : > { %5339 = vrot.lane.b32.xlu1 %v5338_v54, %s6122_s17 }
  0x36   : > { %5344 = vrot.lane.b32.xlu0 %v5318_v42, %s6123_s23  ;;  %v463_v42 = vsel %vm442_vm2, %v420_v39, %v421_v40 }
  0x37   : > { %v486_v45 = vsel %vm408_vm3, %v463_v42, 0.0  ;;  %v282_v42 = vrot.slane %v6455_v29, 7 }
  0x38   : > { %v5458_v59 = vpack.i.bf16 %v462_v55, %v486_v45 }
  0x39   : > { %5349 = vrot.lane.b32.xlu1 %v5348_v56, %s6123_s23 }
  0x3a   : > { %5354 = vrot.lane.b32.xlu0 %v5328_v48, %s6124_s25  ;;  %v5443_v48 = vpack.i.bf16 %v486_v45, %v464_v44 }
  0x3d   : > { %5359 = vrot.lane.b32.xlu1 %v5358_v60, %s6117_s10 }
  0x3e   : > { %5364 = vrot.lane.b32.xlu0 %v5363_v61, %s6124_s25 }
  0x41   : > { %5369 = vrot.lane.b32.xlu1 %v5368_v0, %s6117_s10  ;;  %v461_v0 = vsel %vm442_vm2, %v422_v49, %v423_v62 }
  0x42   : > { %5374 = vrot.lane.b32.xlu0 %v5373_v2, %s6118_s11  ;;  %v237_v2 = vld [vmem:[%s6226_s9 + $0x68] sm:$0xff]  ;;  %v488_v9 = vsel %vm408_vm3, %v461_v0, 0.0 }
  0x43   : > { %v280_v11 = vrot.slane %v237_v2, 7  ;;  %v5488_v16 = vpack.i.bf16 %v488_v9, %v462_v55  ;;  %v424_v20 = vrot.slane %v237_v2, 1  ;;  %v5508_v25 = vpack.i.bf16 %v237_v2, %v236_v58 }
  0x45   : > { %5379 = vrot.lane.b32.xlu1 %v5378_v12, %s6118_s11  ;;  %v6436_v18 = vsel %vm298_vm0, %v279_v5, %v280_v11  ;;  %v460_v27 = vsel %vm442_vm2, %v423_v62, %v424_v20  ;;  %v242_v62 = vld [vmem:[%s6226_s9 + $0x90] sm:$0xff] }
  0x46   : > { %5384 = vrot.lane.b32.xlu0 %v5338_v54, %s6119_s12  ;;  %v5453_v54 = vpack.i.bf16 %v464_v44, %v484_v24  ;;  %v5533_v40 = vpack.i.bf16 %v460_v27, %v488_v9  ;;  %v240_v44 = vld [vmem:[%s6226_s9 + $0x80] sm:$0xff] }
  0x49   : > { %5389 = vrot.lane.b32.xlu1 %v5388_v17, %s6119_s12 }
  0x4a   : > { %5394 = vrot.lane.b32.xlu0 %v5348_v56, %s6120_s13  ;;  %v278_v56 = vrot.slane %v235_v46, 7 }
  0x4c   : > { %v6412_v60 = vsel %vm298_vm0, %v277_v52, %v278_v56  ;;  %v316_v12 = vsel %vm298_vm0, %v278_v56, %v279_v5 }
  0x4d   : > { %5399 = vrot.lane.b32.xlu1 %v5398_v23, %s6120_s13  ;;  %v6440_v19 = vsel %vm261_vm1, %v316_v12, 0.0 }
  0x4e   : > { %5404 = vrot.lane.b32.xlu0 %v5363_v61, %s6121_s16  ;;  %v6416_v61 = vsel %vm261_vm1, %v318_v57, 0.0 }
  0x4f   : > { %v5468_v63 = vpack.i.bf16 %v6412_v60, %v6416_v61 }
  0x51   : > { %5409 = vrot.lane.b32.xlu1 %v5408_v33, %s6121_s16 }
  0x52   : > { %5414 = vrot.lane.b32.xlu0 %v5388_v17, %s6122_s17  ;;  %v238_v17 = vld [vmem:[%s6226_s9 + $0x70] sm:$0xff] }
  0x53   : > { %v425_v22 = vrot.slane %v238_v17, 1  ;;  %v281_v36 = vrot.slane %v238_v17, 7  ;;  %v5528_v39 = vpack.i.bf16 %v238_v17, %v237_v2  ;;  %v5558_v55 = vpack.i.bf16 %v6455_v29, %v238_v17 }
  0x55   : > { %5419 = vrot.lane.b32.xlu1 %v5418_v41, %s6122_s17  ;;  %v459_v24 = vsel %vm442_vm2, %v424_v20, %v425_v22  ;;  %v6472_v46 = vsel %vm298_vm0, %v281_v36, %v282_v42  ;;  %v6531_v20 = vld [vmem:[%s6226_s9 + $0xa0] sm:$0xff] }
  0x56   : > { %5424 = vrot.lane.b32.xlu0 %v5398_v23, %s6123_s23  ;;  %v5498_v23 = vpack.i.bf16 %v6436_v18, %v6440_v19  ;;  %v490_v28 = vsel %vm408_vm3, %v459_v24, 0.0 }
  0x57   : > { %v5523_v32 = vpack.i.bf16 %v490_v28, %v460_v27 }
  0x59   : > { %5429 = vrot.lane.b32.xlu1 %v5428_v43, %s6123_s23 }
  0x5a   : > { %5434 = vrot.lane.b32.xlu0 %v5408_v33, %s6124_s25  ;;  %v426_v33 = vrot.slane %v6455_v29, 1 }
  0x5d   : > { %5439 = vrot.lane.b32.xlu1 %v5438_v47, %s6117_s10 }
  0x5e   : > { %5444 = vrot.lane.b32.xlu0 %v5443_v48, %s6124_s25 }
  0x61   : > { %5449 = vrot.lane.b32.xlu1 %v5448_v53, %s6117_s10  ;;  %v6485_v53 = vld [vmem:[%s6226_s9 + $0x88] sm:$0xff] }
  0x62   : > { %5454 = vrot.lane.b32.xlu0 %v5453_v54, %s6118_s11  ;;  %v283_v54 = vrot.slane %v240_v44, 7  ;;  %v284_v57 = vrot.slane %v6485_v53, 7  ;;  %v428_v5 = vrot.slane %v6485_v53, 1  ;;  %v6527_v17 = vpack.i.bf16 %v6485_v53, %v240_v44 }
  0x64   : > { %v312_v58 = vsel %vm298_vm0, %v282_v42, %v283_v54 }
  0x65   : > { %5459 = vrot.lane.b32.xlu1 %v5458_v59, %s6118_s11  ;;  %v6507_v0 = vsel %vm261_vm1, %v312_v58, 0.0 }
  0x66   : > { %5464 = vrot.lane.b32.xlu0 %v5418_v41, %s6119_s12  ;;  %v458_v41 = vsel %vm442_vm2, %v425_v22, %v426_v33 }
  0x67   : > { %v5538_v45 = vpack.i.bf16 %v458_v41, %v490_v28  ;;  %v285_v28 = vrot.slane %v242_v62, 7 }
  0x69   : > { %5469 = vrot.lane.b32.xlu1 %v5468_v63, %s6119_s12 }
  0x6a   : > { %5474 = vrot.lane.b32.xlu0 %v5428_v43, %s6120_s13  ;;  %v314_v43 = vsel %vm298_vm0, %v280_v11, %v281_v36 }
  0x6b   : > { %v6476_v47 = vsel %vm261_vm1, %v314_v43, 0.0 }
  0x6c   : > { %v5548_v49 = vpack.i.bf16 %v6472_v46, %v6476_v47 }
  0x6d   : > { %5479 = vrot.lane.b32.xlu1 %v5478_v6, %s6120_s13 }
  0x6e   : > { %5484 = vrot.lane.b32.xlu0 %v5443_v48, %s6121_s16  ;;  %v427_v48 = vrot.slane %v240_v44, 1 }
  0x70   : > { %v457_v52 = vsel %vm442_vm2, %v426_v33, %v427_v48 }
  0x71   : > { %5489 = vrot.lane.b32.xlu1 %v5488_v16, %s6121_s16  ;;  %v6492_v56 = vsel %vm408_vm3, %v457_v52, 0.0 }
  0x72   : > { %5494 = vrot.lane.b32.xlu0 %v5468_v63, %s6122_s17  ;;  %v5568_v59 = vpack.i.bf16 %v6492_v56, %v458_v41  ;;  %v6503_v63 = vsel %vm298_vm0, %v283_v54, %v284_v57 }
  0x73   : > { %v6515_v9 = vpack.i.bf16 %v6503_v63, %v6507_v0 }
  0x75   : > { %5499 = vrot.lane.b32.xlu1 %v5498_v23, %s6122_s17 }
  0x76   : > { %5504 = vrot.lane.b32.xlu0 %v5478_v6, %s6123_s23  ;;  %v429_v6 = vrot.slane %v242_v62, 1 }
  0x79   : > { %5509 = vrot.lane.b32.xlu1 %v5508_v25, %s6123_s23 }
  0x7a   : > { %5514 = vrot.lane.b32.xlu0 %v5488_v16, %s6124_s25  ;;  %v455_v16 = vsel %vm442_vm2, %v428_v5, %v429_v6 }
  0x7b   : > { %v494_v24 = vsel %vm408_vm3, %v455_v16, 0.0 }
  0x7d   : > { %5519 = vrot.lane.b32.xlu1 %v5518_v31, %s6117_s10  ;;  %v5598_v31 = vpack.i.bf16 %v240_v44, %v6455_v29  ;;  %v310_v29 = vsel %vm298_vm0, %v284_v57, %v285_v28  ;;  %v5608_v44 = vpack.i.bf16 %v242_v62, %v6485_v53 }
  0x7e   : > { %5524 = vrot.lane.b32.xlu0 %v5523_v32, %s6124_s25  ;;  %v6585_v57 = vsel %vm261_vm1, %v310_v29, 0.0 }
  0x81   : > { %5529 = vrot.lane.b32.xlu1 %v5528_v39, %s6117_s10  ;;  %v6553_v39 = vld [vmem:[%s6226_s9 + $0xa8] sm:$0xff] }
  0x82   : > { %5534 = vrot.lane.b32.xlu0 %v5533_v40, %s6118_s11  ;;  %v287_v40 = vrot.slane %v6531_v20, 7 }
  0x85   : > { %5539 = vrot.lane.b32.xlu1 %v5538_v45, %s6118_s11 }
  0x86   : > { %5544 = vrot.lane.b32.xlu0 %v5498_v23, %s6119_s12  ;;  %v456_v23 = vsel %vm442_vm2, %v427_v48, %v428_v5  ;;  %v8845_v48 = vrot.slane %v6553_v39, 7 }
  0x87   : > { %v6549_v33 = vpack.i.bf16 %v494_v24, %v456_v23 }
  0x89   : > { %5549 = vrot.lane.b32.xlu1 %v5548_v49, %s6119_s12 }
  0x8a   : > { %5554 = vrot.lane.b32.xlu0 %v5508_v25, %s6120_s13  ;;  %v6540_v25 = vld [vmem:[%s6226_s9 + $0x98] sm:$0xff] }
  0x8b   : > { %v430_v36 = vrot.slane %v6540_v25, 1  ;;  %v286_v42 = vrot.slane %v6540_v25, 7  ;;  %v6593_v5 = vpack.i.bf16 %v6540_v25, %v242_v62 }
  0x8d   : > { %5559 = vrot.lane.b32.xlu1 %v5558_v55, %s6120_s13  ;;  %v454_v52 = vsel %vm442_vm2, %v429_v6, %v430_v36  ;;  %v308_v54 = vsel %vm298_vm0, %v286_v42, %v287_v40  ;;  %v6599_v6 = vsel %vm298_vm0, %v287_v40, %v8845_v48 }
  0x8e   : > { %5564 = vrot.lane.b32.xlu0 %v5523_v32, %s6121_s16  ;;  %v8846_v32 = vrot.slane %v6531_v20, 1  ;;  %8859 = vst [vmem:[#allocation6_spill] sm:$0xff] %v6599_v6  ;;  %v6603_v16 = vsel %vm261_vm1, %v308_v54, 0.0 }
  0x90   : > { %v6509_v2 = vpop.permute.xlu0 %5284  ;;  %v453_v45 = vsel %vm442_vm2, %v430_v36, %v8846_v32 }
  0x91   : > { %5569 = vrot.lane.b32.xlu1 %v5568_v59, %s6121_s16  ;;  %v6589_v58 = vsel %vm408_vm3, %v453_v45, 0.0 }
  0x92   : > { %5574 = vrot.lane.b32.xlu0 %v5548_v49, %s6122_s17  ;;  %v5613_v49 = vpack.i.bf16 %v456_v23, %v6492_v56  ;;  %v5287_v23 = vunpack.i.h.bf16 %v6509_v2  ;;  %v6617_v40 = vpack.i.bf16 %v6589_v58, %v454_v52 }
  0x93   : > { %v6518_v11 = vpop.permute.xlu1 %5294 }
  0x94   : > { %v6520_v12 = vpop.permute.xlu0 %5289  ;;  %v1403_v21 = vsel %vm1401_vm6, %v6275_v30, %v5287_v23 }
  0x95   : > { %5579 = vrot.lane.b32.xlu1 %v6515_v9, %s6122_s17 }
  0x96   : > { %5584 = vrot.lane.b32.xlu0 %v5558_v55, %s6123_s23  ;;  %v6581_v55 = vsel %vm298_vm0, %v285_v28, %v286_v42  ;;  %v5286_v28 = vunpack.i.l.bf16 %v6509_v2  ;;  %v5297_v42 = vunpack.i.h.bf16 %v6518_v11 }
  0x97   : > { %v6533_v22 = vpop.permute.xlu1 %5299  ;;  %8858 = vst [vmem:[#allocation5_spill] sm:$0xff] %v6581_v55  ;;  %v6610_v62 = vpack.i.bf16 %v6581_v55, %v6585_v57 }
  0x98   : > { %v6542_v27 = vpop.permute.xlu0 %5304  ;;  %v5301_v2 = vunpack.i.l.bf16 %v6533_v22 }
  0x99   : > { %5589 = vrot.lane.b32.xlu1 %v6527_v17, %s6123_s23  ;;  %v5306_v54 = vunpack.i.l.bf16 %v6542_v27 }
  0x9a   : > { %5594 = vrot.lane.b32.xlu0 %v5568_v59, %s6124_s25  ;;  %v5618_v59 = vpack.i.bf16 %v454_v52, %v494_v24  ;;  %v5296_v24 = vunpack.i.l.bf16 %v6518_v11  ;;  %v1402_v11 = vsel %vm1401_vm6, 0.0, %v5286_v28  ;;  %v1435_v28 = vsel %vm1433_vm7, %v1403_v21, %v5297_v42 }
  0x9b   : > { %v6556_v41 = vpop.permute.xlu1 %5314 }
  0x9c   : > { %v6559_v43 = vpop.permute.xlu0 %5309  ;;  %v5317_v8 = vunpack.i.h.bf16 %v6556_v41  ;;  %v5316_v52 = vunpack.i.l.bf16 %v6556_v41 }
  0x9d   : > { %5599 = vrot.lane.b32.xlu1 %v5598_v31, %s6117_s10  ;;  %v5291_v31 = vunpack.i.l.bf16 %v6520_v12  ;;  %v5312_v10 = vunpack.i.h.bf16 %v6559_v43  ;;  %v5311_v48 = vunpack.i.l.bf16 %v6559_v43 }
  0x9e   : > { %5604 = vrot.lane.b32.xlu0 %v6549_v33, %s6124_s25 }
  0x9f   : > { %v6577_v53 = vpop.permute.xlu1 %5319  ;;  %v1404_v32 = vsel %vm1401_vm6, %v6265_v26, %v5291_v31 }
  0xa0   : > { %v5325_v56 = vpop.permute.xlu0 %5324  ;;  %v1436_v30 = vsel %vm1433_vm7, %v1404_v32, %v5301_v2  ;;  %v5322_v31 = vunpack.i.h.bf16 %v6577_v53  ;;  %v5321_v42 = vunpack.i.l.bf16 %v6577_v53  ;;  %v6664_v53 = vld [vmem:[%s6226_s9 + $0xb0] sm:$0xff] }
  0xa1   : > { %5609 = vrot.lane.b32.xlu1 %v5608_v44, %s6117_s10  ;;  %v6623_v44 = vpack.i.bf16 %v6599_v6, %v6603_v16  ;;  %v5327_v41 = vunpack.i.h.bf16 %v5325_v56  ;;  %v5326_v45 = vunpack.i.l.bf16 %v5325_v56 }
  0xa2   : > { %5614 = vrot.lane.b32.xlu0 %v5613_v49, %s6118_s11  ;;  %v5307_v49 = vunpack.i.h.bf16 %v6542_v27  ;;  %v1434_v27 = vsel %vm1433_vm7, %v1402_v11, %v5296_v24  ;;  %v1468_v24 = vsel %vm1465_vm8, %v1435_v28, %v5316_v52  ;;  %v1469_v11 = vsel %vm1465_vm8, %v1436_v30, %v5317_v8 }
  0xa3   : > { %v6614_v36 = vpop.permute.xlu1 %5329  ;;  %v1501_v30 = vsel %vm1498_vm9, %v1468_v24, %v5321_v42 }
  0xa4   : > { %v5335_v29 = vpop.permute.xlu0 %5334  ;;  %v1467_v43 = vsel %vm1465_vm8, %v1434_v27, %v5307_v49  ;;  %v5332_v49 = vunpack.i.h.bf16 %v6614_v36 }
  0xa5   : > { %5619 = vrot.lane.b32.xlu1 %v5618_v59, %s6118_s11  ;;  %v5337_v23 = vunpack.i.h.bf16 %v5335_v29  ;;  %v5336_v6 = vunpack.i.l.bf16 %v5335_v29  ;;  %v1500_v21 = vsel %vm1498_vm9, %v1467_v43, %v5312_v10 }
  0xa6   : > { %5624 = vrot.lane.b32.xlu0 %v6515_v9, %s6119_s12  ;;  %v1466_v9 = vsel %vm1465_vm8, %v1434_v27, %v5306_v54  ;;  %v1533_v8 = vsel %vm1531_vm10, %v1500_v21, %v5327_v41 }
  0xa7   : > { %v5340_v59 = vpop.permute.xlu1 %5339  ;;  %v1499_v26 = vsel %vm1498_vm9, %v1466_v9, %v5311_v48  ;;  %v5331_v48 = vunpack.i.l.bf16 %v6614_v36  ;;  %v1566_v54 = vsel %vm1564_vm11, %v1533_v8, %v5337_v23 }
  0xa8   : > { %v5345_v55 = vpop.permute.xlu0 %5344  ;;  %v1532_v2 = vsel %vm1531_vm10, %v1499_v26, %v5326_v45  ;;  %v5341_v52 = vunpack.i.l.bf16 %v5340_v59 }
  0xa9   : > { %5629 = vrot.lane.b32.xlu1 %v6610_v62, %s6119_s12  ;;  %v5347_v56 = vunpack.i.h.bf16 %v5345_v55  ;;  %v5346_v32 = vunpack.i.l.bf16 %v5345_v55  ;;  %v1565_v55 = vsel %vm1564_vm11, %v1532_v2, %v5336_v6  ;;  %v1534_v26 = vsel %vm1531_vm10, %v1501_v30, %v5331_v48 }
  0xaa   : > { %5634 = vrot.lane.b32.xlu0 %v6527_v17, %s6120_s13  ;;  %v5342_v17 = vunpack.i.h.bf16 %v5340_v59  ;;  %v1502_v59 = vsel %vm1498_vm9, %v1469_v11, %v5322_v31  ;;  %v289_v30 = vrot.slane %v6664_v53, 7 }
  0xab   : > { %v5350_v29 = vpop.permute.xlu1 %5349  ;;  %v1598_v36 = vsel %vm1597_vm12, %v1565_v55, %v5346_v32  ;;  %v1599_v6 = vsel %vm1597_vm12, %v1566_v54, %v5347_v56  ;;  %v1535_v21 = vsel %vm1531_vm10, %v1502_v59, %v5332_v49  ;;  %v433_v32 = vrot.slane %v6664_v53, 1 }
  0xac   : > { %v5355_v10 = vpop.permute.xlu0 %5354  ;;  %v5352_v45 = vunpack.i.h.bf16 %v5350_v29  ;;  %v5351_v41 = vunpack.i.l.bf16 %v5350_v29  ;;  %v1567_v56 = vsel %vm1564_vm11, %v1534_v26, %v5341_v52  ;;  %v1568_v24 = vsel %vm1564_vm11, %v1535_v21, %v5342_v17  ;;  %v6705_v52 = vld [vmem:[%s6226_s9 + $0xc0] sm:$0xff] }
  0xad   : > { %v5357_v27 = vunpack.i.h.bf16 %v5355_v10  ;;  %v5356_v28 = vunpack.i.l.bf16 %v5355_v10  ;;  %5639 = vrot.lane.b32.xlu1 %v6593_v5, %s6120_s13  ;;  %v8860_v54 = vrot.slane %v6553_v39, 1  ;;  %v291_v26 = vrot.slane %v6705_v52, 7 }
  0xae   : > { %5644 = vrot.lane.b32.xlu0 %v6549_v33, %s6121_s16  ;;  %v1600_v42 = vsel %vm1597_vm12, %v1567_v56, %v5351_v41  ;;  %v1601_v8 = vsel %vm1597_vm12, %v1568_v24, %v5352_v45  ;;  %v8862_v45 = vrot.slane %v6531_v20, 1  ;;  %v8863_v24 = vrot.slane %v6553_v39, 7 }
  0xaf   : > { %v6672_v23 = vpop.permute.xlu1 %5359  ;;  %v1631_v43 = vsel %vm1630_vm13, %v1598_v36, %v5356_v28  ;;  %v1632_v9 = vsel %vm1630_vm13, %v1599_v6, %v5357_v27  ;;  %v451_v17 = vsel %vm442_vm2, %v8860_v54, %v433_v32  ;;  %v8861_v28 = vmov %v8860_v54  ;;  %v6721_v6 = vld [vmem:[%s6226_s9 + $0xb8] sm:$0xff] }
  0xb0   : > { %v5365_v2 = vpop.permute.xlu0 %5364  ;;  %v1663_v33 = vpack.c.bf16 %v1632_v9, %v1631_v43  ;;  %v452_v41 = vsel %vm442_vm2, %v8862_v45, %v8861_v28  ;;  %v498_v36 = vsel %vm408_vm3, %v451_v17, 0.0  ;;  %v5678_v43 = vpack.i.bf16 %v6531_v20, %v6540_v25  ;;  %v6732_v9 = vld [vmem:[%s6226_s9 + $0xc8] sm:$0xff] }
  0xb1   : > { %v5367_v11 = vunpack.i.h.bf16 %v5365_v2  ;;  %v5366_v31 = vunpack.i.l.bf16 %v5365_v2  ;;  %5649 = vrot.lane.b32.xlu1 %v6617_v40, %s6121_s16  ;;  %v6737_v21 = vpack.i.bf16 %v498_v36, %v452_v41  ;;  %v434_v2 = vrot.slane %v6721_v6, 1 }
  0xb2   : > { %5654 = vrot.lane.b32.xlu0 %v6610_v62, %s6122_s17  ;;  %5192 = vmatprep.mubr.msk.bf16.mxu0 %vm1694_vm14, %v1663_v33  ;;  %v6702_v62 = vpack.i.bf16 %v6553_v39, %v6531_v20  ;;  %v290_v33 = vrot.slane %v6721_v6, 7  ;;  %v306_v20 = vsel %vm298_vm0, %v8863_v24, %v289_v30 }
  0xb3   : > { %v1633_v29 = vsel %vm1630_vm13, %v1600_v42, %v5366_v31  ;;  %v1634_v49 = vsel %vm1630_vm13, %v1601_v8, %v5367_v11  ;;  %v6690_v48 = vpop.permute.xlu1 %5369  ;;  %v8849_v11 = vrot.slane %v6732_v9, 7  ;;  %v5688_v31 = vpack.i.bf16 %v6664_v53, %v6553_v39 }
  0xb4   : > { %v6692_v10 = vpop.permute.xlu0 %5374  ;;  %v1664_v55 = vpack.c.bf16 %v1634_v49, %v1633_v29  ;;  %v304_v42 = vsel %vm298_vm0, %v290_v33, %v291_v26  ;;  %v5693_v8 = vpack.i.bf16 %v452_v41, %v6589_v58  ;;  %v450_v29 = vsel %vm442_vm2, %v433_v32, %v434_v2 }
  0xb5   : > { %5659 = vrot.lane.b32.xlu1 %v6623_v44, %s6122_s17  ;;  %v6766_v49 = vsel %vm298_vm0, %v289_v30, %v290_v33  ;;  %v5292_v39 = vunpack.i.h.bf16 %v6520_v12  ;;  %v5302_v58 = vunpack.i.h.bf16 %v6533_v22  ;;  %v6784_v32 = vsel %vm298_vm0, %v291_v26, %v8849_v11 }
  0xb6   : > { %5664 = vrot.lane.b32.xlu0 %v6593_v5, %s6123_s23  ;;  %5193 = vmatmul.mubr.msk.bf16.vlgmr.msra.gmra.mrb[0].mxu0 %vm1694_vm14, %v1664_v55  ;;  %v8850_v5 = vrot.slane %v6705_v52, 1  ;;  %8864 = vst [vmem:[#allocation7_spill] sm:$0xff] %v6766_v49  ;;  %v6770_v55 = vsel %vm261_vm1, %v306_v20, 0.0  ;;  %8865 = vst [vmem:[#allocation8_spill] sm:$0xff] %v6784_v32  ;;  %v6788_v45 = vsel %vm261_vm1, %v304_v42, 0.0  ;;  %v5698_v12 = vpack.i.bf16 %v450_v29, %v498_v36 }
  0xb7   : > { %v6710_v27 = vpop.permute.xlu1 %5379  ;;  %v6793_v41 = vpack.i.bf16 %v6766_v49, %v6770_v55  ;;  %v6797_v22 = vpack.i.bf16 %v6721_v6, %v6664_v53  ;;  %v5362_v30 = vunpack.i.h.bf16 %v6672_v23  ;;  %v1405_v36 = vsel %vm1401_vm6, %v6285_v34, %v5292_v39 }
  0xb8   : > { %v6724_v59 = vpop.permute.xlu0 %5384  ;;  %v5377_v33 = vunpack.i.h.bf16 %v6692_v10  ;;  %v6813_v53 = vpack.i.bf16 %v6784_v32, %v6788_v45  ;;  %v5376_v20 = vunpack.i.l.bf16 %v6692_v10 }
  0xb9   : > { %5669 = vrot.lane.b32.xlu1 %v6702_v62, %s6123_s23  ;;  %v5387_v34 = vunpack.i.h.bf16 %v6724_v59 }
  0xba   : > { %5674 = vrot.lane.b32.xlu0 %v6617_v40, %s6124_s25  ;;  %v449_v40 = vsel %vm442_vm2, %v434_v2, %v8850_v5  ;;  %v5371_v2 = vunpack.i.l.bf16 %v6690_v48 }
  0xbb   : > { %v6741_v56 = vpop.permute.xlu1 %5389  ;;  %v6777_v17 = vsel %vm408_vm3, %v449_v40, 0.0  ;;  %v5381_v40 = vunpack.i.l.bf16 %v6710_v27 }
  0xbc   : > { %v6747_v25 = vpop.permute.xlu0 %5394  ;;  %v6803_v26 = vpack.i.bf16 %v6777_v17, %v450_v29  ;;  %v5392_v29 = vunpack.i.h.bf16 %v6741_v56  ;;  %v5391_v39 = vunpack.i.l.bf16 %v6741_v56 }
  0xbd   : > { %5679 = vrot.lane.b32.xlu1 %v5678_v43, %s6117_s10  ;;  %v5361_v43 = vunpack.i.l.bf16 %v6672_v23  ;;  %v1437_v23 = vsel %vm1433_vm7, %v1405_v36, %v5302_v58  ;;  %v1407_v58 = vsel %vm1401_vm6, %v6318_v51, %v5362_v30  ;;  %v5397_v36 = vunpack.i.h.bf16 %v6747_v25 }
  0xbe   : > { %5684 = vrot.lane.b32.xlu0 %v6737_v21, %s6124_s25  ;;  %v5396_v11 = vunpack.i.l.bf16 %v6747_v25  ;;  %v1439_v56 = vsel %vm1433_vm7, %v1407_v58, %v5377_v33 }
  0xbf   : > { %v6773_v54 = vpop.permute.xlu1 %5399  ;;  %v1406_v10 = vsel %vm1401_vm6, %v6289_v35, %v5361_v43 }
  0xc0   : > { %v5405_v28 = vpop.permute.xlu0 %5404  ;;  %v1438_v51 = vsel %vm1433_vm7, %v1406_v10, %v5376_v20 }
  0xc1   : > { %5689 = vrot.lane.b32.xlu1 %v5688_v31, %s6117_s10  ;;  %v5407_v5 = vunpack.i.h.bf16 %v5405_v28  ;;  %v1471_v49 = vsel %vm1465_vm8, %v1438_v51, %v5387_v34 }
  0xc2   : > { %5694 = vrot.lane.b32.xlu0 %v5693_v8, %s6118_s11  ;;  %v5386_v8 = vunpack.i.l.bf16 %v6724_v59  ;;  %v1408_v59 = vsel %vm1401_vm6, %v6314_v50, %v5371_v2  ;;  %v1504_v2 = vsel %vm1498_vm9, %v1471_v49, %v5397_v36 }
  0xc3   : > { %v6809_v24 = vpop.permute.xlu1 %5409  ;;  %v1440_v30 = vsel %vm1433_vm7, %v1408_v59, %v5381_v40  ;;  %v5401_v40 = vunpack.i.l.bf16 %v6773_v54  ;;  %v1537_v34 = vsel %vm1531_vm10, %v1504_v2, %v5407_v5 }
  0xc4   : > { %v5415_v31 = vpop.permute.xlu0 %5414  ;;  %v1470_v25 = vsel %vm1465_vm8, %v1437_v23, %v5386_v8  ;;  %v1473_v50 = vsel %vm1465_vm8, %v1440_v30, %v5392_v29  ;;  %v5402_v23 = vunpack.i.h.bf16 %v6773_v54  ;;  %v5412_v29 = vunpack.i.h.bf16 %v6809_v24  ;;  %v6858_v54 = vld [vmem:[%s6226_s9 + $0xd0] sm:$0xff] }
  0xc5   : > { %5699 = vrot.lane.b32.xlu1 %v5698_v12, %s6118_s11  ;;  %v5406_v12 = vunpack.i.l.bf16 %v5405_v28  ;;  %v5417_v35 = vunpack.i.h.bf16 %v5415_v31  ;;  %v5416_v43 = vunpack.i.l.bf16 %v5415_v31  ;;  %v1503_v28 = vsel %vm1498_vm9, %v1470_v25, %v5396_v11 }
  0xc6   : > { %5704 = vrot.lane.b32.xlu0 %v6623_v44, %s6119_s12  ;;  %v1472_v44 = vsel %vm1465_vm8, %v1439_v56, %v5391_v39  ;;  %v5411_v11 = vunpack.i.l.bf16 %v6809_v24 }
  0xc7   : > { %v5420_v42 = vpop.permute.xlu1 %5419  ;;  %v1536_v31 = vsel %vm1531_vm10, %v1503_v28, %v5406_v12  ;;  %v1505_v12 = vsel %vm1498_vm9, %v1472_v44, %v5401_v40 }
  0xc8   : > { %v5425_v32 = vpop.permute.xlu0 %5424  ;;  %v1569_v49 = vsel %vm1564_vm11, %v1536_v31, %v5416_v43  ;;  %v5421_v58 = vunpack.i.l.bf16 %v5420_v42  ;;  %v1538_v43 = vsel %vm1531_vm10, %v1505_v12, %v5411_v11 }
  0xc9   : > { %5709 = vrot.lane.b32.xlu1 %v6793_v41, %s6119_s12  ;;  %v5427_v33 = vunpack.i.h.bf16 %v5425_v32  ;;  %v5426_v20 = vunpack.i.l.bf16 %v5425_v32  ;;  %v1570_v32 = vsel %vm1564_vm11, %v1537_v34, %v5417_v35 }
  0xca   : > { %5714 = vrot.lane.b32.xlu0 %v6702_v62, %s6120_s13  ;;  %v5422_v62 = vunpack.i.h.bf16 %v5420_v42  ;;  %v1506_v42 = vsel %vm1498_vm9, %v1473_v50, %v5402_v23 }
  0xcb   : > { %v5430_v8 = vpop.permute.xlu1 %5429  ;;  %v1602_v5 = vsel %vm1597_vm12, %v1569_v49, %v5426_v20  ;;  %v1603_v59 = vsel %vm1597_vm12, %v1570_v32, %v5427_v33  ;;  %v1539_v25 = vsel %vm1531_vm10, %v1506_v42, %v5412_v29  ;;  %v437_v33 = vrot.slane %v6858_v54, 1 }
  0xcc   : > { %v5435_v39 = vpop.permute.xlu0 %5434  ;;  %v5432_v56 = vunpack.i.h.bf16 %v5430_v8  ;;  %v5431_v24 = vunpack.i.l.bf16 %v5430_v8  ;;  %v1572_v44 = vsel %vm1564_vm11, %v1539_v25, %v5422_v62  ;;  %v8866_v49 = vrot.slane %v6732_v9, 1  ;;  %v6902_v62 = vld [vmem:[%s6226_s9 + $0xe0] sm:$0xff] }
  0xcd   : > { %v5437_v10 = vunpack.i.h.bf16 %v5435_v39  ;;  %v5436_v36 = vunpack.i.l.bf16 %v5435_v39  ;;  %5719 = vrot.lane.b32.xlu1 %v6797_v22, %s6120_s13  ;;  %v6899_v39 = vld [vmem:[%s6226_s9 + $0xd8] sm:$0xff]  ;;  %v8854_v12 = vrot.slane %v6902_v62, 1  ;;  %v5758_v42 = vpack.i.bf16 %v6705_v52, %v6721_v6 }
  0xce   : > { %5724 = vrot.lane.b32.xlu0 %v6737_v21, %s6121_s16  ;;  %v1571_v21 = vsel %vm1564_vm11, %v1538_v43, %v5421_v58  ;;  %v1605_v40 = vsel %vm1597_vm12, %v1572_v44, %v5432_v56  ;;  %v447_v32 = vsel %vm442_vm2, %v8866_v49, %v437_v33  ;;  %v293_v56 = vrot.slane %v6858_v54, 7 }
  0xcf   : > { %v1635_v51 = vsel %vm1630_vm13, %v1602_v5, %v5436_v36  ;;  %v1636_v30 = vsel %vm1630_vm13, %v1603_v59, %v5437_v10  ;;  %v6868_v35 = vpop.permute.xlu1 %5439  ;;  %v1604_v23 = vsel %vm1597_vm12, %v1571_v21, %v5431_v24  ;;  %v8867_v10 = vmov %v8866_v49 }
  0xd0   : > { %v5445_v28 = vpop.permute.xlu0 %5444  ;;  %v1665_v2 = vpack.c.bf16 %v1636_v30, %v1635_v51  ;;  %v8868_v36 = vrot.slane %v6705_v52, 1  ;;  %v502_v59 = vsel %vm408_vm3, %v447_v32, 0.0  ;;  %v6927_v51 = vld [vmem:[%s6226_s9 + $0xe8] sm:$0xff]  ;;  %v295_v30 = vrot.slane %v6902_v62, 7 }
  0xd1   : > { %v5447_v50 = vunpack.i.h.bf16 %v5445_v28  ;;  %v5446_v20 = vunpack.i.l.bf16 %v5445_v28  ;;  %5729 = vrot.lane.b32.xlu1 %v6803_v26, %s6121_s16  ;;  %v294_v25 = vrot.slane %v6899_v39, 7  ;;  %v5382_v49 = vunpack.i.h.bf16 %v6710_v27 }
  0xd2   : > { %5734 = vrot.lane.b32.xlu0 %v6793_v41, %s6122_s17  ;;  %5196 = vmatprep.mubr.msk.bf16.mxu0 %vm1694_vm14, %v1665_v2  ;;  %v6896_v41 = vpack.i.bf16 %v6732_v9, %v6705_v52  ;;  %v448_v5 = vsel %vm442_vm2, %v8868_v36, %v8867_v10  ;;  %v8869_v2 = vrot.slane %v6732_v9, 7  ;;  %v6991_v27 = vpack.i.bf16 %v6899_v39, %v6858_v54 }
  0xd3   : > { %v1638_v31 = vsel %vm1630_vm13, %v1605_v40, %v5447_v50  ;;  %v1637_v34 = vsel %vm1630_vm13, %v1604_v23, %v5446_v20  ;;  %v6884_v8 = vpop.permute.xlu1 %5449  ;;  %v6932_v43 = vpack.i.bf16 %v502_v59, %v448_v5  ;;  %v5768_v50 = vpack.i.bf16 %v6858_v54, %v6732_v9 }
  0xd4   : > { %v6886_v29 = vpop.permute.xlu0 %5454  ;;  %v1666_v11 = vpack.c.bf16 %v1638_v31, %v1637_v34  ;;  %v302_v21 = vsel %vm298_vm0, %v8869_v2, %v293_v56  ;;  %v300_v20 = vsel %vm298_vm0, %v294_v25, %v295_v30  ;;  %v6960_v23 = vsel %vm298_vm0, %v293_v56, %v294_v25 }
  0xd5   : > { %5739 = vrot.lane.b32.xlu1 %v6813_v53, %s6122_s17  ;;  %v6964_v40 = vsel %vm261_vm1, %v302_v21, 0.0  ;;  %v5372_v31 = vunpack.i.h.bf16 %v6690_v48  ;;  %v6982_v10 = vsel %vm261_vm1, %v300_v20, 0.0  ;;  %v5442_v36 = vunpack.i.h.bf16 %v6868_v35 }
  0xd6   : > { %5744 = vrot.lane.b32.xlu0 %v6797_v22, %s6123_s23  ;;  %5197 = vmatmul.mubr.msk.bf16.gmra.mrb[4].mxu0 %vm1694_vm14, %v1666_v11  ;;  %v438_v22 = vrot.slane %v6899_v39, 1  ;;  %v6987_v48 = vpack.i.bf16 %v6960_v23, %v6964_v40  ;;  %v5456_v25 = vunpack.i.l.bf16 %v6886_v29 }
  0xd7   : > { %v6907_v58 = vpop.permute.xlu1 %5459  ;;  %v1409_v56 = vsel %vm1401_vm6, %v6355_v15, %v5372_v31 }
  0xd8   : > { %v6918_v24 = vpop.permute.xlu0 %5464  ;;  %v446_v52 = vsel %vm442_vm2, %v437_v33, %v438_v22  ;;  %v445_v6 = vsel %vm442_vm2, %v438_v22, %v8854_v12  ;;  %v5773_v33 = vpack.i.bf16 %v448_v5, %v6777_v17  ;;  %v5441_v5 = vunpack.i.l.bf16 %v6868_v35 }
  0xd9   : > { %5749 = vrot.lane.b32.xlu1 %v6896_v41, %s6123_s23  ;;  %v5778_v9 = vpack.i.bf16 %v446_v52, %v502_v59  ;;  %v6971_v11 = vsel %vm408_vm3, %v445_v6, 0.0  ;;  %v5451_v22 = vunpack.i.l.bf16 %v6884_v8  ;;  %v1441_v35 = vsel %vm1433_vm7, %v1409_v56, %v5382_v49 }
  0xda   : > { %5754 = vrot.lane.b32.xlu0 %v6803_v26, %s6124_s25  ;;  %v8853_v26 = vrot.slane %v6927_v51, 7  ;;  %v6997_v59 = vpack.i.bf16 %v6971_v11, %v446_v52  ;;  %v5461_v2 = vunpack.i.l.bf16 %v6907_v58  ;;  %v5467_v15 = vunpack.i.h.bf16 %v6918_v24 }
  0xdb   : > { %v6935_v28 = vpop.permute.xlu1 %5469  ;;  %v5466_v6 = vunpack.i.l.bf16 %v6918_v24  ;;  %v1412_v24 = vsel %vm1401_vm6, %v6379_v37, %v5451_v22 }
  0xdc   : > { %v6941_v44 = vpop.permute.xlu0 %5474  ;;  %v6978_v32 = vsel %vm298_vm0, %v295_v30, %v8853_v26  ;;  %v5471_v20 = vunpack.i.l.bf16 %v6935_v28 }
  0xdd   : > { %5759 = vrot.lane.b32.xlu1 %v5758_v42, %s6117_s10  ;;  %v5457_v42 = vunpack.i.h.bf16 %v6886_v29  ;;  %v7007_v54 = vpack.i.bf16 %v6978_v32, %v6982_v10  ;;  %v1410_v29 = vsel %vm1401_vm6, %v6351_v13, %v5441_v5  ;;  %v5477_v31 = vunpack.i.h.bf16 %v6941_v44 }
  0xde   : > { %5764 = vrot.lane.b32.xlu0 %v6932_v43, %s6124_s25  ;;  %v5476_v49 = vunpack.i.l.bf16 %v6941_v44  ;;  %v1474_v44 = vsel %vm1465_vm8, %v1441_v35, %v5466_v6 }
  0xdf   : > { %v6967_v34 = vpop.permute.xlu1 %5479 }
  0xe0   : > { %v5485_v17 = vpop.permute.xlu0 %5484  ;;  %v5482_v35 = vunpack.i.h.bf16 %v6967_v34 }
  0xe1   : > { %5769 = vrot.lane.b32.xlu1 %v5768_v50, %s6117_s10  ;;  %v5472_v50 = vunpack.i.h.bf16 %v6935_v28  ;;  %v5487_v56 = vunpack.i.h.bf16 %v5485_v17 }
  0xe2   : > { %5774 = vrot.lane.b32.xlu0 %v5773_v33, %s6118_s11  ;;  %v1411_v33 = vsel %vm1401_vm6, %v6383_v38, %v5442_v36  ;;  %v1442_v38 = vsel %vm1433_vm7, %v1410_v29, %v5456_v25  ;;  %v1444_v36 = vsel %vm1433_vm7, %v1412_v24, %v5461_v2  ;;  %v5481_v2 = vunpack.i.l.bf16 %v6967_v34  ;;  %v7052_v34 = vld [vmem:[%s6226_s9 + $0xf0] sm:$0xff] }
  0xe3   : > { %v7003_v30 = vpop.permute.xlu1 %5489  ;;  %v1443_v28 = vsel %vm1433_vm7, %v1411_v33, %v5457_v42  ;;  %v1475_v52 = vsel %vm1465_vm8, %v1442_v38, %v5467_v15  ;;  %v1477_v37 = vsel %vm1465_vm8, %v1444_v36, %v5472_v50 }
  0xe4   : > { %v5495_v21 = vpop.permute.xlu0 %5494  ;;  %v1508_v22 = vsel %vm1498_vm9, %v1475_v52, %v5477_v31  ;;  %v5492_v50 = vunpack.i.h.bf16 %v7003_v30 }
  0xe5   : > { %5779 = vrot.lane.b32.xlu1 %v5778_v9, %s6118_s11  ;;  %v5486_v9 = vunpack.i.l.bf16 %v5485_v17  ;;  %v5497_v13 = vunpack.i.h.bf16 %v5495_v21  ;;  %v5496_v5 = vunpack.i.l.bf16 %v5495_v21  ;;  %v1507_v17 = vsel %vm1498_vm9, %v1474_v44, %v5476_v49 }
  0xe6   : > { %5784 = vrot.lane.b32.xlu0 %v6813_v53, %s6119_s12  ;;  %v1476_v53 = vsel %vm1465_vm8, %v1443_v28, %v5471_v20  ;;  %v1541_v15 = vsel %vm1531_vm10, %v1508_v22, %v5487_v56  ;;  %v5491_v20 = vunpack.i.l.bf16 %v7003_v30 }
  0xe7   : > { %v5500_v26 = vpop.permute.xlu1 %5499  ;;  %v1540_v21 = vsel %vm1531_vm10, %v1507_v17, %v5486_v9  ;;  %v1509_v9 = vsel %vm1498_vm9, %v1476_v53, %v5481_v2 }
  0xe8   : > { %v5505_v12 = vpop.permute.xlu0 %5504  ;;  %v1573_v52 = vsel %vm1564_vm11, %v1540_v21, %v5496_v5  ;;  %v5501_v29 = vunpack.i.l.bf16 %v5500_v26  ;;  %v1542_v5 = vsel %vm1531_vm10, %v1509_v9, %v5491_v20 }
  0xe9   : > { %5789 = vrot.lane.b32.xlu1 %v6987_v48, %s6119_s12  ;;  %v5507_v42 = vunpack.i.h.bf16 %v5505_v12  ;;  %v5506_v25 = vunpack.i.l.bf16 %v5505_v12  ;;  %v1574_v12 = vsel %vm1564_vm11, %v1541_v15, %v5497_v13 }
  0xea   : > { %5794 = vrot.lane.b32.xlu0 %v6896_v41, %s6120_s13  ;;  %v5502_v41 = vunpack.i.h.bf16 %v5500_v26  ;;  %v1510_v26 = vsel %vm1498_vm9, %v1477_v37, %v5482_v35 }
  0xeb   : > { %v5510_v6 = vpop.permute.xlu1 %5509  ;;  %v1606_v24 = vsel %vm1597_vm12, %v1573_v52, %v5506_v25  ;;  %v1607_v28 = vsel %vm1597_vm12, %v1574_v12, %v5507_v42  ;;  %v1543_v44 = vsel %vm1531_vm10, %v1510_v26, %v5492_v50  ;;  %v441_v42 = vrot.slane %v7052_v34, 1 }
  0xec   : > { %v5515_v33 = vpop.permute.xlu0 %5514  ;;  %v5512_v56 = vunpack.i.h.bf16 %v5510_v6  ;;  %v5511_v30 = vunpack.i.l.bf16 %v5510_v6  ;;  %v1576_v53 = vsel %vm1564_vm11, %v1543_v44, %v5502_v41  ;;  %v8870_v52 = vrot.slane %v6927_v51, 1 }
  0xed   : > { %v5517_v31 = vunpack.i.h.bf16 %v5515_v33  ;;  %v5516_v49 = vunpack.i.l.bf16 %v5515_v33  ;;  %5799 = vrot.lane.b32.xlu1 %v6991_v27, %s6120_s13  ;;  %v8874_v44 = vrot.slane %v6230_v4, 1  ;;  %v5462_v4 = vunpack.i.h.bf16 %v6907_v58 }
  0xee   : > { %5804 = vrot.lane.b32.xlu0 %v6932_v43, %s6121_s16  ;;  %v1575_v43 = vsel %vm1564_vm11, %v1542_v5, %v5501_v29  ;;  %v1609_v2 = vsel %vm1597_vm12, %v1576_v53, %v5512_v56  ;;  %v443_v12 = vsel %vm442_vm2, %v8870_v52, %v441_v42  ;;  %v8871_v41 = vmov %v8870_v52  ;;  %v6049_v56 = vld [vmem:[%s6226_s9 + $0xf8] sm:$0xff]  ;;  %s6128_s9 = smov 64  }
  0xef   : > { %v1639_v38 = vsel %vm1630_vm13, %v1606_v24, %v5516_v49  ;;  %v1640_v36 = vsel %vm1630_vm13, %v1607_v28, %v5517_v31  ;;  %v7062_v13 = vpop.permute.xlu1 %5519  ;;  %v1608_v35 = vsel %vm1597_vm12, %v1575_v43, %v5511_v30  ;;  %v8872_v29 = vrot.slane %v6902_v62, 1 }
  0xf0   : > { %v5525_v17 = vpop.permute.xlu0 %5524  ;;  %v1667_v22 = vpack.c.bf16 %v1640_v36, %v1639_v38  ;;  %v506_v49 = vsel %vm408_vm3, %v443_v12, 0.0  ;;  %v507_v24 = vrot.slane %v7052_v34, 7  ;;  %v512_v30 = vrot.slane %v6049_v56, 1 }
  0xf1   : > { %v5527_v25 = vunpack.i.h.bf16 %v5525_v17  ;;  %v5526_v37 = vunpack.i.l.bf16 %v5525_v17  ;;  %5809 = vrot.lane.b32.xlu1 %v6997_v59, %s6121_s16  ;;  %v444_v31 = vsel %vm442_vm2, %v8872_v29, %v8871_v41  ;;  %v8873_v38 = vrot.slane %v6927_v51, 7 }
  0xf2   : > { %5814 = vrot.lane.b32.xlu0 %v6987_v48, %s6122_s17  ;;  %5200 = vmatprep.mubr.msk.bf16.mxu0 %vm1694_vm14, %v1667_v22  ;;  %v7090_v48 = vpack.i.bf16 %v6927_v51, %v6902_v62  ;;  %v7113_v9 = vpack.i.bf16 %v506_v49, %v444_v31  ;;  %v5452_v43 = vunpack.i.h.bf16 %v6884_v8  ;;  %v5521_v8 = vunpack.i.l.bf16 %v7062_v13 }
  0xf3   : > { %v1642_v21 = vsel %vm1630_vm13, %v1609_v2, %v5527_v25  ;;  %v1641_v15 = vsel %vm1630_vm13, %v1608_v35, %v5526_v37  ;;  %v7078_v6 = vpop.permute.xlu1 %5529  ;;  %v509_v36 = vsel %vm298_vm0, %v8873_v38, %v507_v24  ;;  %v513_v37 = vsel %vm442_vm2, %v441_v42, %v512_v30 }
  0xf4   : > { %v7080_v50 = vpop.permute.xlu0 %5534  ;;  %v1668_v20 = vpack.c.bf16 %v1642_v21, %v1641_v15  ;;  %v510_v22 = vsel %vm261_vm1, %v509_v36, 0.0  ;;  %v5522_v35 = vunpack.i.h.bf16 %v7062_v13  ;;  %v7149_v58 = vpack.i.bf16 %v6049_v56, %v7052_v34 }
  0xf5   : > { %5819 = vrot.lane.b32.xlu1 %v7007_v54, %s6122_s17  ;;  %v1413_v42 = vsel %vm1401_vm6, %v6416_v61, %v5452_v43  ;;  %v5531_v7 = vunpack.i.l.bf16 %v7078_v6  ;;  %v5537_v2 = vunpack.i.h.bf16 %v7080_v50  ;;  %v5536_v13 = vunpack.i.l.bf16 %v7080_v50 }
  0xf6   : > { %5824 = vrot.lane.b32.xlu0 %v6991_v27, %s6123_s23  ;;  %5201 = vmatmul.mubr.msk.bf16.gmra.mrb[8].mxu0 %vm1694_vm14, %v1668_v20  ;;  %v5838_v27 = vpack.i.bf16 %v6902_v62, %v6899_v39  ;;  %v514_v39 = vsel %vm442_vm2, %v512_v30, %v8874_v44  ;;  %v5848_v62 = vpack.i.bf16 %v444_v31, %v6971_v11 }
  0xf7   : > { %v7095_v33 = vpop.permute.xlu1 %5539  ;;  %v516_v11 = vsel %vm408_vm3, %v514_v39, 0.0  ;;  %v1445_v15 = vsel %vm1433_vm7, %v1413_v42, %v5462_v4  ;;  %v1415_v61 = vsel %vm1401_vm6, %v6440_v19, %v5522_v35  ;;  %v1414_v31 = vsel %vm1401_vm6, %v6412_v60, %v5521_v8 }
  0xf8   : > { %v5545_v28 = vpop.permute.xlu0 %5544  ;;  %v5541_v20 = vunpack.i.l.bf16 %v7095_v33  ;;  %v1416_v50 = vsel %vm1401_vm6, %v6436_v18, %v5531_v7  ;;  %vm3512_vm3 = vcmask 130048  }
  0xf9   : > { %5829 = vrot.lane.b32.xlu1 %v7090_v48, %s6123_s23  ;;  %v5547_v34 = vunpack.i.h.bf16 %v5545_v28  ;;  %v5546_v12 = vunpack.i.l.bf16 %v5545_v28  ;;  %v1447_v28 = vsel %vm1433_vm7, %v1415_v61, %v5537_v2 }
  0xfa   : > { %5834 = vrot.lane.b32.xlu0 %v6997_v59, %s6124_s25  ;;  %v8875_v59 = vrot.slane %v6245_v14, 7  ;;  %v1448_v19 = vsel %vm1433_vm7, %v1416_v50, %v5541_v20 }
  0xfb   : > { %v5550_v26 = vpop.permute.xlu1 %5549 }
  0xfc   : > { %v5555_v5 = vpop.permute.xlu0 %5554  ;;  %v508_v17 = vsel %vm298_vm0, %v507_v24, %v8875_v59  ;;  %v5552_v41 = vunpack.i.h.bf16 %v5550_v26  ;;  %v5551_v29 = vunpack.i.l.bf16 %v5550_v26 }
  0xfd   : > { %5839 = vrot.lane.b32.xlu1 %v5838_v27, %s6117_s10  ;;  %v7143_v14 = vpack.i.bf16 %v508_v17, %v510_v22  ;;  %v5557_v24 = vunpack.i.h.bf16 %v5555_v5  ;;  %v5556_v27 = vunpack.i.l.bf16 %v5555_v5  ;;  %v1478_v5 = vsel %vm1465_vm8, %v1445_v15, %v5546_v12 }
  0xfe   : > { %5844 = vrot.lane.b32.xlu0 %v7113_v9, %s6124_s25  ;;  %v1481_v18 = vsel %vm1465_vm8, %v1448_v19, %v5552_v41 }
  0xff   : > { %v7134_v53 = vpop.permute.xlu1 %5559  ;;  %v1511_v39 = vsel %vm1498_vm9, %v1478_v5, %v5556_v27 }
 0x100   : > { %v5565_v25 = vpop.permute.xlu0 %5564  ;;  %v5562_v22 = vunpack.i.h.bf16 %v7134_v53  ;;  %v5561_v43 = vunpack.i.l.bf16 %v7134_v53 }
 0x101   : > { %610 = vrot.lane.b32.xlu1 %v6927_v51, %s6117_s10  ;;  %v7157_v51 = vpack.i.bf16 %v516_v11, %v513_v37  ;;  %v5567_v56 = vunpack.i.h.bf16 %v5565_v25  ;;  %v5566_v30 = vunpack.i.l.bf16 %v5565_v25  ;;  %s6129_s10 = smov 32  }
 0x102   : > { %5849 = vrot.lane.b32.xlu0 %v5848_v62, %s6118_s11  ;;  %v1514_v12 = vsel %vm1498_vm9, %v1481_v18, %v5562_v22 }
 0x103   : > { %v7155_v21 = vpop.permute.xlu1 %5569  ;;  %v1544_v4 = vsel %vm1531_vm10, %v1511_v39, %v5566_v30 }
 0x104   : > { %v5575_v52 = vpop.permute.xlu0 %5574  ;;  %v5572_v11 = vunpack.i.h.bf16 %v7155_v21  ;;  %v5571_v35 = vunpack.i.l.bf16 %v7155_v21 }
 0x105   : > { %733 = vrot.lane.b32.xlu1 %v506_v49, %s6118_s11  ;;  %v1446_v49 = vsel %vm1433_vm7, %v1414_v31, %v5536_v13  ;;  %v5577_v38 = vunpack.i.h.bf16 %v5575_v52  ;;  %v5576_v36 = vunpack.i.l.bf16 %v5575_v52 }
 0x106   : > { %5854 = vrot.lane.b32.xlu0 %v7007_v54, %s6119_s12  ;;  %v1479_v44 = vsel %vm1465_vm8, %v1446_v49, %v5547_v34  ;;  %v1480_v54 = vsel %vm1465_vm8, %v1447_v28, %v5551_v29 }
 0x107   : > { %v5580_v26 = vpop.permute.xlu1 %5579  ;;  %v1512_v62 = vsel %vm1498_vm9, %v1479_v44, %v5557_v24  ;;  %v1577_v8 = vsel %vm1564_vm11, %v1544_v4, %v5576_v36  ;;  %v1513_v21 = vsel %vm1498_vm9, %v1480_v54, %v5561_v43  ;;  %v1547_v24 = vsel %vm1531_vm10, %v1514_v12, %v5572_v11 }
 0x108   : > { %v5585_v60 = vpop.permute.xlu0 %5584  ;;  %v1545_v25 = vsel %vm1531_vm10, %v1512_v62, %v5567_v56  ;;  %v5582_v2 = vunpack.i.h.bf16 %v5580_v26  ;;  %v1546_v31 = vsel %vm1531_vm10, %v1513_v21, %v5571_v35  ;;  %v8876_v44 = vmov 0.0  }
 0x109   : > { %5859 = vrot.lane.b32.xlu1 %v7143_v14, %s6119_s12  ;;  %v5587_v59 = vunpack.i.h.bf16 %v5585_v60  ;;  %v5586_v17 = vunpack.i.l.bf16 %v5585_v60  ;;  %v1578_v42 = vsel %vm1564_vm11, %v1545_v25, %v5577_v38  ;;  %v5532_v62 = vunpack.i.h.bf16 %v7078_v6 }
 0x10a   : > { %5864 = vrot.lane.b32.xlu0 %v7090_v48, %s6120_s13  ;;  %v5581_v48 = vunpack.i.l.bf16 %v5580_v26  ;;  %v1580_v56 = vsel %vm1564_vm11, %v1547_v24, %v5582_v2 }
 0x10b   : > { %v5590_v37 = vpop.permute.xlu1 %5589  ;;  %v1610_v53 = vsel %vm1597_vm12, %v1577_v8, %v5586_v17  ;;  %v1611_v20 = vsel %vm1597_vm12, %v1578_v42, %v5587_v59  ;;  %v1417_v4 = vsel %vm1401_vm6, %v6476_v47, %v5532_v62 }
 0x10c   : > { %v5595_v7 = vpop.permute.xlu0 %5594  ;;  %v5592_v52 = vunpack.i.h.bf16 %v5590_v37  ;;  %v5591_v34 = vunpack.i.l.bf16 %v5590_v37  ;;  %v1579_v28 = vsel %vm1564_vm11, %v1546_v31, %v5581_v48 }
 0x10d   : > { %v5597_v15 = vunpack.i.h.bf16 %v5595_v7  ;;  %v5596_v13 = vunpack.i.l.bf16 %v5595_v7  ;;  %5869 = vrot.lane.b32.xlu1 %v7149_v58, %s6120_s13  ;;  %s6130_s13 = smov 112  }
 0x10e   : > { %5874 = vrot.lane.b32.xlu0 %v7113_v9, %s6121_s16  ;;  %v1612_v26 = vsel %vm1597_vm12, %v1579_v28, %v5591_v34  ;;  %v1613_v49 = vsel %vm1597_vm12, %v1580_v56, %v5592_v52 }
 0x10f   : > { %v1643_v41 = vsel %vm1630_vm13, %v1610_v53, %v5596_v13  ;;  %v1644_v29 = vsel %vm1630_vm13, %v1611_v20, %v5597_v15  ;;  %v5600_v61 = vpop.permute.xlu1 %5599 }
 0x110   : > { %v1669_v27 = vpack.c.bf16 %v1644_v29, %v1643_v41  ;;  %v5605_v50 = vpop.permute.xlu0 %5604  ;;  %v5602_v22 = vunpack.i.h.bf16 %v5600_v61  ;;  %v5601_v43 = vunpack.i.l.bf16 %v5600_v61 }
 0x111   : > { %v5607_v9 = vunpack.i.h.bf16 %v5605_v50  ;;  %v5606_v30 = vunpack.i.l.bf16 %v5605_v50  ;;  %5879 = vrot.lane.b32.xlu1 %v7157_v51, %s6121_s16  ;;  %s6133_s16 = smov 48  }
 0x112   : > { %5884 = vrot.lane.b32.xlu0 %v7143_v14, %s6122_s17  ;;  %5204 = vmatprep.mubr.msk.bf16.mxu0 %vm1694_vm14, %v1669_v27  ;;  %v1419_v48 = vsel %vm1401_vm6, %v6507_v0, %v5602_v22  ;;  %v1418_v47 = vsel %vm1401_vm6, %v6472_v46, %v5601_v43 }
 0x113   : > { %v1646_v19 = vsel %vm1630_vm13, %v1613_v49, %v5607_v9  ;;  %v1645_v38 = vsel %vm1630_vm13, %v1612_v26, %v5606_v30  ;;  %v7215_v36 = vpop.permute.xlu1 %5609 }
 0x114   : > { %v1670_v60 = vpack.c.bf16 %v1646_v19, %v1645_v38  ;;  %v5615_v5 = vpop.permute.xlu0 %5614  ;;  %v5611_v25 = vunpack.i.l.bf16 %v7215_v36 }
 0x115   : > { %1180 = vrot.lane.b32.xlu1 %v8876_v44, %s6122_s17  ;;  %v5617_v37 = vunpack.i.h.bf16 %v5615_v5  ;;  %v5616_v35 = vunpack.i.l.bf16 %v5615_v5 }
 0x116   : > { %5889 = vrot.lane.b32.xlu0 %v7149_v58, %s6123_s23  ;;  %5205 = vmatmul.mubr.msk.bf16.gmra.mrb[12].mxu0 %vm1694_vm14, %v1670_v60  ;;  %v5542_v58 = vunpack.i.h.bf16 %v7095_v33  ;;  %v1420_v53 = vsel %vm1401_vm6, %v6503_v63, %v5611_v25 }
 0x117   : > { %v7222_v54 = vpop.permute.xlu1 %5619  ;;  %v1451_v20 = vsel %vm1433_vm7, %v1419_v48, %v5617_v37  ;;  %v1450_v12 = vsel %vm1433_vm7, %v1418_v47, %v5616_v35 }
 0x118   : > { %v5625_v14 = vpop.permute.xlu0 %5624  ;;  %v1449_v11 = vsel %vm1433_vm7, %v1417_v4, %v5542_v58  ;;  %v5621_v8 = vunpack.i.l.bf16 %v7222_v54 }
 0x119   : > { %1275 = vrot.lane.b32.xlu1 %v8876_v44, %s6123_s23  ;;  %v5627_v6 = vunpack.i.h.bf16 %v5625_v14  ;;  %v5626_v7 = vunpack.i.l.bf16 %v5625_v14  ;;  %s5169_s23 = sshll.u32 %s6188_s22, 8 }
 0x11a   : > { %5894 = vrot.lane.b32.xlu0 %v7157_v51, %s6124_s25  ;;  %v1452_v41 = vsel %vm1433_vm7, %v1420_v53, %v5621_v8  ;;  %s8782_s6 = scalar_lea.hbm %s8840_s5, %s5169_s23 }
 0x11b   : > { %v5630_v18 = vpop.permute.xlu1 %5629  ;;  %v1482_v31 = vsel %vm1465_vm8, %v1449_v11, %v5626_v7  ;;  %v1483_v46 = vsel %vm1465_vm8, %v1450_v12, %v5627_v6 }
 0x11c   : > { %v5635_v39 = vpop.permute.xlu0 %5634  ;;  %v5632_v2 = vunpack.i.h.bf16 %v5630_v18  ;;  %v5631_v33 = vunpack.i.l.bf16 %v5630_v18 }
 0x11d   : > { %1368 = vrot.lane.b32.xlu1 %v8876_v44, %s6124_s25  ;;  %v5637_v15 = vunpack.i.h.bf16 %v5635_v39  ;;  %v5636_v13 = vunpack.i.l.bf16 %v5635_v39 }
 0x11e   : > { %v1484_v24 = vsel %vm1465_vm8, %v1451_v20, %v5631_v33  ;;  %v1485_v63 = vsel %vm1465_vm8, %v1452_v41, %v5632_v2 }
 0x11f   : > { %v5640_v59 = vpop.permute.xlu1 %5639  ;;  %v1515_v27 = vsel %vm1498_vm9, %v1482_v31, %v5636_v13  ;;  %v1516_v50 = vsel %vm1498_vm9, %v1483_v46, %v5637_v15  ;;  %v5622_v46 = vunpack.i.h.bf16 %v7222_v54 }
 0x120   : > { %v5645_v17 = vpop.permute.xlu0 %5644  ;;  %v5642_v9 = vunpack.i.h.bf16 %v5640_v59  ;;  %v5641_v30 = vunpack.i.l.bf16 %v5640_v59 }
 0x121   : > { %v5647_v52 = vunpack.i.h.bf16 %v5645_v17  ;;  %v5646_v34 = vunpack.i.l.bf16 %v5645_v17 }
 0x122   : > { %v1517_v25 = vsel %vm1498_vm9, %v1484_v24, %v5641_v30  ;;  %v1518_v37 = vsel %vm1498_vm9, %v1485_v63, %v5642_v9 }
 0x123   : > { %v5650_v51 = vpop.permute.xlu1 %5649  ;;  %v1548_v26 = vsel %vm1531_vm10, %v1515_v27, %v5646_v34  ;;  %v1549_v49 = vsel %vm1531_vm10, %v1516_v50, %v5647_v52 }
 0x124   : > { %v5655_v42 = vpop.permute.xlu0 %5654  ;;  %v5652_v38 = vunpack.i.h.bf16 %v5650_v51  ;;  %v5651_v60 = vunpack.i.l.bf16 %v5650_v51 }
 0x125   : > { %v5657_v29 = vunpack.i.h.bf16 %v5655_v42  ;;  %v5656_v61 = vunpack.i.l.bf16 %v5655_v42 }
 0x126   : > { %v1550_v8 = vsel %vm1531_vm10, %v1517_v25, %v5651_v60  ;;  %v1551_v42 = vsel %vm1531_vm10, %v1518_v37, %v5652_v38 }
 0x127   : > { %v5660_v21 = vpop.permute.xlu1 %5659  ;;  %v1581_v5 = vsel %vm1564_vm11, %v1548_v26, %v5656_v61  ;;  %v1582_v14 = vsel %vm1564_vm11, %v1549_v49, %v5657_v29 }
 0x128   : > { %v5665_v0 = vpop.permute.xlu0 %5664  ;;  %v5662_v39 = vunpack.i.h.bf16 %v5660_v21  ;;  %v5661_v62 = vunpack.i.l.bf16 %v5660_v21 }
 0x129   : > { %v5667_v28 = vunpack.i.h.bf16 %v5665_v0  ;;  %v5666_v56 = vunpack.i.l.bf16 %v5665_v0  ;;  %v5612_v0 = vunpack.i.h.bf16 %v7215_v36 }
 0x12a   : > { %v1583_v2 = vsel %vm1564_vm11, %v1550_v8, %v5661_v62  ;;  %v1584_v33 = vsel %vm1564_vm11, %v1551_v42, %v5662_v39  ;;  %v8878_v62 = vld [vmem:[#allocation6_spill] sm:$0xff] }
 0x12b   : > { %v5670_v19 = vpop.permute.xlu1 %5669  ;;  %v1614_v22 = vsel %vm1597_vm12, %v1581_v5, %v5666_v56  ;;  %v1615_v59 = vsel %vm1597_vm12, %v1582_v14, %v5667_v28  ;;  %v1421_v50 = vsel %vm1401_vm6, %v6585_v57, %v5612_v0  ;;  %v8877_v14 = vld [vmem:[#allocation5_spill] sm:$0xff] }
 0x12c   : > { %v5675_v18 = vpop.permute.xlu0 %5674  ;;  %v5672_v43 = vunpack.i.h.bf16 %v5670_v19  ;;  %v5671_v4 = vunpack.i.l.bf16 %v5670_v19  ;;  %v1453_v30 = vsel %vm1433_vm7, %v1421_v50, %v5622_v46 }
 0x12d   : > { %v5677_v58 = vunpack.i.h.bf16 %v5675_v18  ;;  %v5676_v17 = vunpack.i.l.bf16 %v5675_v18 }
 0x12e   : > { %v1616_v15 = vsel %vm1597_vm12, %v1583_v2, %v5671_v4  ;;  %v1617_v13 = vsel %vm1597_vm12, %v1584_v33, %v5672_v43 }
 0x12f   : > { %v1647_v51 = vsel %vm1630_vm13, %v1614_v22, %v5676_v17  ;;  %v1648_v11 = vsel %vm1630_vm13, %v1615_v59, %v5677_v58  ;;  %v5680_v35 = vpop.permute.xlu1 %5679 }
 0x130   : > { %v1671_v6 = vpack.c.bf16 %v1648_v11, %v1647_v51  ;;  %v5685_v7 = vpop.permute.xlu0 %5684  ;;  %v5682_v63 = vunpack.i.h.bf16 %v5680_v35  ;;  %v5681_v27 = vunpack.i.l.bf16 %v5680_v35 }
 0x131   : > { %v5687_v48 = vunpack.i.h.bf16 %v5685_v7  ;;  %v5686_v47 = vunpack.i.l.bf16 %v5685_v7 }
 0x132   : > { %5208 = vmatprep.mubr.msk.bf16.mxu0 %vm1694_vm14, %v1671_v6  ;;  %v1423_v5 = vsel %vm1401_vm6, %v6603_v16, %v5682_v63  ;;  %v1422_v57 = vsel %vm1401_vm6, %v8877_v14, %v5681_v27 }
 0x133   : > { %v1650_v53 = vsel %vm1630_vm13, %v1617_v13, %v5687_v48  ;;  %v1649_v20 = vsel %vm1630_vm13, %v1616_v15, %v5686_v47  ;;  %v7271_v52 = vpop.permute.xlu1 %5689 }
 0x134   : > { %v1672_v34 = vpack.c.bf16 %v1650_v53, %v1649_v20  ;;  %v5695_v21 = vpop.permute.xlu0 %5694  ;;  %v5691_v28 = vunpack.i.l.bf16 %v7271_v52 }
 0x135   : > { %v5697_v56 = vunpack.i.h.bf16 %v5695_v21  ;;  %v5696_v26 = vunpack.i.l.bf16 %v5695_v21 }
 0x136   : > { %5209 = vmatmul.mubr.msk.bf16.gmra.mrb[16].mxu0 %vm1694_vm14, %v1672_v34  ;;  %v1424_v58 = vsel %vm1401_vm6, %v8878_v62, %v5691_v28 }
 0x137   : > { %v7274_v12 = vpop.permute.xlu1 %5699  ;;  %v1455_v17 = vsel %vm1433_vm7, %v1423_v5, %v5697_v56  ;;  %v1454_v4 = vsel %vm1433_vm7, %v1422_v57, %v5696_v26 }
 0x138   : > { %v5705_v41 = vpop.permute.xlu0 %5704  ;;  %v5701_v49 = vunpack.i.l.bf16 %v7274_v12 }
 0x139   : > { %v5707_v36 = vunpack.i.h.bf16 %v5705_v41  ;;  %v5706_v38 = vunpack.i.l.bf16 %v5705_v41 }
 0x13a   : > { %v1456_v25 = vsel %vm1433_vm7, %v1424_v58, %v5701_v49 }
 0x13b   : > { %v5710_v29 = vpop.permute.xlu1 %5709  ;;  %v1486_v11 = vsel %vm1465_vm8, %v1453_v30, %v5706_v38  ;;  %v1487_v35 = vsel %vm1465_vm8, %v1454_v4, %v5707_v36 }
 0x13c   : > { %v5715_v61 = vpop.permute.xlu0 %5714  ;;  %v5712_v60 = vunpack.i.h.bf16 %v5710_v29  ;;  %v5711_v54 = vunpack.i.l.bf16 %v5710_v29 }
 0x13d   : > { %v5717_v18 = vunpack.i.h.bf16 %v5715_v61  ;;  %v5716_v39 = vunpack.i.l.bf16 %v5715_v61 }
 0x13e   : > { %v1488_v8 = vsel %vm1465_vm8, %v1455_v17, %v5711_v54  ;;  %v1489_v42 = vsel %vm1465_vm8, %v1456_v25, %v5712_v60 }
 0x13f   : > { %v5720_v31 = vpop.permute.xlu1 %5719  ;;  %v1519_v6 = vsel %vm1498_vm9, %v1486_v11, %v5716_v39  ;;  %v1520_v7 = vsel %vm1498_vm9, %v1487_v35, %v5717_v18  ;;  %v5692_v35 = vunpack.i.h.bf16 %v7271_v52 }
 0x140   : > { %v5725_v24 = vpop.permute.xlu0 %5724  ;;  %v5722_v48 = vunpack.i.h.bf16 %v5720_v31  ;;  %v5721_v47 = vunpack.i.l.bf16 %v5720_v31 }
 0x141   : > { %v5727_v22 = vunpack.i.h.bf16 %v5725_v24  ;;  %v5726_v59 = vunpack.i.l.bf16 %v5725_v24 }
 0x142   : > { %v1521_v28 = vsel %vm1498_vm9, %v1488_v8, %v5721_v47  ;;  %v1522_v56 = vsel %vm1498_vm9, %v1489_v42, %v5722_v48  ;;  %v5702_v42 = vunpack.i.h.bf16 %v7274_v12 }
 0x143   : > { %v5730_v9 = vpop.permute.xlu1 %5729  ;;  %v1552_v15 = vsel %vm1531_vm10, %v1519_v6, %v5726_v59  ;;  %v1553_v13 = vsel %vm1531_vm10, %v1520_v7, %v5727_v22 }
 0x144   : > { %v5735_v19 = vpop.permute.xlu0 %5734  ;;  %v5732_v20 = vunpack.i.h.bf16 %v5730_v9  ;;  %v5731_v34 = vunpack.i.l.bf16 %v5730_v9 }
 0x145   : > { %v5737_v37 = vunpack.i.h.bf16 %v5735_v19  ;;  %v5736_v51 = vunpack.i.l.bf16 %v5735_v19 }
 0x146   : > { %v1554_v49 = vsel %vm1531_vm10, %v1521_v28, %v5731_v34  ;;  %v1555_v19 = vsel %vm1531_vm10, %v1522_v56, %v5732_v20 }
 0x147   : > { %v5740_v43 = vpop.permute.xlu1 %5739  ;;  %v1585_v21 = vsel %vm1564_vm11, %v1552_v15, %v5736_v51  ;;  %v1586_v41 = vsel %vm1564_vm11, %v1553_v13, %v5737_v37 }
 0x148   : > { %v5745_v16 = vpop.permute.xlu0 %5744  ;;  %v5742_v61 = vunpack.i.h.bf16 %v5740_v43  ;;  %v5741_v0 = vunpack.i.l.bf16 %v5740_v43 }
 0x149   : > { %v5747_v2 = vunpack.i.h.bf16 %v5745_v16  ;;  %v5746_v33 = vunpack.i.l.bf16 %v5745_v16 }
 0x14a   : > { %v1587_v60 = vsel %vm1564_vm11, %v1554_v49, %v5741_v0  ;;  %v1588_v54 = vsel %vm1564_vm11, %v1555_v19, %v5742_v61 }
 0x14b   : > { %v5750_v53 = vpop.permute.xlu1 %5749  ;;  %v1618_v63 = vsel %vm1597_vm12, %v1585_v21, %v5746_v33  ;;  %v1619_v31 = vsel %vm1597_vm12, %v1586_v41, %v5747_v2  ;;  %v1425_v33 = vsel %vm1401_vm6, %v6770_v55, %v5692_v35 }
 0x14c   : > { %v5755_v29 = vpop.permute.xlu0 %5754  ;;  %v5752_v27 = vunpack.i.h.bf16 %v5750_v53  ;;  %v5751_v50 = vunpack.i.l.bf16 %v5750_v53 }
 0x14d   : > { %v5757_v46 = vunpack.i.h.bf16 %v5755_v29  ;;  %v5756_v24 = vunpack.i.l.bf16 %v5755_v29  ;;  %v8879_v29 = vld [vmem:[#allocation7_spill] sm:$0xff] }
 0x14e   : > { %v1620_v57 = vsel %vm1597_vm12, %v1587_v60, %v5751_v50  ;;  %v1621_v18 = vsel %vm1597_vm12, %v1588_v54, %v5752_v27 }
 0x14f   : > { %v1651_v9 = vsel %vm1630_vm13, %v1618_v63, %v5756_v24  ;;  %v1652_v30 = vsel %vm1630_vm13, %v1619_v31, %v5757_v46  ;;  %v5760_v26 = vpop.permute.xlu1 %5759  ;;  %v8880_v46 = vld [vmem:[#allocation8_spill] sm:$0xff] }
 0x150   : > { %v1673_v36 = vpack.c.bf16 %v1652_v30, %v1651_v9  ;;  %v5765_v38 = vpop.permute.xlu0 %5764  ;;  %v5762_v7 = vunpack.i.h.bf16 %v5760_v26  ;;  %v5761_v2 = vunpack.i.l.bf16 %v5760_v26 }
 0x151   : > { %v5767_v5 = vunpack.i.h.bf16 %v5765_v38  ;;  %v5766_v14 = vunpack.i.l.bf16 %v5765_v38 }
 0x152   : > { %5212 = vmatprep.mubr.msk.bf16.mxu0 %vm1694_vm14, %v1673_v36  ;;  %v1427_v12 = vsel %vm1401_vm6, %v6788_v45, %v5762_v7  ;;  %v1426_v61 = vsel %vm1401_vm6, %v8879_v29, %v5761_v2 }
 0x153   : > { %v1654_v39 = vsel %vm1630_vm13, %v1621_v18, %v5767_v5  ;;  %v1653_v62 = vsel %vm1630_vm13, %v1620_v57, %v5766_v14  ;;  %v5770_v58 = vpop.permute.xlu1 %5769 }
 0x154   : > { %v1674_v17 = vpack.c.bf16 %v1654_v39, %v1653_v62  ;;  %v5775_v22 = vpop.permute.xlu0 %5774  ;;  %v5772_v59 = vunpack.i.h.bf16 %v5770_v58  ;;  %v5771_v48 = vunpack.i.l.bf16 %v5770_v58 }
 0x155   : > { %v5777_v47 = vunpack.i.h.bf16 %v5775_v22  ;;  %v5776_v13 = vunpack.i.l.bf16 %v5775_v22 }
 0x156   : > { %5213 = vmatmul.mubr.msk.bf16.gmra.mrb[20].mxu0 %vm1694_vm14, %v1674_v17  ;;  %v1429_v37 = vsel %vm1401_vm6, %v6964_v40, %v5772_v59  ;;  %v1457_v40 = vsel %vm1433_vm7, %v1425_v33, %v5702_v42  ;;  %v1428_v24 = vsel %vm1401_vm6, %v8880_v46, %v5771_v48 }
 0x157   : > { %v5780_v43 = vpop.permute.xlu1 %5779  ;;  %v1459_v63 = vsel %vm1433_vm7, %v1427_v12, %v5777_v47  ;;  %v1458_v28 = vsel %vm1433_vm7, %v1426_v61, %v5776_v13 }
 0x158   : > { %v5782_v4 = vunpack.i.h.bf16 %v5780_v43  ;;  %v5785_v25 = vpop.permute.xlu0 %5784  ;;  %v5781_v53 = vunpack.i.l.bf16 %v5780_v43 }
 0x159   : > { %v5787_v34 = vunpack.i.h.bf16 %v5785_v25  ;;  %v5786_v21 = vunpack.i.l.bf16 %v5785_v25 }
 0x15a   : > { %v7321_v51 = vsel %vm1433_vm7, %v1429_v37, %v5782_v4  ;;  %v1460_v56 = vsel %vm1433_vm7, %v1428_v24, %v5781_v53  ;;  %v6126_v24 = vmov 1983009808  }
 0x15b   : > { %v5790_v16 = vpop.permute.xlu1 %5789  ;;  %v1490_v26 = vsel %vm1465_vm8, %v1457_v40, %v5786_v21  ;;  %v1491_v49 = vsel %vm1465_vm8, %v1458_v28, %v5787_v34 }
 0x15c   : > { %v5795_v11 = vpop.permute.xlu0 %5794  ;;  %v5792_v52 = vunpack.i.h.bf16 %v5790_v16  ;;  %v5791_v41 = vunpack.i.l.bf16 %v5790_v16 }
 0x15d   : > { %v5797_v0 = vunpack.i.h.bf16 %v5795_v11  ;;  %v5796_v55 = vunpack.i.l.bf16 %v5795_v11 }
 0x15e   : > { %v1492_v19 = vsel %vm1465_vm8, %v1459_v63, %v5791_v41  ;;  %v1493_v36 = vsel %vm1465_vm8, %v1460_v56, %v5792_v52  ;;  %v1945_v63 = vunpack.c.l.s4 %v6126_v24 }
 0x15f   : > { %v5800_v8 = vpop.permute.xlu1 %5799  ;;  %v1523_v38 = vsel %vm1498_vm9, %v1490_v26, %v5796_v55  ;;  %v1524_v60 = vsel %vm1498_vm9, %v1491_v49, %v5797_v0 }
 0x160   : > { %v5805_v6 = vpop.permute.xlu0 %5804  ;;  %v5802_v14 = vunpack.i.h.bf16 %v5800_v8  ;;  %v5801_v57 = vunpack.i.l.bf16 %v5800_v8 }
 0x161   : > { %v5807_v31 = vunpack.i.h.bf16 %v5805_v6  ;;  %v5806_v27 = vunpack.i.l.bf16 %v5805_v6 }
 0x162   : > { %v1525_v6 = vsel %vm1498_vm9, %v1492_v19, %v5801_v57  ;;  %v1526_v7 = vsel %vm1498_vm9, %v1493_v36, %v5802_v14 }
 0x163   : > { %v5810_v15 = vpop.permute.xlu1 %5809  ;;  %v1556_v18 = vsel %vm1531_vm10, %v1523_v38, %v5806_v27  ;;  %v1557_v39 = vsel %vm1531_vm10, %v1524_v60, %v5807_v31 }
 0x164   : > { %v5815_v20 = vpop.permute.xlu0 %5814  ;;  %v5812_v58 = vunpack.i.h.bf16 %v5810_v15  ;;  %v5811_v17 = vunpack.i.l.bf16 %v5810_v15 }
 0x165   : > { %v5817_v9 = vunpack.i.h.bf16 %v5815_v20  ;;  %v5816_v30 = vunpack.i.l.bf16 %v5815_v20 }
 0x166   : > { %v1558_v47 = vsel %vm1531_vm10, %v1525_v6, %v5811_v17  ;;  %v1559_v15 = vsel %vm1531_vm10, %v1526_v7, %v5812_v58 }
 0x167   : > { %v5820_v50 = vpop.permute.xlu1 %5819  ;;  %v1589_v22 = vsel %vm1564_vm11, %v1556_v18, %v5816_v30  ;;  %v1590_v59 = vsel %vm1564_vm11, %v1557_v39, %v5817_v9 }
 0x168   : > { %v5825_v45 = vpop.permute.xlu0 %5824  ;;  %v5822_v4 = vunpack.i.h.bf16 %v5820_v50  ;;  %v5821_v25 = vunpack.i.l.bf16 %v5820_v50  ;;  %v1946_v50 = vunpack.c.0.s8 %v1945_v63 }
 0x169   : > { %v5827_v54 = vunpack.i.h.bf16 %v5825_v45  ;;  %v5826_v5 = vunpack.i.l.bf16 %v5825_v45 }
 0x16a   : > { %v1591_v53 = vsel %vm1564_vm11, %v1558_v47, %v5821_v25  ;;  %v1592_v20 = vsel %vm1564_vm11, %v1559_v15, %v5822_v4  ;;  %v7364_v49 = vsub.s32 %v1946_v50, %v6217_v1 }
 0x16b   : > { %v5830_v62 = vpop.permute.xlu1 %5829  ;;  %v1622_v11 = vsel %vm1597_vm12, %v1589_v22, %v5826_v5  ;;  %v1623_v35 = vsel %vm1597_vm12, %v1590_v59, %v5827_v54 }
 0x16c   : > { %v5835_v43 = vpop.permute.xlu0 %5834  ;;  %v5832_v8 = vunpack.i.h.bf16 %v5830_v62  ;;  %v5831_v42 = vunpack.i.l.bf16 %v5830_v62 }
 0x16d   : > { %v5837_v37 = vunpack.i.h.bf16 %v5835_v43  ;;  %v5836_v16 = vunpack.i.l.bf16 %v5835_v43 }
 0x16e   : > { %v1624_v52 = vsel %vm1597_vm12, %v1591_v53, %v5831_v42  ;;  %v1625_v41 = vsel %vm1597_vm12, %v1592_v20, %v5832_v8 }
 0x16f   : > { %v1655_v2 = vsel %vm1630_vm13, %v1622_v11, %v5836_v16  ;;  %v1656_v33 = vsel %vm1630_vm13, %v1623_v35, %v5837_v37  ;;  %v5840_v48 = vpop.permute.xlu1 %5839 }
 0x170   : > { %v1675_v40 = vpack.c.bf16 %v1656_v33, %v1655_v2  ;;  %v5845_v13 = vpop.permute.xlu0 %5844  ;;  %v5842_v28 = vunpack.i.h.bf16 %v5840_v48  ;;  %v5841_v56 = vunpack.i.l.bf16 %v5840_v48 }
 0x171   : > { %v5847_v34 = vunpack.i.h.bf16 %v5845_v13  ;;  %v5846_v21 = vunpack.i.l.bf16 %v5845_v13 }
 0x172   : > { %5216 = vmatprep.mubr.msk.bf16.mxu0 %vm1694_vm14, %v1675_v40  ;;  %v1431_v19 = vsel %vm1401_vm6, %v6982_v10, %v5842_v28  ;;  %v1430_v36 = vsel %vm1401_vm6, %v6960_v23, %v5841_v56 }
 0x173   : > { %v1658_v12 = vsel %vm1630_vm13, %v1625_v41, %v5847_v34  ;;  %v1657_v29 = vsel %vm1630_vm13, %v1624_v52, %v5846_v21  ;;  %v611_v61 = vpop.permute.xlu1 %610 }
 0x174   : > { %v1676_v0 = vpack.c.bf16 %v1658_v12, %v1657_v29  ;;  %v5850_v55 = vpop.permute.xlu0 %5849  ;;  %v1432_v60 = vsel %vm1401_vm6, %v6978_v32, %v611_v61  ;;  %vm3913_vm6 = vcmask 1043459  }
 0x175   : > { %v5852_v30 = vunpack.i.h.bf16 %v5850_v55  ;;  %v5851_v45 = vunpack.i.l.bf16 %v5850_v55 }
 0x176   : > { %5217 = vmatmul.mubr.msk.bf16.gmra.mrb[24].mxu0 %vm1694_vm14, %v1676_v0 }
 0x177   : > { %v734_v46 = vpop.permute.xlu1 %733  ;;  %v1463_v54 = vsel %vm1433_vm7, %v1431_v19, %v5852_v30  ;;  %v1462_v58 = vsel %vm1433_vm7, %v1430_v36, %v5851_v45 }
 0x178   : > { %v5855_v31 = vpop.permute.xlu0 %5854  ;;  %v1464_v17 = vsel %vm1433_vm7, %v1432_v60, %v734_v46  ;;  %vm3916_vm7 = vcmask 1044484  }
 0x179   : > { %v5857_v57 = vunpack.i.h.bf16 %v5855_v31  ;;  %v5856_v18 = vunpack.i.l.bf16 %v5855_v31 }
 0x17b   : > { %v5860_v27 = vpop.permute.xlu1 %5859  ;;  %v1494_v8 = vsel %vm1465_vm8, %v7321_v51, %v5856_v18  ;;  %v1495_v42 = vsel %vm1465_vm8, %v1462_v58, %v5857_v57 }
 0x17c   : > { %v5865_v9 = vpop.permute.xlu0 %5864  ;;  %v5862_v5 = vunpack.i.h.bf16 %v5860_v27  ;;  %v5861_v14 = vunpack.i.l.bf16 %v5860_v27 }
 0x17d   : > { %v5867_v10 = vunpack.i.h.bf16 %v5865_v9  ;;  %v5866_v22 = vunpack.i.l.bf16 %v5865_v9 }
 0x17e   : > { %v1497_v37 = vsel %vm1465_vm8, %v1464_v17, %v5862_v5  ;;  %v1496_v16 = vsel %vm1465_vm8, %v1463_v54, %v5861_v14  ;;  %vm3919_vm8 = vcmask 1045509  }
 0x17f   : > { %v5870_v26 = vpop.permute.xlu1 %5869  ;;  %v1527_v2 = vsel %vm1498_vm9, %v1494_v8, %v5866_v22  ;;  %v1528_v33 = vsel %vm1498_vm9, %v1495_v42, %v5867_v10 }
 0x180   : > { %v5875_v38 = vpop.permute.xlu0 %5874  ;;  %v5872_v39 = vunpack.i.h.bf16 %v5870_v26  ;;  %v5871_v62 = vunpack.i.l.bf16 %v5870_v26 }
 0x181   : > { %v5877_v23 = vunpack.i.h.bf16 %v5875_v38  ;;  %v5876_v43 = vunpack.i.l.bf16 %v5875_v38 }
 0x182   : > { %v1529_v6 = vsel %vm1498_vm9, %v1496_v16, %v5871_v62  ;;  %v1530_v7 = vsel %vm1498_vm9, %v1497_v37, %v5872_v39  ;;  %vm3922_vm9 = vcmask 1046534  }
 0x183   : > { %v5880_v59 = vpop.permute.xlu1 %5879  ;;  %v1560_v40 = vsel %vm1531_vm10, %v1527_v2, %v5876_v43  ;;  %v1561_v13 = vsel %vm1531_vm10, %v1528_v33, %v5877_v23 }
 0x184   : > { %v5882_v4 = vunpack.i.h.bf16 %v5880_v59  ;;  %v5881_v25 = vunpack.i.l.bf16 %v5880_v59  ;;  %v5885_v32 = vpop.permute.xlu0 %5884 }
 0x185   : > { %v5887_v11 = vunpack.i.h.bf16 %v5885_v32  ;;  %v5886_v35 = vunpack.i.l.bf16 %v5885_v32 }
 0x186   : > { %v1562_v47 = vsel %vm1531_vm10, %v1529_v6, %v5881_v25  ;;  %v1563_v15 = vsel %vm1531_vm10, %v1530_v7, %v5882_v4  ;;  %vm3925_vm10 = vcmask 1047559  }
 0x187   : > { %v1181_v48 = vpop.permute.xlu1 %1180  ;;  %v1593_v53 = vsel %vm1564_vm11, %v1560_v40, %v5886_v35  ;;  %v1594_v20 = vsel %vm1564_vm11, %v1561_v13, %v5887_v11 }
 0x188   : > { %v5890_v51 = vpop.permute.xlu0 %5889  ;;  %v1595_v41 = vsel %vm1564_vm11, %v1562_v47, %v1181_v48  ;;  %v7392_v12 = vsel %vm1564_vm11, %v1563_v15, %v1181_v48 }
 0x189   : > { %v5892_v34 = vunpack.i.h.bf16 %v5890_v51  ;;  %v5891_v21 = vunpack.i.l.bf16 %v5890_v51  ;;  %v5194_v52 = vpop.f32.mrb[0].mxu0 }
 0x18a   : > { %v1977_v29 = vcombine.high %v5194_v52, %v5194_v52  ;;  %v1984_v61 = vrot.slane %v5194_v52, %v7364_v49  ;;  %v1784_v0 = vpop.f32.mrb[1].mxu0 }
 0x18b   : > { %v7396_v55 = vsel %vm1597_vm12, %v1593_v53, %v5891_v21  ;;  %v7399_v46 = vsel %vm1597_vm12, %v1594_v20, %v5892_v34  ;;  %v1943_v24 = vcombine.high %v1784_v0, %v1784_v0  ;;  %v1950_v63 = vrot.slane %v1784_v0, %v7364_v49  ;;  %v7402_v31 = vpop.permute.xlu1 %1275  ;;  %v7404_v27 = vpop.f32.mrb[2].mxu0 }
 0x18c   : > { %v1991_v50 = vrot.slane %v1977_v29, %v7364_v49  ;;  %v1992_v28 = vcombine.high %v1984_v61, %v1984_v61  ;;  %v2672_v56 = vsel %vm2615_vm15, %v1984_v61, -inf  ;;  %v7410_v9 = vsel %vm1597_vm12, %v1595_v41, %v7402_v31  ;;  %v7412_v30 = vpop.f32.mrb[3].mxu0 }
 0x18d   : > { %v2673_v45 = vrot.slane %v2672_v56, 4  ;;  %v1957_v26 = vrot.slane %v1943_v24, %v7364_v49  ;;  %v1958_v19 = vcombine.high %v1950_v63, %v1950_v63  ;;  %v2616_v36 = vsel %vm2615_vm15, %v1950_v63, -inf }
 0x18e   : > { %v1993_v38 = vcombine.high %v1991_v50, %v1991_v50  ;;  %v2679_v60 = vsel %vm2615_vm15, %v1992_v28, -inf  ;;  %v2686_v54 = vsel %vm2615_vm15, %v1991_v50, -inf  ;;  %v2617_v5 = vrot.slane %v2616_v36, 4 }
 0x18f   : > { %v2674_v14 = vmax.f32 %v2672_v56, %v2673_v45  ;;  %v2680_v57 = vrot.slane %v2679_v60, 4  ;;  %v2687_v18 = vrot.slane %v2686_v54, 4  ;;  %v1959_v39 = vcombine.high %v1957_v26, %v1957_v26 }
 0x190   : > { %v2693_v62 = vsel %vm2615_vm15, %v1993_v38, -inf  ;;  %v2618_v58 = vmax.f32 %v2616_v36, %v2617_v5  ;;  %v2623_v17 = vsel %vm2615_vm15, %v1958_v19, -inf  ;;  %v2630_v10 = vsel %vm2615_vm15, %v1957_v26, -inf  ;;  %v7427_v36 = vld [vmem:[%s8837_s2] ss:$0 sm:$0xff] }
 0x191   : > { %v2675_v22 = vrot.slane %v2674_v14, 2  ;;  %v2681_v59 = vmax.f32 %v2679_v60, %v2680_v57  ;;  %v2688_v23 = vmax.f32 %v2686_v54, %v2687_v18  ;;  %v2694_v43 = vrot.slane %v2693_v62, 4 }
 0x192   : > { %v2619_v4 = vrot.slane %v2618_v58, 2  ;;  %v2624_v25 = vrot.slane %v2623_v17, 4  ;;  %v2631_v32 = vrot.slane %v2630_v10, 4  ;;  %v2637_v37 = vsel %vm2615_vm15, %v1959_v39, -inf }
 0x193   : > { %v2676_v16 = vmax.f32 %v2674_v14, %v2675_v22  ;;  %v2682_v11 = vrot.slane %v2681_v59, 2  ;;  %v2689_v35 = vrot.slane %v2688_v23, 2  ;;  %v2695_v8 = vmax.f32 %v2693_v62, %v2694_v43  ;;  %v5895_v14 = vpop.permute.xlu0 %5894 }
 0x194   : > { %v2620_v42 = vmax.f32 %v2618_v58, %v2619_v4  ;;  %v2625_v6 = vmax.f32 %v2623_v17, %v2624_v25  ;;  %v2632_v7 = vmax.f32 %v2630_v10, %v2631_v32  ;;  %v2638_v2 = vrot.slane %v2637_v37, 4 }
 0x195   : > { %v2677_v33 = vrot.slane %v2676_v16, 1  ;;  %v2683_v48 = vmax.f32 %v2681_v59, %v2682_v11  ;;  %v2690_v47 = vmax.f32 %v2688_v23, %v2689_v35  ;;  %v2696_v15 = vrot.slane %v2695_v8, 2 }
 0x196   : > { %v2621_v40 = vrot.slane %v2620_v42, 1  ;;  %v2626_v13 = vrot.slane %v2625_v6, 2  ;;  %v2633_v51 = vrot.slane %v2632_v7, 2  ;;  %v2639_v53 = vmax.f32 %v2637_v37, %v2638_v2 }
 0x197   : > { %v2678_v20 = vmax.f32 %v2676_v16, %v2677_v33  ;;  %v2684_v34 = vrot.slane %v2683_v48, 1  ;;  %v2691_v21 = vrot.slane %v2690_v47, 1  ;;  %v2697_v52 = vmax.f32 %v2695_v8, %v2696_v15 }
 0x198   : > { %v2622_v41 = vmax.f32 %v2620_v42, %v2621_v40  ;;  %v2627_v29 = vmax.f32 %v2625_v6, %v2626_v13  ;;  %v2634_v61 = vmax.f32 %v2632_v7, %v2633_v51  ;;  %v2640_v0 = vrot.slane %v2639_v53, 2 }
 0x199   : > { %v2685_v24 = vmax.f32 %v2683_v48, %v2684_v34  ;;  %v2692_v63 = vmax.f32 %v2690_v47, %v2691_v21  ;;  %v2698_v50 = vrot.slane %v2697_v52, 1  ;;  %v3514_v28 = vsel %vm3512_vm3, %v2678_v20, -inf }
 0x19a   : > { %v2628_v56 = vrot.slane %v2627_v29, 1  ;;  %v2635_v45 = vrot.slane %v2634_v61, 1  ;;  %v2641_v26 = vmax.f32 %v2639_v53, %v2640_v0  ;;  %v3513_v19 = vsel %vm3512_vm3, %v2622_v41, -inf }
 0x19b   : > { %v2699_v38 = vmax.f32 %v2697_v52, %v2698_v50  ;;  %v3517_v60 = vsel %vm3512_vm3, %v2685_v24, -inf  ;;  %v3520_v54 = vsel %vm3512_vm3, %v2692_v63, -inf  ;;  %v3515_v5 = vmax.f32 %v3513_v19, %v3514_v28  ;;  %v1369_v63 = vpop.permute.xlu1 %1368 }
 0x19c   : > { %v2629_v57 = vmax.f32 %v2627_v29, %v2628_v56  ;;  %v2636_v18 = vmax.f32 %v2634_v61, %v2635_v45  ;;  %v2642_v39 = vrot.slane %v2641_v26, 1  ;;  %v1629_v62 = vsel %vm1597_vm12, %v7392_v12, %v7402_v31 }
 0x19d   : > { %v3523_v58 = vsel %vm3512_vm3, %v2699_v38, -inf  ;;  %v3712_v17 = vadd.f32 %v7427_v36, %v3515_v5  ;;  %v1994_v10 = vcombine.high %v7404_v27, %v7404_v27  ;;  %v2001_v22 = vrot.slane %v7404_v27, %v7364_v49 }
 0x19e   : > { %v2643_v59 = vmax.f32 %v2641_v26, %v2642_v39  ;;  %v3516_v23 = vsel %vm3512_vm3, %v2629_v57, -inf  ;;  %v3519_v43 = vsel %vm3512_vm3, %v2636_v18, -inf  ;;  %v5897_v4 = vunpack.i.h.bf16 %v5895_v14 }
 0x19f   : > { %v3518_v25 = vmax.f32 %v3516_v23, %v3517_v60  ;;  %v3521_v32 = vmax.f32 %v3519_v43, %v3520_v54  ;;  %v3776_v12 = vmax.f32 %v3712_v17, 0.0  ;;  %v2008_v31 = vrot.slane %v1994_v10, %v7364_v49 }
 0x1a0   : > { %v3522_v37 = vsel %vm3512_vm3, %v2643_v59, -inf  ;;  %v2009_v16 = vcombine.high %v2001_v22, %v2001_v22  ;;  %v2700_v11 = vsel %vm2615_vm15, %v2001_v22, -inf  ;;  %v5896_v35 = vunpack.i.l.bf16 %v5895_v14 }
 0x1a1   : > { %v3524_v8 = vmax.f32 %v3522_v37, %v3523_v58  ;;  %v3713_v27 = vadd.f32 %v7427_v36, %v3518_v25  ;;  %v3714_v42 = vadd.f32 %v7427_v36, %v3521_v32  ;;  %v2010_v6 = vcombine.high %v2008_v31, %v2008_v31 }
 0x1a2   : > { %v2701_v7 = vrot.slane %v2700_v11, 4  ;;  %v2707_v2 = vsel %vm2615_vm15, %v2009_v16, -inf  ;;  %v2714_v33 = vsel %vm2615_vm15, %v2008_v31, -inf  ;;  %v1659_v48 = vsel %vm1630_vm13, %v7396_v55, %v5896_v35 }
 0x1a3   : > { %v3715_v47 = vadd.f32 %v7427_v36, %v3524_v8  ;;  %v3777_v15 = vmax.f32 %v3713_v27, 0.0  ;;  %v3778_v40 = vmax.f32 %v3714_v42, 0.0  ;;  %v2708_v13 = vrot.slane %v2707_v2, 4 }
 0x1a4   : > { %v2702_v51 = vmax.f32 %v2700_v11, %v2701_v7  ;;  %v2715_v53 = vrot.slane %v2714_v33, 4  ;;  %v2721_v20 = vsel %vm2615_vm15, %v2010_v6, -inf  ;;  %v1660_v34 = vsel %vm1630_vm13, %v7399_v46, %v5897_v4 }
 0x1a5   : > { %v3779_v21 = vmax.f32 %v3715_v47, 0.0  ;;  %v3906_v52 = vrot.slane %v3777_v15, 7  ;;  %v3909_v41 = vrot.slane %v3778_v40, 6  ;;  %v2709_v29 = vmax.f32 %v2707_v2, %v2708_v13 }
 0x1a6   : > { %v2703_v61 = vrot.slane %v2702_v51, 2  ;;  %v2716_v0 = vmax.f32 %v2714_v33, %v2715_v53  ;;  %v2722_v24 = vrot.slane %v2721_v20, 4  ;;  %v1677_v55 = vpack.c.bf16 %v1660_v34, %v1659_v48 }
 0x1a7   : > { %v3908_v50 = vsel %vm3907_vm4, %v3906_v52, %v3776_v12  ;;  %v7456_v28 = vrot.slane %v3779_v21, 5  ;;  %v2710_v56 = vrot.slane %v2709_v29, 2  ;;  %v1960_v45 = vcombine.high %v7412_v30, %v7412_v30 }
 0x1a8   : > { %v7461_v26 = vsel %vm3910_vm5, %v3909_v41, %v3908_v50  ;;  %v2704_v46 = vmax.f32 %v2702_v51, %v2703_v61  ;;  %v2717_v19 = vrot.slane %v2716_v0, 2  ;;  %v2723_v38 = vmax.f32 %v2721_v20, %v2722_v24  ;;  %5220 = vmatprep.mubr.msk.bf16.mxu0 %vm1694_vm14, %v1677_v55 }
 0x1a9   : > { %v2711_v60 = vmax.f32 %v2709_v29, %v2710_v56  ;;  %v1967_v54 = vrot.slane %v7412_v30, %v7364_v49  ;;  %v1974_v5 = vrot.slane %v1960_v45, %v7364_v49  ;;  %v1661_v14 = vsel %vm1630_vm13, %v7410_v9, %v1369_v63  ;;  %v5198_v57 = vpop.f32.mrb[4].mxu0 }
 0x1aa   : > { %v2705_v18 = vrot.slane %v2704_v46, 1  ;;  %v2718_v39 = vmax.f32 %v2716_v0, %v2717_v19  ;;  %v2724_v58 = vrot.slane %v2723_v38, 2  ;;  %v1662_v17 = vsel %vm1630_vm13, %v1629_v62, %v1369_v63  ;;  %v7470_v10 = vpop.f32.mrb[5].mxu0 }
 0x1ab   : > { %v2712_v22 = vrot.slane %v2711_v60, 1  ;;  %v1975_v59 = vcombine.high %v1967_v54, %v1967_v54  ;;  %v1976_v23 = vcombine.high %v1974_v5, %v1974_v5  ;;  %v2644_v43 = vsel %vm2615_vm15, %v1967_v54, -inf  ;;  %v7473_v4 = vpop.f32.mrb[6].mxu0 }
 0x1ac   : > { %v2706_v30 = vmax.f32 %v2704_v46, %v2705_v18  ;;  %v2719_v25 = vrot.slane %v2718_v39, 1  ;;  %v2725_v32 = vmax.f32 %v2723_v38, %v2724_v58  ;;  %v2645_v12 = vrot.slane %v2644_v43, 4  ;;  %v7475_v9 = vpop.f32.mrb[7].mxu0 }
 0x1ad   : > { %v2713_v31 = vmax.f32 %v2711_v60, %v2712_v22  ;;  %v2651_v37 = vsel %vm2615_vm15, %v1975_v59, -inf  ;;  %v2658_v62 = vsel %vm2615_vm15, %v1974_v5, -inf  ;;  %v2665_v16 = vsel %vm2615_vm15, %v1976_v23, -inf }
 0x1ae   : > { %v2720_v11 = vmax.f32 %v2718_v39, %v2719_v25  ;;  %v2726_v35 = vrot.slane %v2725_v32, 1  ;;  %v3526_v8 = vsel %vm3512_vm3, %v2706_v30, -inf  ;;  %v2646_v27 = vmax.f32 %v2644_v43, %v2645_v12 }
 0x1af   : > { %v3529_v42 = vsel %vm3512_vm3, %v2713_v31, -inf  ;;  %v2652_v6 = vrot.slane %v2651_v37, 4  ;;  %v2659_v7 = vrot.slane %v2658_v62, 4  ;;  %v2666_v2 = vrot.slane %v2665_v16, 4 }
 0x1b0   : > { %v2727_v33 = vmax.f32 %v2725_v32, %v2726_v35  ;;  %v3532_v48 = vsel %vm3512_vm3, %v2720_v11, -inf  ;;  %v2647_v47 = vrot.slane %v2646_v27, 2  ;;  %v1678_v15 = vpack.c.bf16 %v1662_v17, %v1661_v14 }
 0x1b1   : > { %v2653_v40 = vmax.f32 %v2651_v37, %v2652_v6  ;;  %v2660_v13 = vmax.f32 %v2658_v62, %v2659_v7  ;;  %v2667_v51 = vmax.f32 %v2665_v16, %v2666_v2  ;;  %v2045_v53 = vcombine.high %v5198_v57, %v5198_v57 }
 0x1b2   : > { %v7484_v20 = vsel %vm3512_vm3, %v2727_v33, -inf  ;;  %v2648_v34 = vmax.f32 %v2646_v27, %v2647_v47  ;;  %5221 = vmatmul.mubr.msk.bf16.gmra.mrb[28].mxu0 %vm1694_vm14, %v1678_v15  ;;  %v2052_v21 = vrot.slane %v5198_v57, %v7364_v49  ;;  %v2011_v52 = vcombine.high %v7470_v10, %v7470_v10 }
 0x1b3   : > { %v2654_v41 = vrot.slane %v2653_v40, 2  ;;  %v2661_v29 = vrot.slane %v2660_v13, 2  ;;  %v2668_v61 = vrot.slane %v2667_v51, 2  ;;  %v2059_v0 = vrot.slane %v2045_v53, %v7364_v49 }
 0x1b4   : > { %v2649_v24 = vrot.slane %v2648_v34, 1  ;;  %v2060_v55 = vcombine.high %v2052_v21, %v2052_v21  ;;  %v2784_v63 = vsel %vm2615_vm15, %v2052_v21, -inf  ;;  %v2018_v50 = vrot.slane %v7470_v10, %v7364_v49 }
 0x1b5   : > { %v2655_v56 = vmax.f32 %v2653_v40, %v2654_v41  ;;  %v2662_v45 = vmax.f32 %v2660_v13, %v2661_v29  ;;  %v2669_v46 = vmax.f32 %v2667_v51, %v2668_v61  ;;  %v2061_v19 = vcombine.high %v2059_v0, %v2059_v0 }
 0x1b6   : > { %v2650_v38 = vmax.f32 %v2648_v34, %v2649_v24  ;;  %v2785_v60 = vrot.slane %v2784_v63, 4  ;;  %v2791_v54 = vsel %vm2615_vm15, %v2060_v55, -inf  ;;  %v2798_v5 = vsel %vm2615_vm15, %v2059_v0, -inf }
 0x1b7   : > { %v2656_v14 = vrot.slane %v2655_v56, 1  ;;  %v2663_v57 = vrot.slane %v2662_v45, 1  ;;  %v2670_v18 = vrot.slane %v2669_v46, 1  ;;  %v2792_v39 = vrot.slane %v2791_v54, 4 }
 0x1b8   : > { %v3525_v58 = vsel %vm3512_vm3, %v2650_v38, -inf  ;;  %v2786_v17 = vmax.f32 %v2784_v63, %v2785_v60  ;;  %v2799_v22 = vrot.slane %v2798_v5, 4  ;;  %v2805_v10 = vsel %vm2615_vm15, %v2061_v19, -inf }
 0x1b9   : > { %v2657_v59 = vmax.f32 %v2655_v56, %v2656_v14  ;;  %v2664_v23 = vmax.f32 %v2662_v45, %v2663_v57  ;;  %v2671_v43 = vmax.f32 %v2669_v46, %v2670_v18  ;;  %v3527_v30 = vmax.f32 %v3525_v58, %v3526_v8 }
 0x1ba   : > { %v2787_v25 = vrot.slane %v2786_v17, 2  ;;  %v2793_v32 = vmax.f32 %v2791_v54, %v2792_v39  ;;  %v2800_v12 = vmax.f32 %v2798_v5, %v2799_v22  ;;  %v2806_v31 = vrot.slane %v2805_v10, 4 }
 0x1bb   : > { %v3528_v37 = vsel %vm3512_vm3, %v2657_v59, -inf  ;;  %v3531_v62 = vsel %vm3512_vm3, %v2664_v23, -inf  ;;  %v7501_v16 = vsel %vm3512_vm3, %v2671_v43, -inf  ;;  %v3716_v11 = vadd.f32 %v7427_v36, %v3527_v30 }
 0x1bc   : > { %v3530_v35 = vmax.f32 %v3528_v37, %v3529_v42  ;;  %v3533_v27 = vmax.f32 %v3531_v62, %v3532_v48  ;;  %v3536_v6 = vmax.f32 %v7501_v16, %v7484_v20  ;;  %v2788_v7 = vmax.f32 %v2786_v17, %v2787_v25 }
 0x1bd   : > { %v3780_v8 = vmax.f32 %v3716_v11, 0.0  ;;  %v2794_v2 = vrot.slane %v2793_v32, 2  ;;  %v2801_v33 = vrot.slane %v2800_v12, 2  ;;  %v2807_v47 = vmax.f32 %v2805_v10, %v2806_v31 }
 0x1be   : > { %v3717_v15 = vadd.f32 %v7427_v36, %v3530_v35  ;;  %v3718_v40 = vadd.f32 %v7427_v36, %v3533_v27  ;;  %v2789_v13 = vrot.slane %v2788_v7, 1  ;;  %v2025_v51 = vrot.slane %v2011_v52, %v7364_v49 }
 0x1bf   : > { %v7509_v53 = vrot.slane %v3780_v8, 4  ;;  %v2795_v34 = vmax.f32 %v2793_v32, %v2794_v2  ;;  %v2802_v42 = vmax.f32 %v2800_v12, %v2801_v33  ;;  %v2808_v48 = vrot.slane %v2807_v47, 2 }
 0x1c0   : > { %v3781_v21 = vmax.f32 %v3717_v15, 0.0  ;;  %v3782_v41 = vmax.f32 %v3718_v40, 0.0  ;;  %v2790_v29 = vmax.f32 %v2788_v7, %v2789_v13  ;;  %v2026_v61 = vcombine.high %v2018_v50, %v2018_v50 }
 0x1c1   : > { %v2796_v0 = vrot.slane %v2795_v34, 1  ;;  %v2803_v24 = vrot.slane %v2802_v42, 1  ;;  %v2809_v55 = vmax.f32 %v2807_v47, %v2808_v48  ;;  %v2027_v63 = vcombine.high %v2025_v51, %v2025_v51 }
 0x1c2   : > { %v7511_v56 = vrot.slane %v3781_v21, 3  ;;  %v7513_v45 = vrot.slane %v3782_v41, 2  ;;  %v7516_v46 = vsel %vm3512_vm3, %v2790_v29, -inf  ;;  %v2728_v52 = vsel %vm2615_vm15, %v2018_v50, -inf }
 0x1c3   : > { %v2797_v19 = vmax.f32 %v2795_v34, %v2796_v0  ;;  %v2804_v38 = vmax.f32 %v2802_v42, %v2803_v24  ;;  %v2810_v60 = vrot.slane %v2809_v55, 1  ;;  %v2729_v54 = vrot.slane %v2728_v52, 4 }
 0x1c4   : > { %v2735_v5 = vsel %vm2615_vm15, %v2026_v61, -inf  ;;  %v2742_v14 = vsel %vm2615_vm15, %v2025_v51, -inf  ;;  %v2749_v57 = vsel %vm2615_vm15, %v2027_v63, -inf  ;;  %v2062_v18 = vcombine.high %v7473_v4, %v7473_v4 }
 0x1c5   : > { %v2811_v39 = vmax.f32 %v2809_v55, %v2810_v60  ;;  %v7525_v58 = vsel %vm3512_vm3, %v2797_v19, -inf  ;;  %v7528_v17 = vsel %vm3512_vm3, %v2804_v38, -inf  ;;  %v2730_v50 = vmax.f32 %v2728_v52, %v2729_v54 }
 0x1c6   : > { %v2736_v22 = vrot.slane %v2735_v5, 4  ;;  %v2743_v10 = vrot.slane %v2742_v14, 4  ;;  %v2750_v59 = vrot.slane %v2749_v57, 4  ;;  %v2069_v23 = vrot.slane %v7473_v4, %v7364_v49 }
 0x1c7   : > { %v7533_v43 = vsel %vm3512_vm3, %v2811_v39, -inf  ;;  %v2731_v30 = vrot.slane %v2730_v50, 2  ;;  %v2076_v25 = vrot.slane %v2062_v18, %v7364_v49  ;;  %v2028_v32 = vcombine.high %v7475_v9, %v7475_v9 }
 0x1c8   : > { %v2737_v12 = vmax.f32 %v2735_v5, %v2736_v22  ;;  %v2744_v31 = vmax.f32 %v2742_v14, %v2743_v10  ;;  %v2751_v37 = vmax.f32 %v2749_v57, %v2750_v59  ;;  %v2077_v62 = vcombine.high %v2069_v23, %v2069_v23 }
 0x1c9   : > { %v2732_v11 = vmax.f32 %v2730_v50, %v2731_v30  ;;  %v2078_v35 = vcombine.high %v2076_v25, %v2076_v25  ;;  %v2812_v27 = vsel %vm2615_vm15, %v2069_v23, -inf  ;;  %v2826_v7 = vsel %vm2615_vm15, %v2076_v25, -inf  ;;  %v7540_v4 = vpop.f32.mrb[8].mxu0 }
 0x1ca   : > { %v2738_v8 = vrot.slane %v2737_v12, 2  ;;  %v2745_v2 = vrot.slane %v2744_v31, 2  ;;  %v2752_v33 = vrot.slane %v2751_v37, 2  ;;  %v2813_v47 = vrot.slane %v2812_v27, 4  ;;  %v7542_v15 = vpop.f32.mrb[9].mxu0 }
 0x1cb   : > { %v2733_v40 = vrot.slane %v2732_v11, 1  ;;  %v2819_v13 = vsel %vm2615_vm15, %v2077_v62, -inf  ;;  %v2827_v51 = vrot.slane %v2826_v7, 4  ;;  %v2833_v34 = vsel %vm2615_vm15, %v2078_v35, -inf  ;;  %v7546_v42 = vpop.f32.mrb[10].mxu0 }
 0x1cc   : > { %v2739_v48 = vmax.f32 %v2737_v12, %v2738_v8  ;;  %v2746_v21 = vmax.f32 %v2744_v31, %v2745_v2  ;;  %v2753_v41 = vmax.f32 %v2751_v37, %v2752_v33  ;;  %v2814_v29 = vmax.f32 %v2812_v27, %v2813_v47  ;;  %v7548_v61 = vpop.f32.mrb[11].mxu0 }
 0x1cd   : > { %v2734_v0 = vmax.f32 %v2732_v11, %v2733_v40  ;;  %v2820_v24 = vrot.slane %v2819_v13, 4  ;;  %v2828_v55 = vmax.f32 %v2826_v7, %v2827_v51  ;;  %v2834_v63 = vrot.slane %v2833_v34, 4 }
 0x1ce   : > { %v2740_v52 = vrot.slane %v2739_v48, 1  ;;  %v2747_v19 = vrot.slane %v2746_v21, 1  ;;  %v2754_v38 = vrot.slane %v2753_v41, 1  ;;  %v2815_v60 = vrot.slane %v2814_v29, 2 }
 0x1cf   : > { %v3537_v54 = vsel %vm3512_vm3, %v2734_v0, -inf  ;;  %v2821_v5 = vmax.f32 %v2819_v13, %v2820_v24  ;;  %v2829_v14 = vrot.slane %v2828_v55, 2  ;;  %v2835_v57 = vmax.f32 %v2833_v34, %v2834_v63 }
 0x1d0   : > { %v2741_v18 = vmax.f32 %v2739_v48, %v2740_v52  ;;  %v2748_v39 = vmax.f32 %v2746_v21, %v2747_v19  ;;  %v2755_v50 = vmax.f32 %v2753_v41, %v2754_v38  ;;  %v3539_v22 = vmax.f32 %v3537_v54, %v7516_v46 }
 0x1d1   : > { %v2816_v10 = vmax.f32 %v2814_v29, %v2815_v60  ;;  %v2822_v59 = vrot.slane %v2821_v5, 2  ;;  %v2830_v23 = vmax.f32 %v2828_v55, %v2829_v14  ;;  %v2836_v30 = vrot.slane %v2835_v57, 2 }
 0x1d2   : > { %v3540_v25 = vsel %vm3512_vm3, %v2741_v18, -inf  ;;  %v3543_v12 = vsel %vm3512_vm3, %v2748_v39, -inf  ;;  %v3546_v31 = vsel %vm3512_vm3, %v2755_v50, -inf  ;;  %v3720_v37 = vadd.f32 %v7427_v36, %v3539_v22 }
 0x1d3   : > { %v3542_v62 = vmax.f32 %v3540_v25, %v7525_v58  ;;  %v3545_v11 = vmax.f32 %v3543_v12, %v7528_v17  ;;  %v3548_v35 = vmax.f32 %v3546_v31, %v7533_v43  ;;  %v2817_v27 = vrot.slane %v2816_v10, 1 }
 0x1d4   : > { %v3784_v46 = vmax.f32 %v3720_v37, 0.0  ;;  %v2823_v7 = vmax.f32 %v2821_v5, %v2822_v59  ;;  %v2831_v8 = vrot.slane %v2830_v23, 1  ;;  %v2837_v2 = vmax.f32 %v2835_v57, %v2836_v30 }
 0x1d5   : > { %v3721_v33 = vadd.f32 %v7427_v36, %v3542_v62  ;;  %v3722_v47 = vadd.f32 %v7427_v36, %v3545_v11  ;;  %v3723_v40 = vadd.f32 %v7427_v36, %v3548_v35  ;;  %v2818_v13 = vmax.f32 %v2816_v10, %v2817_v27 }
 0x1d6   : > { %v2824_v58 = vrot.slane %v2823_v7, 1  ;;  %v2832_v51 = vmax.f32 %v2830_v23, %v2831_v8  ;;  %v2838_v17 = vrot.slane %v2837_v2, 1  ;;  %v2035_v43 = vrot.slane %v7475_v9, %v7364_v49 }
 0x1d7   : > { %v3785_v34 = vmax.f32 %v3721_v33, 0.0  ;;  %v3786_v48 = vmax.f32 %v3722_v47, 0.0  ;;  %v3787_v21 = vmax.f32 %v3723_v40, 0.0  ;;  %v7565_v41 = vsel %vm3512_vm3, %v2818_v13, -inf }
 0x1d8   : > { %v2825_v29 = vmax.f32 %v2823_v7, %v2824_v58  ;;  %v2839_v0 = vmax.f32 %v2837_v2, %v2838_v17  ;;  %v7568_v24 = vsel %vm3512_vm3, %v2832_v51, -inf  ;;  %v2042_v55 = vrot.slane %v2028_v32, %v7364_v49 }
 0x1d9   : > { %v3927_v63 = vrot.slane %v3785_v34, 7  ;;  %v3929_v52 = vrot.slane %v3786_v48, 6  ;;  %v3931_v19 = vrot.slane %v3787_v21, 5  ;;  %v2043_v38 = vcombine.high %v2035_v43, %v2035_v43 }
 0x1da   : > { %v7575_v60 = vsel %vm3512_vm3, %v2825_v29, -inf  ;;  %v7578_v54 = vsel %vm3512_vm3, %v2839_v0, -inf  ;;  %v2044_v5 = vcombine.high %v2042_v55, %v2042_v55  ;;  %v2756_v14 = vsel %vm2615_vm15, %v2035_v43, -inf }
 0x1db   : > { %v3928_v57 = vsel %vm3907_vm4, %v3927_v63, %v3784_v46  ;;  %v2757_v18 = vrot.slane %v2756_v14, 4  ;;  %v2763_v9 = vsel %vm2615_vm15, %v2043_v38, -inf  ;;  %v2770_v32 = vsel %vm2615_vm15, %v2042_v55, -inf }
 0x1dc   : > { %v3930_v39 = vsel %vm3910_vm5, %v3929_v52, %v3928_v57  ;;  %v2764_v50 = vrot.slane %v2763_v9, 4  ;;  %v2771_v22 = vrot.slane %v2770_v32, 4  ;;  %v2777_v10 = vsel %vm2615_vm15, %v2044_v5, -inf }
 0x1dd   : > { %v2758_v59 = vmax.f32 %v2756_v14, %v2757_v18  ;;  %v2778_v23 = vrot.slane %v2777_v10, 4  ;;  %v7587_v30 = vsel %vm3913_vm6, %v3931_v19, %v3930_v39  ;;  %v3719_v25 = vadd.f32 %v7427_v36, %v3536_v6 }
 0x1de   : > { %v2765_v12 = vmax.f32 %v2763_v9, %v2764_v50  ;;  %v2772_v31 = vmax.f32 %v2770_v32, %v2771_v22  ;;  %v3914_v37 = vsel %vm3913_vm6, %v7456_v28, %v7461_v26  ;;  %v2113_v62 = vcombine.high %v7540_v4, %v7540_v4 }
 0x1df   : > { %v2759_v11 = vrot.slane %v2758_v59, 2  ;;  %v2779_v35 = vmax.f32 %v2777_v10, %v2778_v23  ;;  %v3783_v27 = vmax.f32 %v3719_v25, 0.0  ;;  %v3917_v46 = vsel %vm3916_vm7, %v7509_v53, %v3914_v37 }
 0x1e0   : > { %v2766_v7 = vrot.slane %v2765_v12, 2  ;;  %v2773_v8 = vrot.slane %v2772_v31, 2  ;;  %v3920_v20 = vsel %vm3919_vm8, %v7511_v56, %v3917_v46  ;;  %v2120_v16 = vrot.slane %v7540_v4, %v7364_v49 }
 0x1e1   : > { %v2760_v6 = vmax.f32 %v2758_v59, %v2759_v11  ;;  %v2780_v2 = vrot.slane %v2779_v35, 2  ;;  %v3923_v28 = vsel %vm3922_vm9, %v7513_v45, %v3920_v20  ;;  %v3924_v26 = vrot.slane %v3783_v27, 1 }
 0x1e2   : > { %v2767_v33 = vmax.f32 %v2765_v12, %v2766_v7  ;;  %v2774_v47 = vmax.f32 %v2772_v31, %v2773_v8  ;;  %v2127_v40 = vrot.slane %v2113_v62, %v7364_v49  ;;  %v2128_v13 = vcombine.high %v2120_v16, %v2120_v16 }
 0x1e3   : > { %v2761_v53 = vrot.slane %v2760_v6, 1  ;;  %v2781_v58 = vmax.f32 %v2779_v35, %v2780_v2  ;;  %v7608_v51 = vsel %vm3925_vm10, %v3924_v26, %v3923_v28  ;;  %v2896_v56 = vsel %vm2615_vm15, %v2120_v16, -inf }
 0x1e4   : > { %v2768_v17 = vrot.slane %v2767_v33, 1  ;;  %v2775_v4 = vrot.slane %v2774_v47, 1  ;;  %v5898_v43 = vpack.i.bf16 %v7608_v51, %v8876_v44  ;;  %v2129_v34 = vcombine.high %v2127_v40, %v2127_v40 }
 0x1e5   : > { %v2762_v45 = vmax.f32 %v2760_v6, %v2761_v53  ;;  %v2782_v48 = vrot.slane %v2781_v58, 1  ;;  %v2897_v21 = vrot.slane %v2896_v56, 4  ;;  %v2903_v29 = vsel %vm2615_vm15, %v2128_v13, -inf }
 0x1e6   : > { %v2769_v0 = vmax.f32 %v2767_v33, %v2768_v17  ;;  %v2776_v55 = vmax.f32 %v2774_v47, %v2775_v4  ;;  %5899 = vrot.lane.b32.xlu0 %v5898_v43, %s6127_s8  ;;  %v2904_v63 = vrot.slane %v2903_v29, 4  ;;  %v2910_v52 = vsel %vm2615_vm15, %v2127_v40, -inf }
 0x1e7   : > { %v2783_v19 = vmax.f32 %v2781_v58, %v2782_v48  ;;  %v3549_v38 = vsel %vm3512_vm3, %v2762_v45, -inf  ;;  %v2898_v5 = vmax.f32 %v2896_v56, %v2897_v21  ;;  %v2911_v14 = vrot.slane %v2910_v52, 4 }
 0x1e8   : > { %v3551_v57 = vmax.f32 %v3549_v38, %v7565_v41  ;;  %v3552_v18 = vsel %vm3512_vm3, %v2769_v0, -inf  ;;  %v3555_v9 = vsel %vm3512_vm3, %v2776_v55, -inf  ;;  %v2905_v32 = vmax.f32 %v2903_v29, %v2904_v63 }
 0x1e9   : > { %v3554_v39 = vmax.f32 %v3552_v18, %v7575_v60  ;;  %v3557_v50 = vmax.f32 %v3555_v9, %v7568_v24  ;;  %v3558_v22 = vsel %vm3512_vm3, %v2783_v19, -inf  ;;  %v2899_v10 = vrot.slane %v2898_v5, 2  ;;  %v7623_v59 = vpop.f32.mrb[12].mxu0 }
 0x1ea   : > { %v3560_v23 = vmax.f32 %v3558_v22, %v7578_v54  ;;  %v3724_v25 = vadd.f32 %v7427_v36, %v3551_v57  ;;  %v2906_v12 = vrot.slane %v2905_v32, 2  ;;  %v2912_v41 = vmax.f32 %v2910_v52, %v2911_v14  ;;  %v7627_v31 = vpop.f32.mrb[13].mxu0 }
 0x1eb   : > { %v3725_v37 = vadd.f32 %v7427_v36, %v3554_v39  ;;  %v3726_v62 = vadd.f32 %v7427_v36, %v3557_v50  ;;  %v2900_v60 = vmax.f32 %v2898_v5, %v2899_v10  ;;  %v2917_v24 = vsel %vm2615_vm15, %v2129_v34, -inf  ;;  %v7632_v11 = vpop.f32.mrb[14].mxu0 }
 0x1ec   : > { %v7635_v35 = vadd.f32 %v7427_v36, %v3560_v23  ;;  %v3788_v27 = vmax.f32 %v3724_v25, 0.0  ;;  %v2907_v54 = vmax.f32 %v2905_v32, %v2906_v12  ;;  %v2913_v46 = vrot.slane %v2912_v41, 2  ;;  %v7637_v7 = vpop.f32.mrb[15].mxu0 }
 0x1ed   : > { %v3789_v8 = vmax.f32 %v3725_v37, 0.0  ;;  %v3790_v20 = vmax.f32 %v3726_v62, 0.0  ;;  %v2901_v16 = vrot.slane %v2900_v60, 1  ;;  %v2918_v6 = vrot.slane %v2917_v24, 4 }
 0x1ee   : > { %v3791_v2 = vmax.f32 %v7635_v35, 0.0  ;;  %v3933_v28 = vrot.slane %v3788_v27, 4  ;;  %v2908_v26 = vrot.slane %v2907_v54, 1  ;;  %v2914_v33 = vmax.f32 %v2912_v41, %v2913_v46 }
 0x1ef   : > { %v7640_v47 = vrot.slane %v3789_v8, 3  ;;  %v7642_v40 = vrot.slane %v3790_v20, 2  ;;  %v2902_v13 = vmax.f32 %v2900_v60, %v2901_v16  ;;  %v2919_v53 = vmax.f32 %v2917_v24, %v2918_v6 }
 0x1f0   : > { %v7646_v58 = vsel %vm3916_vm7, %v3933_v28, %v7587_v30  ;;  %v2909_v56 = vmax.f32 %v2907_v54, %v2908_v26  ;;  %v2915_v17 = vrot.slane %v2914_v33, 1  ;;  %v2079_v4 = vcombine.high %v7542_v15, %v7542_v15 }
 0x1f1   : > { %v2920_v43 = vrot.slane %v2919_v53, 2  ;;  %v7651_v34 = vsel %vm3512_vm3, %v2902_v13, -inf  ;;  %v2086_v45 = vrot.slane %v7542_v15, %v7364_v49  ;;  %v2130_v48 = vcombine.high %v7546_v42, %v7546_v42 }
 0x1f2   : > { %v2916_v21 = vmax.f32 %v2914_v33, %v2915_v17  ;;  %v7658_v29 = vsel %vm3512_vm3, %v2909_v56, -inf  ;;  %v2093_v30 = vrot.slane %v2079_v4, %v7364_v49  ;;  %v2137_v0 = vrot.slane %v7546_v42, %v7364_v49 }
 0x1f3   : > { %v2921_v55 = vmax.f32 %v2919_v53, %v2920_v43  ;;  %v2094_v63 = vcombine.high %v2086_v45, %v2086_v45  ;;  %v2840_v52 = vsel %vm2615_vm15, %v2086_v45, -inf  ;;  %v2144_v19 = vrot.slane %v2130_v48, %v7364_v49 }
 0x1f4   : > { %v7666_v15 = vsel %vm3512_vm3, %v2916_v21, -inf  ;;  %v2095_v38 = vcombine.high %v2093_v30, %v2093_v30  ;;  %v2841_v5 = vrot.slane %v2840_v52, 4  ;;  %v2854_v14 = vsel %vm2615_vm15, %v2093_v30, -inf }
 0x1f5   : > { %v2922_v57 = vrot.slane %v2921_v55, 1  ;;  %v2847_v18 = vsel %vm2615_vm15, %v2094_v63, -inf  ;;  %v2855_v9 = vrot.slane %v2854_v14, 4  ;;  %v2145_v32 = vcombine.high %v2137_v0, %v2137_v0 }
 0x1f6   : > { %v2842_v39 = vmax.f32 %v2840_v52, %v2841_v5  ;;  %v2848_v42 = vrot.slane %v2847_v18, 4  ;;  %v2861_v50 = vsel %vm2615_vm15, %v2095_v38, -inf  ;;  %v2146_v22 = vcombine.high %v2144_v19, %v2144_v19 }
 0x1f7   : > { %v2923_v10 = vmax.f32 %v2921_v55, %v2922_v57  ;;  %v2856_v23 = vmax.f32 %v2854_v14, %v2855_v9  ;;  %v2862_v25 = vrot.slane %v2861_v50, 4  ;;  %v2924_v12 = vsel %vm2615_vm15, %v2137_v0, -inf }
 0x1f8   : > { %v2843_v41 = vrot.slane %v2842_v39, 2  ;;  %v2849_v37 = vmax.f32 %v2847_v18, %v2848_v42  ;;  %v2925_v62 = vrot.slane %v2924_v12, 4  ;;  %v2931_v60 = vsel %vm2615_vm15, %v2145_v32, -inf }
 0x1f9   : > { %v3571_v24 = vsel %vm3512_vm3, %v2923_v10, -inf  ;;  %v2857_v27 = vrot.slane %v2856_v23, 2  ;;  %v2863_v54 = vmax.f32 %v2861_v50, %v2862_v25  ;;  %v2932_v46 = vrot.slane %v2931_v60, 4 }
 0x1fa   : > { %v2844_v8 = vmax.f32 %v2842_v39, %v2843_v41  ;;  %v2850_v20 = vrot.slane %v2849_v37, 2  ;;  %v2926_v16 = vmax.f32 %v2924_v12, %v2925_v62  ;;  %v2938_v6 = vsel %vm2615_vm15, %v2144_v19, -inf }
 0x1fb   : > { %v2858_v28 = vmax.f32 %v2856_v23, %v2857_v27  ;;  %v2864_v26 = vrot.slane %v2863_v54, 2  ;;  %v2933_v33 = vmax.f32 %v2931_v60, %v2932_v46  ;;  %v2939_v13 = vrot.slane %v2938_v6, 4 }
 0x1fc   : > { %v2845_v53 = vrot.slane %v2844_v8, 1  ;;  %v2851_v56 = vmax.f32 %v2849_v37, %v2850_v20  ;;  %v2927_v17 = vrot.slane %v2926_v16, 2  ;;  %v2945_v4 = vsel %vm2615_vm15, %v2146_v22, -inf }
 0x1fd   : > { %v2859_v43 = vrot.slane %v2858_v28, 1  ;;  %v2865_v45 = vmax.f32 %v2863_v54, %v2864_v26  ;;  %v2934_v48 = vrot.slane %v2933_v33, 2  ;;  %v2940_v21 = vmax.f32 %v2938_v6, %v2939_v13 }
 0x1fe   : > { %v2846_v30 = vmax.f32 %v2844_v8, %v2845_v53  ;;  %v2852_v0 = vrot.slane %v2851_v56, 1  ;;  %v2928_v55 = vmax.f32 %v2926_v16, %v2927_v17  ;;  %v2946_v63 = vrot.slane %v2945_v4, 4 }
 0x1ff   : > { %v2860_v52 = vmax.f32 %v2858_v28, %v2859_v43  ;;  %v2866_v38 = vrot.slane %v2865_v45, 1  ;;  %v2935_v19 = vmax.f32 %v2933_v33, %v2934_v48  ;;  %v2941_v5 = vrot.slane %v2940_v21, 2 }
 0x200   : > { %v2853_v14 = vmax.f32 %v2851_v56, %v2852_v0  ;;  %v3561_v57 = vsel %vm3512_vm3, %v2846_v30, -inf  ;;  %v2929_v18 = vrot.slane %v2928_v55, 1  ;;  %v2947_v9 = vmax.f32 %v2945_v4, %v2946_v63 }
 0x201   : > { %v2867_v32 = vmax.f32 %v2865_v45, %v2866_v38  ;;  %v3563_v39 = vmax.f32 %v3561_v57, %v7651_v34  ;;  %v3567_v42 = vsel %vm3512_vm3, %v2860_v52, -inf  ;;  %v2936_v50 = vrot.slane %v2935_v19, 1 }
 0x202   : > { %v3564_v22 = vsel %vm3512_vm3, %v2853_v14, -inf  ;;  %v3569_v10 = vmax.f32 %v3567_v42, %v7666_v15  ;;  %v2930_v23 = vmax.f32 %v2928_v55, %v2929_v18  ;;  %v2942_v25 = vmax.f32 %v2940_v21, %v2941_v5 }
 0x203   : > { %v3566_v12 = vmax.f32 %v3564_v22, %v7658_v29  ;;  %v3570_v41 = vsel %vm3512_vm3, %v2867_v32, -inf  ;;  %v3728_v37 = vadd.f32 %v7427_v36, %v3563_v39  ;;  %v2937_v62 = vmax.f32 %v2935_v19, %v2936_v50 }
 0x204   : > { %v3572_v60 = vmax.f32 %v3570_v41, %v3571_v24  ;;  %v3730_v27 = vadd.f32 %v7427_v36, %v3569_v10  ;;  %v2943_v34 = vrot.slane %v2942_v25, 1  ;;  %v2948_v54 = vrot.slane %v2947_v9, 2 }
 0x205   : > { %v3729_v46 = vadd.f32 %v7427_v36, %v3566_v12  ;;  %v3792_v8 = vmax.f32 %v3728_v37, 0.0  ;;  %v7687_v20 = vsel %vm3512_vm3, %v2930_v23, -inf  ;;  %v7690_v15 = vsel %vm3512_vm3, %v2937_v62, -inf }
 0x206   : > { %v3731_v29 = vadd.f32 %v7427_v36, %v3572_v60  ;;  %v3794_v16 = vmax.f32 %v3730_v27, 0.0  ;;  %v2944_v6 = vmax.f32 %v2942_v25, %v2943_v34  ;;  %v2949_v28 = vmax.f32 %v2947_v9, %v2948_v54 }
 0x207   : > { %v3793_v26 = vmax.f32 %v3729_v46, 0.0  ;;  %v2096_v24 = vcombine.high %v7548_v61, %v7548_v61  ;;  %v2103_v33 = vrot.slane %v7548_v61, %v7364_v49  ;;  %v3936_v13 = vsel %vm3919_vm8, %v7640_v47, %v7646_v58 }
 0x208   : > { %v3795_v53 = vmax.f32 %v3731_v29, 0.0  ;;  %v3943_v56 = vrot.slane %v3794_v16, 6  ;;  %v2950_v17 = vrot.slane %v2949_v28, 1  ;;  %v7701_v4 = vsel %vm3512_vm3, %v2944_v6, -inf }
 0x209   : > { %v3941_v36 = vrot.slane %v3793_v26, 7  ;;  %v2110_v43 = vrot.slane %v2096_v24, %v7364_v49  ;;  %v2111_v45 = vcombine.high %v2103_v33, %v2103_v33  ;;  %v2868_v48 = vsel %vm2615_vm15, %v2103_v33, -inf  ;;  %v7705_v21 = vpop.f32.mrb[16].mxu0 }
 0x20a   : > { %v3945_v30 = vrot.slane %v3795_v53, 5  ;;  %v2951_v61 = vmax.f32 %v2949_v28, %v2950_v17  ;;  %v2869_v0 = vrot.slane %v2868_v48, 4  ;;  %v3938_v47 = vsel %vm3922_vm9, %v7642_v40, %v3936_v13  ;;  %v7709_v58 = vpop.f32.mrb[17].mxu0 }
 0x20b   : > { %v3942_v55 = vsel %vm3907_vm4, %v3941_v36, %v3792_v8  ;;  %v2112_v63 = vcombine.high %v2110_v43, %v2110_v43  ;;  %v2875_v52 = vsel %vm2615_vm15, %v2111_v45, -inf  ;;  %v2882_v38 = vsel %vm2615_vm15, %v2110_v43, -inf  ;;  %v7714_v19 = vpop.f32.mrb[18].mxu0 }
 0x20c   : > { %v3944_v5 = vsel %vm3910_vm5, %v3943_v56, %v3942_v55  ;;  %v7718_v14 = vsel %vm3512_vm3, %v2951_v61, -inf  ;;  %v2870_v57 = vmax.f32 %v2868_v48, %v2869_v0  ;;  %v2876_v18 = vrot.slane %v2875_v52, 4  ;;  %v7720_v9 = vpop.f32.mrb[19].mxu0 }
 0x20d   : > { %v2883_v40 = vrot.slane %v2882_v38, 4  ;;  %v2889_v32 = vsel %vm2615_vm15, %v2112_v63, -inf  ;;  %v7724_v39 = vsel %vm3913_vm6, %v3945_v30, %v3944_v5  ;;  %v3939_v42 = vrot.slane %v3791_v2, 1 }
 0x20e   : > { %v2871_v50 = vrot.slane %v2870_v57, 2  ;;  %v2877_v22 = vmax.f32 %v2875_v52, %v2876_v18  ;;  %v2890_v10 = vrot.slane %v2889_v32, 4  ;;  %v7729_v23 = vadd.s32 1, %v6217_v1 }
 0x20f   : > { %v2884_v25 = vmax.f32 %v2882_v38, %v2883_v40  ;;  %v7732_v12 = vsel %vm3925_vm10, %v3939_v42, %v3938_v47  ;;  %v8855_v41 = vrot.slane %v7608_v51, 1  ;;  %v2181_v37 = vcombine.high %v7623_v59, %v7623_v59 }
 0x210   : > { %v2872_v62 = vmax.f32 %v2870_v57, %v2871_v50  ;;  %v2878_v60 = vrot.slane %v2877_v22, 2  ;;  %v2891_v27 = vmax.f32 %v2889_v32, %v2890_v10  ;;  %v5903_v35 = vpack.i.bf16 %v7732_v12, %v7608_v51 }
 0x211   : > { %v2885_v2 = vrot.slane %v2884_v25, 2  ;;  %vm4068_vm11 = vcmp.lt.s32.totalorder %v7729_v23, 8  ;;  %v4071_v34 = vrot.slane %v7732_v12, 1  ;;  %v2188_v54 = vrot.slane %v7623_v59, %v7364_v49 }
 0x212   : > { %v2873_v46 = vrot.slane %v2872_v62, 1  ;;  %v2879_v8 = vmax.f32 %v2877_v22, %v2878_v60  ;;  %v2892_v29 = vrot.slane %v2891_v27, 2  ;;  %5904 = vrot.lane.b32.xlu1 %v5903_v35, %s6128_s9  ;;  %v2195_v16 = vrot.slane %v2181_v37, %v7364_v49 }
 0x213   : > { %v2886_v6 = vmax.f32 %v2884_v25, %v2885_v2  ;;  %v4084_v28 = vsel %vm442_vm2, %v8855_v41, %v4071_v34  ;;  %v2196_v26 = vcombine.high %v2188_v54, %v2188_v54  ;;  %v3008_v24 = vsel %vm2615_vm15, %v2188_v54, -inf }
 0x214   : > { %v2874_v59 = vmax.f32 %v2872_v62, %v2873_v46  ;;  %v2880_v33 = vrot.slane %v2879_v8, 1  ;;  %v2893_v13 = vmax.f32 %v2891_v27, %v2892_v29  ;;  %v7754_v53 = vsel %vm4068_vm11, %v4084_v28, 0.0 }
 0x215   : > { %v2887_v56 = vrot.slane %v2886_v6, 1  ;;  %v5908_v17 = vpack.i.bf16 %v7754_v53, %v8876_v44  ;;  %v2197_v36 = vcombine.high %v2195_v16, %v2195_v16  ;;  %v3009_v43 = vrot.slane %v3008_v24, 4 }
 0x216   : > { %v2881_v45 = vmax.f32 %v2879_v8, %v2880_v33  ;;  %v2894_v48 = vrot.slane %v2893_v13, 1  ;;  %v3573_v30 = vsel %vm3512_vm3, %v2874_v59, -inf  ;;  %v3015_v61 = vsel %vm2615_vm15, %v2196_v26, -inf }
 0x217   : > { %v2888_v0 = vmax.f32 %v2886_v6, %v2887_v56  ;;  %v3575_v47 = vmax.f32 %v3573_v30, %v7687_v20  ;;  %5909 = vrot.lane.b32.xlu1 %v5908_v17, %s6129_s10  ;;  %v3010_v55 = vmax.f32 %v3008_v24, %v3009_v43  ;;  %v3016_v63 = vrot.slane %v3015_v61, 4  ;;  %v7770_v20 = vld [vmem:[%s8837_s2] ss:$0 sm:$0xff] }
 0x218   : > { %v2895_v52 = vmax.f32 %v2893_v13, %v2894_v48  ;;  %v3576_v38 = vsel %vm3512_vm3, %v2881_v45, -inf  ;;  %v3022_v5 = vsel %vm2615_vm15, %v2195_v16, -inf  ;;  %v3029_v57 = vsel %vm2615_vm15, %v2197_v36, -inf }
 0x219   : > { %v3578_v18 = vmax.f32 %v3576_v38, %v7690_v15  ;;  %v3579_v40 = vsel %vm3512_vm3, %v2888_v0, -inf  ;;  %v3732_v32 = vadd.f32 %v7770_v20, %v3575_v47  ;;  %v3011_v42 = vrot.slane %v3010_v55, 2 }
 0x21a   : > { %v3581_v50 = vmax.f32 %v3579_v40, %v7701_v4  ;;  %v3582_v22 = vsel %vm3512_vm3, %v2895_v52, -inf  ;;  %v3017_v10 = vmax.f32 %v3015_v61, %v3016_v63  ;;  %v3023_v25 = vrot.slane %v3022_v5, 4 }
 0x21b   : > { %v3584_v37 = vmax.f32 %v3582_v22, %v7718_v14  ;;  %v3733_v15 = vadd.f32 %v7770_v20, %v3578_v18  ;;  %v3796_v62 = vmax.f32 %v3732_v32, 0.0  ;;  %v3012_v60 = vmax.f32 %v3010_v55, %v3011_v42 }
 0x21c   : > { %v3734_v27 = vadd.f32 %v7770_v20, %v3581_v50  ;;  %v3018_v35 = vrot.slane %v3017_v10, 2  ;;  %v3024_v2 = vmax.f32 %v3022_v5, %v3023_v25  ;;  %v3030_v54 = vrot.slane %v3029_v57, 4 }
 0x21d   : > { %v7779_v46 = vadd.f32 %v7770_v20, %v3584_v37  ;;  %v3797_v8 = vmax.f32 %v3733_v15, 0.0  ;;  %v3947_v4 = vrot.slane %v3796_v62, 4  ;;  %v3013_v29 = vrot.slane %v3012_v60, 1 }
 0x21e   : > { %v3798_v16 = vmax.f32 %v3734_v27, 0.0  ;;  %v3019_v6 = vmax.f32 %v3017_v10, %v3018_v35  ;;  %v3025_v28 = vrot.slane %v3024_v2, 2  ;;  %v3031_v26 = vmax.f32 %v3029_v57, %v3030_v54 }
 0x21f   : > { %v3799_v14 = vmax.f32 %v7779_v46, 0.0  ;;  %v7784_v24 = vsel %vm3916_vm7, %v3947_v4, %v7724_v39  ;;  %v7786_v59 = vrot.slane %v3797_v8, 3  ;;  %v3014_v33 = vmax.f32 %v3012_v60, %v3013_v29 }
 0x220   : > { %v7788_v13 = vrot.slane %v3798_v16, 2  ;;  %v3020_v56 = vrot.slane %v3019_v6, 1  ;;  %v3026_v17 = vmax.f32 %v3024_v2, %v3025_v28  ;;  %v3032_v36 = vrot.slane %v3031_v26, 2 }
 0x221   : > { %v7791_v43 = vsel %vm3512_vm3, %v3014_v33, -inf  ;;  %v2147_v45 = vcombine.high %v7627_v31, %v7627_v31  ;;  %v2154_v48 = vrot.slane %v7627_v31, %v7364_v49  ;;  %v2198_v39 = vcombine.high %v7632_v11, %v7632_v11 }
 0x222   : > { %v3021_v30 = vmax.f32 %v3019_v6, %v3020_v56  ;;  %v3027_v61 = vrot.slane %v3026_v17, 1  ;;  %v3033_v0 = vmax.f32 %v3031_v26, %v3032_v36  ;;  %v2205_v47 = vrot.slane %v7632_v11, %v7364_v49 }
 0x223   : > { %v2161_v55 = vrot.slane %v2147_v45, %v7364_v49  ;;  %v2162_v63 = vcombine.high %v2154_v48, %v2154_v48  ;;  %v2952_v52 = vsel %vm2615_vm15, %v2154_v48, -inf  ;;  %v2212_v38 = vrot.slane %v2198_v39, %v7364_v49 }
 0x224   : > { %v3028_v5 = vmax.f32 %v3026_v17, %v3027_v61  ;;  %v3034_v57 = vrot.slane %v3033_v0, 1  ;;  %v7805_v31 = vsel %vm3512_vm3, %v3021_v30, -inf  ;;  %v2953_v18 = vrot.slane %v2952_v52, 4 }
 0x225   : > { %v2163_v40 = vcombine.high %v2161_v55, %v2161_v55  ;;  %v2959_v32 = vsel %vm2615_vm15, %v2162_v63, -inf  ;;  %v2966_v42 = vsel %vm2615_vm15, %v2161_v55, -inf  ;;  %v2213_v50 = vcombine.high %v2205_v47, %v2205_v47 }
 0x226   : > { %v3035_v11 = vmax.f32 %v3033_v0, %v3034_v57  ;;  %v7810_v22 = vsel %vm3512_vm3, %v3028_v5, -inf  ;;  %v2954_v10 = vmax.f32 %v2952_v52, %v2953_v18  ;;  %v2960_v25 = vrot.slane %v2959_v32, 4 }
 0x227   : > { %v2967_v37 = vrot.slane %v2966_v42, 4  ;;  %v2973_v15 = vsel %vm2615_vm15, %v2163_v40, -inf  ;;  %v2214_v62 = vcombine.high %v2212_v38, %v2212_v38  ;;  %v3036_v60 = vsel %vm2615_vm15, %v2205_v47, -inf }
 0x228   : > { %v7815_v27 = vsel %vm3512_vm3, %v3035_v11, -inf  ;;  %v2955_v35 = vrot.slane %v2954_v10, 2  ;;  %v2961_v2 = vmax.f32 %v2959_v32, %v2960_v25  ;;  %v2974_v54 = vrot.slane %v2973_v15, 4 }
 0x229   : > { %v2968_v8 = vmax.f32 %v2966_v42, %v2967_v37  ;;  %v3037_v4 = vrot.slane %v3036_v60, 4  ;;  %v3043_v29 = vsel %vm2615_vm15, %v2213_v50, -inf  ;;  %v3050_v16 = vsel %vm2615_vm15, %v2212_v38, -inf  ;;  %v7819_v6 = vpop.f32.mrb[20].mxu0 }
 0x22a   : > { %v2956_v28 = vmax.f32 %v2954_v10, %v2955_v35  ;;  %v2962_v26 = vrot.slane %v2961_v2, 2  ;;  %v2975_v33 = vmax.f32 %v2973_v15, %v2974_v54  ;;  %v3044_v56 = vrot.slane %v3043_v29, 4  ;;  %v7821_v17 = vpop.f32.mrb[21].mxu0 }
 0x22b   : > { %v2969_v36 = vrot.slane %v2968_v8, 2  ;;  %v3038_v45 = vmax.f32 %v3036_v60, %v3037_v4  ;;  %v3051_v48 = vrot.slane %v3050_v16, 4  ;;  %v3057_v39 = vsel %vm2615_vm15, %v2214_v62, -inf  ;;  %v7824_v30 = vpop.f32.mrb[22].mxu0 }
 0x22c   : > { %v2957_v61 = vrot.slane %v2956_v28, 1  ;;  %v2963_v0 = vmax.f32 %v2961_v2, %v2962_v26  ;;  %v2976_v47 = vrot.slane %v2975_v33, 2  ;;  %v3045_v55 = vmax.f32 %v3043_v29, %v3044_v56  ;;  %v7826_v63 = vpop.f32.mrb[23].mxu0 }
 0x22d   : > { %v2970_v52 = vmax.f32 %v2968_v8, %v2969_v36  ;;  %v3039_v38 = vrot.slane %v3038_v45, 2  ;;  %v3052_v5 = vmax.f32 %v3050_v16, %v3051_v48  ;;  %v3058_v57 = vrot.slane %v3057_v39, 4 }
 0x22e   : > { %v2958_v18 = vmax.f32 %v2956_v28, %v2957_v61  ;;  %v2964_v40 = vrot.slane %v2963_v0, 1  ;;  %v2977_v32 = vmax.f32 %v2975_v33, %v2976_v47  ;;  %v3046_v42 = vrot.slane %v3045_v55, 2 }
 0x22f   : > { %v2971_v50 = vrot.slane %v2970_v52, 1  ;;  %v3040_v11 = vmax.f32 %v3038_v45, %v3039_v38  ;;  %v3053_v10 = vrot.slane %v3052_v5, 2  ;;  %v3059_v25 = vmax.f32 %v3057_v39, %v3058_v57 }
 0x230   : > { %v2965_v37 = vmax.f32 %v2963_v0, %v2964_v40  ;;  %v2978_v15 = vrot.slane %v2977_v32, 1  ;;  %v3585_v62 = vsel %vm3512_vm3, %v2958_v18, -inf  ;;  %v3047_v60 = vmax.f32 %v3045_v55, %v3046_v42 }
 0x231   : > { %v2972_v35 = vmax.f32 %v2970_v52, %v2971_v50  ;;  %v3587_v2 = vmax.f32 %v3585_v62, %v7791_v43  ;;  %v3041_v54 = vrot.slane %v3040_v11, 1  ;;  %v3054_v8 = vmax.f32 %v3052_v5, %v3053_v10 }
 0x232   : > { %v2979_v4 = vmax.f32 %v2977_v32, %v2978_v15  ;;  %v3588_v29 = vsel %vm3512_vm3, %v2965_v37, -inf  ;;  %v3048_v16 = vrot.slane %v3047_v60, 1  ;;  %v3060_v28 = vrot.slane %v3059_v25, 2 }
 0x233   : > { %v3590_v26 = vmax.f32 %v3588_v29, %v7805_v31  ;;  %v3591_v33 = vsel %vm3512_vm3, %v2972_v35, -inf  ;;  %v3736_v56 = vadd.f32 %v7770_v20, %v3587_v2  ;;  %v3042_v36 = vmax.f32 %v3040_v11, %v3041_v54 }
 0x234   : > { %v3593_v45 = vmax.f32 %v3591_v33, %v7810_v22  ;;  %v3594_v48 = vsel %vm3512_vm3, %v2979_v4, -inf  ;;  %v3049_v39 = vmax.f32 %v3047_v60, %v3048_v16  ;;  %v3055_v43 = vrot.slane %v3054_v8, 1 }
 0x235   : > { %v3596_v61 = vmax.f32 %v3594_v48, %v7815_v27  ;;  %v3737_v0 = vadd.f32 %v7770_v20, %v3590_v26  ;;  %v3800_v47 = vmax.f32 %v3736_v56, 0.0  ;;  %v3061_v55 = vmax.f32 %v3059_v25, %v3060_v28 }
 0x236   : > { %v3738_v52 = vadd.f32 %v7770_v20, %v3593_v45  ;;  %v3056_v31 = vmax.f32 %v3054_v8, %v3055_v43  ;;  %v7840_v38 = vsel %vm3512_vm3, %v3042_v36, -inf  ;;  %v7843_v5 = vsel %vm3512_vm3, %v3049_v39, -inf }
 0x237   : > { %v3739_v22 = vadd.f32 %v7770_v20, %v3596_v61  ;;  %v3801_v57 = vmax.f32 %v3737_v0, 0.0  ;;  %v3062_v18 = vrot.slane %v3061_v55, 1  ;;  %v2164_v27 = vcombine.high %v7637_v7, %v7637_v7 }
 0x238   : > { %v3802_v40 = vmax.f32 %v3738_v52, 0.0  ;;  %v7849_v32 = vsel %vm3512_vm3, %v3056_v31, -inf  ;;  %v2171_v42 = vrot.slane %v7637_v7, %v7364_v49  ;;  %v3950_v50 = vsel %vm3919_vm8, %v7786_v59, %v7784_v24 }
 0x239   : > { %v3803_v11 = vmax.f32 %v3739_v22, 0.0  ;;  %v3955_v10 = vrot.slane %v3801_v57, 7  ;;  %v3063_v25 = vmax.f32 %v3061_v55, %v3062_v18  ;;  %v2178_v37 = vrot.slane %v2164_v27, %v7364_v49 }
 0x23a   : > { %v3957_v15 = vrot.slane %v3802_v40, 6  ;;  %v2179_v62 = vcombine.high %v2171_v42, %v2171_v42  ;;  %v2980_v60 = vsel %vm2615_vm15, %v2171_v42, -inf  ;;  %v3952_v35 = vsel %vm3922_vm9, %v7788_v13, %v3950_v50 }
 0x23b   : > { %v3956_v2 = vsel %vm3907_vm4, %v3955_v10, %v3800_v47  ;;  %v3959_v54 = vrot.slane %v3803_v11, 5  ;;  %v7862_v7 = vsel %vm3512_vm3, %v3063_v25, -inf  ;;  %v2180_v8 = vcombine.high %v2178_v37, %v2178_v37 }
 0x23c   : > { %v3958_v24 = vsel %vm3910_vm5, %v3957_v15, %v3956_v2  ;;  %v2981_v59 = vrot.slane %v2980_v60, 4  ;;  %v2987_v4 = vsel %vm2615_vm15, %v2179_v62, -inf  ;;  %v2994_v29 = vsel %vm2615_vm15, %v2178_v37, -inf }
 0x23d   : > { %v2988_v16 = vrot.slane %v2987_v4, 4  ;;  %v2995_v28 = vrot.slane %v2994_v29, 4  ;;  %v3001_v26 = vsel %vm2615_vm15, %v2180_v8, -inf  ;;  %v7869_v13 = vsel %vm3913_vm6, %v3959_v54, %v3958_v24 }
 0x23e   : > { %v2982_v33 = vmax.f32 %v2980_v60, %v2981_v59  ;;  %v3002_v56 = vrot.slane %v3001_v26, 4  ;;  %v3953_v36 = vrot.slane %v3799_v14, 1  ;;  %v4033_v45 = vrot.slane %v7608_v51, 7 }
 0x23f   : > { %v2989_v48 = vmax.f32 %v2987_v4, %v2988_v16  ;;  %v2996_v39 = vmax.f32 %v2994_v29, %v2995_v28  ;;  %v4034_v43 = vrot.slane %v7732_v12, 7  ;;  %v2249_v61 = vcombine.high %v7705_v21, %v7705_v21 }
 0x240   : > { %v2983_v0 = vrot.slane %v2982_v33, 2  ;;  %v3003_v47 = vmax.f32 %v3001_v26, %v3002_v56  ;;  %v7878_v55 = vsel %vm3925_vm10, %v3953_v36, %v3952_v35  ;;  %v2256_v52 = vrot.slane %v7705_v21, %v7364_v49 }
 0x241   : > { %v2990_v31 = vrot.slane %v2989_v48, 2  ;;  %v2997_v46 = vrot.slane %v2996_v39, 2  ;;  %v5918_v14 = vpack.i.bf16 %v7878_v55, %v7732_v12  ;;  %v4072_v18 = vrot.slane %v7878_v55, 1 }
 0x242   : > { %v2984_v22 = vmax.f32 %v2982_v33, %v2983_v0  ;;  %v3004_v57 = vrot.slane %v3003_v47, 2  ;;  %v4035_v27 = vrot.slane %v7878_v55, 7  ;;  %v4046_v21 = vsel %vm298_vm0, %v4033_v45, %v4034_v43 }
 0x243   : > { %v2991_v40 = vmax.f32 %v2989_v48, %v2990_v31  ;;  %v2998_v42 = vmax.f32 %v2996_v39, %v2997_v46  ;;  %5919 = vrot.lane.b32.xlu1 %v5918_v14, %s6127_s8  ;;  %5914 = vrot.lane.b32.xlu0 %v5918_v14, %s6130_s13  ;;  %v3120_v50 = vsel %vm2615_vm15, %v2256_v52, -inf  ;;  %v4083_v25 = vsel %vm442_vm2, %v4071_v34, %v4072_v18 }
 0x244   : > { %v2985_v11 = vrot.slane %v2984_v22, 1  ;;  %v3005_v10 = vmax.f32 %v3003_v47, %v3004_v57  ;;  %v4045_v37 = vsel %vm298_vm0, %v4034_v43, %v4035_v27  ;;  %v7905_v60 = vsel %vm4068_vm11, %v4083_v25, 0.0 }
 0x245   : > { %v2992_v15 = vrot.slane %v2991_v40, 1  ;;  %v2999_v62 = vrot.slane %v2998_v42, 1  ;;  %v7909_v35 = vsel %vm261_vm1, %v4046_v21, 0.0  ;;  %v5923_v34 = vpack.i.bf16 %v7905_v60, %v7754_v53 }
 0x246   : > { %v2986_v2 = vmax.f32 %v2984_v22, %v2985_v11  ;;  %v3006_v12 = vrot.slane %v3005_v10, 1  ;;  %v7915_v54 = vsel %vm261_vm1, %v4045_v37, 0.0  ;;  %v2263_v4 = vrot.slane %v2249_v61, %v7364_v49 }
 0x247   : > { %v2993_v8 = vmax.f32 %v2991_v40, %v2992_v15  ;;  %v3000_v24 = vmax.f32 %v2998_v42, %v2999_v62  ;;  %v5928_v59 = vpack.i.bf16 %v7915_v54, %v7909_v35  ;;  %5924 = vrot.lane.b32.xlu0 %v5923_v34, %s6131_s14  ;;  %v2264_v28 = vcombine.high %v2256_v52, %v2256_v52 }
 0x248   : > { %v3007_v29 = vmax.f32 %v3005_v10, %v3006_v12  ;;  %v3597_v16 = vsel %vm3512_vm3, %v2986_v2, -inf  ;;  %v3121_v26 = vrot.slane %v3120_v50, 4  ;;  %v2265_v36 = vcombine.high %v2263_v4, %v2263_v4 }
 0x249   : > { %v3599_v53 = vmax.f32 %v3597_v16, %v7840_v38  ;;  %v3600_v33 = vsel %vm3512_vm3, %v2993_v8, -inf  ;;  %v3603_v56 = vsel %vm3512_vm3, %v3000_v24, -inf  ;;  %5929 = vrot.lane.b32.xlu1 %v5928_v59, %s6132_s15  ;;  %v7926_v48 = vpop.f32.mrb[24].mxu0  ;;  %v3127_v31 = vsel %vm2615_vm15, %v2264_v28, -inf }
 0x24a   : > { %v3602_v39 = vmax.f32 %v3600_v33, %v7843_v5  ;;  %v3605_v43 = vmax.f32 %v3603_v56, %v7849_v32  ;;  %v3606_v61 = vsel %vm3512_vm3, %v3007_v29, -inf  ;;  %v3122_v0 = vmax.f32 %v3120_v50, %v3121_v26  ;;  %v7931_v47 = vpop.f32.mrb[25].mxu0 }
 0x24b   : > { %v3608_v38 = vmax.f32 %v3606_v61, %v7862_v7  ;;  %v3740_v52 = vadd.f32 %v7770_v20, %v3599_v53  ;;  %v3134_v46 = vsel %vm2615_vm15, %v2263_v4, -inf  ;;  %v3128_v22 = vrot.slane %v3127_v31, 4  ;;  %v7949_v12 = vpop.f32.mrb[26].mxu0 }
 0x24c   : > { %v7938_v14 = vadd.f32 %v7770_v20, %v3602_v39  ;;  %v7941_v5 = vadd.f32 %v7770_v20, %v3605_v43  ;;  %v3123_v32 = vrot.slane %v3122_v0, 2  ;;  %v3135_v40 = vrot.slane %v3134_v46, 4 }
 0x24d   : > { %v3804_v57 = vmax.f32 %v3740_v52, 0.0  ;;  %v3141_v42 = vsel %vm2615_vm15, %v2265_v36, -inf  ;;  %v7945_v7 = vadd.f32 %v7770_v20, %v3608_v38  ;;  %v3129_v50 = vmax.f32 %v3127_v31, %v3128_v22 }
 0x24e   : > { %v3124_v21 = vmax.f32 %v3122_v0, %v3123_v32  ;;  %v3136_v10 = vmax.f32 %v3134_v46, %v3135_v40  ;;  %v3142_v25 = vrot.slane %v3141_v42, 4  ;;  %v3805_v37 = vmax.f32 %v7938_v14, 0.0 }
 0x24f   : > { %v3961_v11 = vrot.slane %v3804_v57, 4  ;;  %v3806_v15 = vmax.f32 %v7941_v5, 0.0  ;;  %v3130_v2 = vrot.slane %v3129_v50, 2  ;;  %v2215_v59 = vcombine.high %v7709_v58, %v7709_v58 }
 0x250   : > { %v3125_v62 = vrot.slane %v3124_v21, 1  ;;  %v3137_v8 = vrot.slane %v3136_v10, 2  ;;  %v3143_v24 = vmax.f32 %v3141_v42, %v3142_v25  ;;  %v3807_v4 = vmax.f32 %v7945_v7, 0.0 }
 0x251   : > { %v7953_v34 = vsel %vm3916_vm7, %v3961_v11, %v7869_v13  ;;  %v3131_v29 = vmax.f32 %v3129_v50, %v3130_v2  ;;  %v2222_v16 = vrot.slane %v7709_v58, %v7364_v49  ;;  %v2266_v28 = vcombine.high %v7714_v19, %v7714_v19  ;;  %v7966_v58 = vpop.f32.mrb[27].mxu0 }
 0x252   : > { %v3126_v26 = vmax.f32 %v3124_v21, %v3125_v62  ;;  %v3138_v53 = vmax.f32 %v3136_v10, %v3137_v8  ;;  %v3144_v33 = vrot.slane %v3143_v24, 2  ;;  %v2229_v13 = vrot.slane %v2215_v59, %v7364_v49 }
 0x253   : > { %v3132_v56 = vrot.slane %v3131_v29, 1  ;;  %v2230_v36 = vcombine.high %v2222_v16, %v2222_v16  ;;  %v3064_v39 = vsel %vm2615_vm15, %v2222_v16, -inf  ;;  %v2273_v43 = vrot.slane %v7714_v19, %v7364_v49 }
 0x254   : > { %v3139_v61 = vrot.slane %v3138_v53, 1  ;;  %v3145_v0 = vmax.f32 %v3143_v24, %v3144_v33  ;;  %v2231_v38 = vcombine.high %v2229_v13, %v2229_v13  ;;  %v3065_v52 = vrot.slane %v3064_v39, 4 }
 0x255   : > { %v3133_v31 = vmax.f32 %v3131_v29, %v3132_v56  ;;  %v3071_v46 = vsel %vm2615_vm15, %v2230_v36, -inf  ;;  %v3078_v32 = vsel %vm2615_vm15, %v2229_v13, -inf  ;;  %v2280_v22 = vrot.slane %v2266_v28, %v7364_v49 }
 0x256   : > { %v3140_v57 = vmax.f32 %v3138_v53, %v3139_v61  ;;  %v3146_v40 = vrot.slane %v3145_v0, 1  ;;  %v3066_v42 = vmax.f32 %v3064_v39, %v3065_v52  ;;  %v3072_v21 = vrot.slane %v3071_v46, 4 }
 0x257   : > { %v3610_v50 = vsel %vm3512_vm3, %v3126_v26, -inf  ;;  %v3079_v19 = vrot.slane %v3078_v32, 4  ;;  %v3085_v11 = vsel %vm2615_vm15, %v2231_v38, -inf  ;;  %v2281_v10 = vcombine.high %v2273_v43, %v2273_v43 }
 0x258   : > { %v3147_v25 = vmax.f32 %v3145_v0, %v3146_v40  ;;  %v3613_v62 = vsel %vm3512_vm3, %v3133_v31, -inf  ;;  %v3067_v2 = vrot.slane %v3066_v42, 2  ;;  %v3073_v8 = vmax.f32 %v3071_v46, %v3072_v21 }
 0x259   : > { %v3080_v24 = vmax.f32 %v3078_v32, %v3079_v19  ;;  %v3086_v59 = vrot.slane %v3085_v11, 4  ;;  %v2282_v29 = vcombine.high %v2280_v22, %v2280_v22  ;;  %v3148_v16 = vsel %vm2615_vm15, %v2273_v43, -inf }
 0x25a   : > { %v3616_v28 = vsel %vm3512_vm3, %v3140_v57, -inf  ;;  %v3068_v53 = vmax.f32 %v3066_v42, %v3067_v2  ;;  %v3074_v33 = vrot.slane %v3073_v8, 2  ;;  %v3149_v13 = vrot.slane %v3148_v16, 4 }
 0x25b   : > { %v3081_v26 = vrot.slane %v3080_v24, 2  ;;  %v3087_v56 = vmax.f32 %v3085_v11, %v3086_v59  ;;  %v3155_v36 = vsel %vm2615_vm15, %v2281_v10, -inf  ;;  %v3162_v39 = vsel %vm2615_vm15, %v2280_v22, -inf }
 0x25c   : > { %v3069_v61 = vrot.slane %v3068_v53, 1  ;;  %v3075_v0 = vmax.f32 %v3073_v8, %v3074_v33  ;;  %v3150_v38 = vmax.f32 %v3148_v16, %v3149_v13  ;;  %v3156_v52 = vrot.slane %v3155_v36, 4 }
 0x25d   : > { %v3082_v31 = vmax.f32 %v3080_v24, %v3081_v26  ;;  %v3088_v46 = vrot.slane %v3087_v56, 2  ;;  %v3163_v32 = vrot.slane %v3162_v39, 4  ;;  %v3169_v43 = vsel %vm2615_vm15, %v2282_v29, -inf }
 0x25e   : > { %v3070_v40 = vmax.f32 %v3068_v53, %v3069_v61  ;;  %v3076_v57 = vrot.slane %v3075_v0, 1  ;;  %v3151_v42 = vrot.slane %v3150_v38, 2  ;;  %v3157_v21 = vmax.f32 %v3155_v36, %v3156_v52 }
 0x25f   : > { %v3083_v19 = vrot.slane %v3082_v31, 1  ;;  %v3089_v2 = vmax.f32 %v3087_v56, %v3088_v46  ;;  %v3164_v11 = vmax.f32 %v3162_v39, %v3163_v32  ;;  %v3170_v59 = vrot.slane %v3169_v43, 4 }
 0x260   : > { %v3077_v10 = vmax.f32 %v3075_v0, %v3076_v57  ;;  %v3609_v22 = vsel %vm3512_vm3, %v3070_v40, -inf  ;;  %v3152_v41 = vmax.f32 %v3150_v38, %v3151_v42  ;;  %v3158_v8 = vrot.slane %v3157_v21, 2 }
 0x261   : > { %v3084_v16 = vmax.f32 %v3082_v31, %v3083_v19  ;;  %v3090_v33 = vrot.slane %v3089_v2, 1  ;;  %v3611_v24 = vmax.f32 %v3609_v22, %v3610_v50  ;;  %v3165_v13 = vrot.slane %v3164_v11, 2 }
 0x262   : > { %v3619_v26 = vsel %vm3512_vm3, %v3147_v25, -inf  ;;  %v3612_v29 = vsel %vm3512_vm3, %v3077_v10, -inf  ;;  %v3159_v53 = vmax.f32 %v3157_v21, %v3158_v8  ;;  %v3171_v61 = vmax.f32 %v3169_v43, %v3170_v59 }
 0x263   : > { %v3091_v36 = vmax.f32 %v3089_v2, %v3090_v33  ;;  %v3614_v52 = vmax.f32 %v3612_v29, %v3613_v62  ;;  %v3615_v56 = vsel %vm3512_vm3, %v3084_v16, -inf  ;;  %v3153_v39 = vrot.slane %v3152_v41, 1 }
 0x264   : > { %v3617_v0 = vmax.f32 %v3615_v56, %v3616_v28  ;;  %v3744_v46 = vadd.f32 %v7770_v20, %v3611_v24  ;;  %v3160_v38 = vrot.slane %v3159_v53, 1  ;;  %v3166_v32 = vmax.f32 %v3164_v11, %v3165_v13 }
 0x265   : > { %v3963_v50 = vrot.slane %v3805_v37, 3  ;;  %v3618_v31 = vsel %vm3512_vm3, %v3091_v36, -inf  ;;  %v3745_v25 = vadd.f32 %v7770_v20, %v3614_v52  ;;  %v3172_v40 = vrot.slane %v3171_v61, 2 }
 0x266   : > { %v3965_v43 = vrot.slane %v3806_v15, 2  ;;  %v3620_v62 = vmax.f32 %v3618_v31, %v3619_v26  ;;  %v3746_v57 = vadd.f32 %v7770_v20, %v3617_v0  ;;  %v3167_v42 = vrot.slane %v3166_v32, 1 }
 0x267   : > { %v3809_v28 = vmax.f32 %v3745_v25, 0.0  ;;  %v3154_v21 = vmax.f32 %v3152_v41, %v3153_v39  ;;  %v3173_v19 = vmax.f32 %v3171_v61, %v3172_v40  ;;  %v2232_v2 = vcombine.high %v7720_v9, %v7720_v9 }
 0x268   : > { %v3747_v14 = vadd.f32 %v7770_v20, %v3620_v62  ;;  %v3808_v37 = vmax.f32 %v3744_v46, 0.0  ;;  %v3810_v11 = vmax.f32 %v3746_v57, 0.0  ;;  %v3161_v59 = vmax.f32 %v3159_v53, %v3160_v38 }
 0x269   : > { %v3969_v10 = vrot.slane %v3809_v28, 7  ;;  %v3174_v22 = vrot.slane %v3173_v19, 1  ;;  %v2239_v5 = vrot.slane %v7720_v9, %v7364_v49  ;;  %v2246_v15 = vrot.slane %v2232_v2, %v7364_v49 }
 0x26a   : > { %v3811_v8 = vmax.f32 %v3747_v14, 0.0  ;;  %v3971_v16 = vrot.slane %v3810_v11, 6  ;;  %v3168_v33 = vmax.f32 %v3166_v32, %v3167_v42  ;;  %v3964_v41 = vsel %vm3919_vm8, %v3963_v50, %v7953_v34 }
 0x26b   : > { %v3970_v24 = vsel %vm3907_vm4, %v3969_v10, %v3808_v37  ;;  %v3175_v13 = vmax.f32 %v3173_v19, %v3174_v22  ;;  %v2247_v26 = vcombine.high %v2239_v5, %v2239_v5  ;;  %v2248_v29 = vcombine.high %v2246_v15, %v2246_v15 }
 0x26c   : > { %v3972_v53 = vsel %vm3910_vm5, %v3971_v16, %v3970_v24  ;;  %v3973_v61 = vrot.slane %v3811_v8, 5  ;;  %v3092_v36 = vsel %vm2615_vm15, %v2239_v5, -inf  ;;  %v3106_v9 = vsel %vm2615_vm15, %v2246_v15, -inf }
 0x26d   : > { %v8004_v52 = vsel %vm3512_vm3, %v3154_v21, -inf  ;;  %v3093_v56 = vrot.slane %v3092_v36, 4  ;;  %v3099_v39 = vsel %vm2615_vm15, %v2247_v26, -inf  ;;  %v3107_v0 = vrot.slane %v3106_v9, 4 }
 0x26e   : > { %v3100_v34 = vrot.slane %v3099_v39, 4  ;;  %v3113_v46 = vsel %vm2615_vm15, %v2248_v29, -inf  ;;  %v8009_v38 = vsel %vm3913_vm6, %v3973_v61, %v3972_v53  ;;  %v3966_v32 = vsel %vm3922_vm9, %v3965_v43, %v3964_v41 }
 0x26f   : > { %v3094_v50 = vmax.f32 %v3092_v36, %v3093_v56  ;;  %v3108_v31 = vmax.f32 %v3106_v9, %v3107_v0  ;;  %v3114_v25 = vrot.slane %v3113_v46, 4  ;;  %v3967_v40 = vrot.slane %v3807_v4, 1 }
 0x270   : > { %v8015_v62 = vsel %vm3512_vm3, %v3161_v59, -inf  ;;  %v8018_v57 = vsel %vm3512_vm3, %v3168_v33, -inf  ;;  %v8021_v42 = vsel %vm3512_vm3, %v3175_v13, -inf  ;;  %v3101_v28 = vmax.f32 %v3099_v39, %v3100_v34 }
 0x271   : > { %v3095_v21 = vrot.slane %v3094_v50, 2  ;;  %v3109_v19 = vrot.slane %v3108_v31, 2  ;;  %v3115_v2 = vmax.f32 %v3113_v46, %v3114_v25  ;;  %v8024_v43 = vsel %vm3925_vm10, %v3967_v40, %v3966_v32 }
 0x272   : > { %v3102_v14 = vrot.slane %v3101_v28, 2  ;;  %v5933_v7 = vpack.i.bf16 %v8024_v43, %v7878_v55  ;;  %v4073_v4 = vrot.slane %v8024_v43, 1  ;;  %v4036_v37 = vrot.slane %v8024_v43, 7 }
 0x273   : > { %v3096_v11 = vmax.f32 %v3094_v50, %v3095_v21  ;;  %v3110_v59 = vmax.f32 %v3108_v31, %v3109_v19  ;;  %v3116_v10 = vrot.slane %v3115_v2, 2  ;;  %v2317_v22 = vcombine.high %v7819_v6, %v7819_v6 }
 0x274   : > { %v3103_v5 = vmax.f32 %v3101_v28, %v3102_v14  ;;  %5934 = vrot.lane.b32.xlu0 %v5933_v7, %s6128_s9  ;;  %v4082_v15 = vsel %vm442_vm2, %v4072_v18, %v4073_v4  ;;  %v4044_v8 = vsel %vm298_vm0, %v4035_v27, %v4036_v37  ;;  %v2324_v16 = vrot.slane %v7819_v6, %v7364_v49 }
 0x275   : > { %v3097_v33 = vrot.slane %v3096_v11, 1  ;;  %v3111_v41 = vrot.slane %v3110_v59, 1  ;;  %v3117_v24 = vmax.f32 %v3115_v2, %v3116_v10  ;;  %v8049_v13 = vsel %vm4068_vm11, %v4082_v15, 0.0 }
 0x276   : > { %v3104_v26 = vrot.slane %v3103_v5, 1  ;;  %v5938_v18 = vpack.i.bf16 %v8049_v13, %v7905_v60  ;;  %v4354_v55 = vpack.c.bf16 %v8049_v13, %v7905_v60  ;;  %v8057_v27 = vsel %vm261_vm1, %v4044_v8, 0.0 }
 0x277   : > { %v3098_v29 = vmax.f32 %v3096_v11, %v3097_v33  ;;  %v3112_v6 = vmax.f32 %v3110_v59, %v3111_v41  ;;  %v3118_v53 = vrot.slane %v3117_v24, 1  ;;  %v5943_v61 = vpack.i.bf16 %v8057_v27, %v7915_v54 }
 0x278   : > { %v3105_v36 = vmax.f32 %v3103_v5, %v3104_v26  ;;  %5939 = vrot.lane.b32.xlu0 %v5938_v18, %s6129_s10  ;;  %5158 = vmatprep.mubr.msk.bf16.mxu1 %vm3512_vm3, %v4354_v55  ;;  %v2331_v9 = vrot.slane %v2317_v22, %v7364_v49  ;;  %v2332_v56 = vcombine.high %v2324_v16, %v2324_v16  ;;  %v3232_v60 = vsel %vm2615_vm15, %v2324_v16, -inf }
 0x279   : > { %v3119_v39 = vmax.f32 %v3117_v24, %v3118_v53  ;;  %v3621_v0 = vsel %vm3512_vm3, %v3098_v29, -inf  ;;  %v3627_v34 = vsel %vm3512_vm3, %v3112_v6, -inf  ;;  %5944 = vrot.lane.b32.xlu1 %v5943_v61, %s6133_s16  ;;  %v3233_v46 = vrot.slane %v3232_v60, 4 }
 0x27a   : > { %v3623_v32 = vmax.f32 %v3621_v0, %v8004_v52  ;;  %v3624_v50 = vsel %vm3512_vm3, %v3105_v36, -inf  ;;  %v3629_v31 = vmax.f32 %v3627_v34, %v8018_v57  ;;  %v2333_v25 = vcombine.high %v2331_v9, %v2331_v9 }
 0x27b   : > { %v3626_v40 = vmax.f32 %v3624_v50, %v8015_v62  ;;  %v3630_v28 = vsel %vm3512_vm3, %v3119_v39, -inf  ;;  %v3234_v21 = vmax.f32 %v3232_v60, %v3233_v46  ;;  %v3239_v19 = vsel %vm2615_vm15, %v2332_v56, -inf }
 0x27c   : > { %v3632_v2 = vmax.f32 %v3630_v28, %v8021_v42  ;;  %v3748_v14 = vadd.f32 %v7770_v20, %v3623_v32  ;;  %v3240_v7 = vrot.slane %v3239_v19, 4  ;;  %v3246_v52 = vsel %vm2615_vm15, %v2331_v9, -inf }
 0x27d   : > { %v3235_v11 = vrot.slane %v3234_v21, 2  ;;  %v3253_v59 = vsel %vm2615_vm15, %v2333_v25, -inf  ;;  %v3247_v5 = vrot.slane %v3246_v52, 4  ;;  %v8079_v15 = vadd.f32 %v7770_v20, %v3629_v31 }
 0x27e   : > { %v3812_v10 = vmax.f32 %v3748_v14, 0.0  ;;  %v3241_v57 = vmax.f32 %v3239_v19, %v3240_v7  ;;  %v3254_v62 = vrot.slane %v3253_v59, 4  ;;  %v8082_v42 = vadd.f32 %v7770_v20, %v3626_v40 }
 0x27f   : > { %v3236_v22 = vmax.f32 %v3234_v21, %v3235_v11  ;;  %v3248_v41 = vmax.f32 %v3246_v52, %v3247_v5  ;;  %v2283_v55 = vcombine.high %v7821_v17, %v7821_v17  ;;  %v2290_v29 = vrot.slane %v7821_v17, %v7364_v49 }
 0x280   : > { %v3975_v8 = vrot.slane %v3812_v10, 4  ;;  %v3242_v16 = vrot.slane %v3241_v57, 2  ;;  %v3255_v24 = vmax.f32 %v3253_v59, %v3254_v62  ;;  %v8093_v6 = vadd.f32 %v7770_v20, %v3632_v2 }
 0x281   : > { %v3237_v33 = vrot.slane %v3236_v22, 1  ;;  %v3249_v61 = vrot.slane %v3248_v41, 2  ;;  %v2297_v56 = vrot.slane %v2283_v55, %v7364_v49  ;;  %v2298_v60 = vcombine.high %v2290_v29, %v2290_v29 }
 0x282   : > { %v8086_v26 = vsel %vm3916_vm7, %v3975_v8, %v8009_v38  ;;  %v3243_v18 = vmax.f32 %v3241_v57, %v3242_v16  ;;  %v3256_v36 = vrot.slane %v3255_v24, 2  ;;  %v3176_v38 = vsel %vm2615_vm15, %v2290_v29, -inf }
 0x283   : > { %v3238_v53 = vmax.f32 %v3236_v22, %v3237_v33  ;;  %v3250_v0 = vmax.f32 %v3248_v41, %v3249_v61  ;;  %v3177_v46 = vrot.slane %v3176_v38, 4  ;;  %v2334_v17 = vcombine.high %v7824_v30, %v7824_v30 }
 0x284   : > { %v3244_v9 = vrot.slane %v3243_v18, 1  ;;  %v3257_v34 = vmax.f32 %v3255_v24, %v3256_v36  ;;  %v2299_v50 = vcombine.high %v2297_v56, %v2297_v56  ;;  %v3183_v31 = vsel %vm2615_vm15, %v2298_v60, -inf }
 0x285   : > { %v8097_v39 = vpop.f32.mrb[28].mxu0  ;;  %v3190_v25 = vsel %vm2615_vm15, %v2297_v56, -inf  ;;  %v3251_v28 = vrot.slane %v3250_v0, 1  ;;  %v3178_v19 = vmax.f32 %v3176_v38, %v3177_v46  ;;  %v3184_v2 = vrot.slane %v3183_v31, 4 }
 0x286   : > { %v8101_v32 = vpop.f32.mrb[29].mxu0  ;;  %v3245_v20 = vmax.f32 %v3243_v18, %v3244_v9  ;;  %v3258_v21 = vrot.slane %v3257_v34, 1  ;;  %v3634_v7 = vsel %vm3512_vm3, %v3238_v53, -inf  ;;  %v3191_v11 = vrot.slane %v3190_v25, 4 }
 0x287   : > { %v8105_v40 = vpop.f32.mrb[30].mxu0  ;;  %v3197_v52 = vsel %vm2615_vm15, %v2299_v50, -inf  ;;  %v2341_v59 = vrot.slane %v7824_v30, %v7364_v49  ;;  %v3252_v10 = vmax.f32 %v3250_v0, %v3251_v28  ;;  %v3179_v22 = vrot.slane %v3178_v19, 2 }
 0x288   : > { %v8107_v14 = vpop.f32.mrb[31].mxu0  ;;  %v3637_v57 = vsel %vm3512_vm3, %v3245_v20, -inf  ;;  %v3185_v5 = vmax.f32 %v3183_v31, %v3184_v2  ;;  %v3192_v62 = vmax.f32 %v3190_v25, %v3191_v11  ;;  %v3198_v8 = vrot.slane %v3197_v52, 4 }
 0x289   : > { %v2348_v16 = vrot.slane %v2334_v17, %v7364_v49  ;;  %v2349_v33 = vcombine.high %v2341_v59, %v2341_v59  ;;  %v3259_v41 = vmax.f32 %v3257_v34, %v3258_v21  ;;  %v3640_v24 = vsel %vm3512_vm3, %v3252_v10, -inf }
 0x28a   : > { %v3180_v18 = vmax.f32 %v3178_v19, %v3179_v22  ;;  %v3186_v55 = vrot.slane %v3185_v5, 2  ;;  %v3193_v29 = vrot.slane %v3192_v62, 2  ;;  %v3199_v53 = vmax.f32 %v3197_v52, %v3198_v8 }
 0x28b   : > { %v2350_v61 = vcombine.high %v2348_v16, %v2348_v16  ;;  %v3260_v30 = vsel %vm2615_vm15, %v2341_v59, -inf  ;;  %v3267_v60 = vsel %vm2615_vm15, %v2349_v33, -inf  ;;  %v3274_v17 = vsel %vm2615_vm15, %v2348_v16, -inf }
 0x28c   : > { %v3181_v36 = vrot.slane %v3180_v18, 1  ;;  %v3187_v9 = vmax.f32 %v3185_v5, %v3186_v55  ;;  %v3261_v56 = vrot.slane %v3260_v30, 4  ;;  %v3194_v38 = vmax.f32 %v3192_v62, %v3193_v29 }
 0x28d   : > { %v3200_v0 = vrot.slane %v3199_v53, 2  ;;  %v3268_v46 = vrot.slane %v3267_v60, 4  ;;  %v3275_v31 = vrot.slane %v3274_v17, 4  ;;  %v3281_v19 = vsel %vm2615_vm15, %v2350_v61, -inf }
 0x28e   : > { %v3182_v34 = vmax.f32 %v3180_v18, %v3181_v36  ;;  %v3188_v20 = vrot.slane %v3187_v9, 1  ;;  %v3262_v50 = vmax.f32 %v3260_v30, %v3261_v56  ;;  %v3195_v25 = vrot.slane %v3194_v38, 1 }
 0x28f   : > { %v3201_v28 = vmax.f32 %v3199_v53, %v3200_v0  ;;  %v3269_v21 = vmax.f32 %v3267_v60, %v3268_v46  ;;  %v3276_v59 = vmax.f32 %v3274_v17, %v3275_v31  ;;  %v3643_v8 = vsel %vm3512_vm3, %v3259_v41, -inf }
 0x290   : > { %v3189_v2 = vmax.f32 %v3187_v9, %v3188_v20  ;;  %v3633_v11 = vsel %vm3512_vm3, %v3182_v34, -inf  ;;  %v3263_v52 = vrot.slane %v3262_v50, 2  ;;  %v3196_v10 = vmax.f32 %v3194_v38, %v3195_v25 }
 0x291   : > { %v3202_v22 = vrot.slane %v3201_v28, 1  ;;  %v3635_v5 = vmax.f32 %v3633_v11, %v3634_v7  ;;  %v3270_v62 = vrot.slane %v3269_v21, 2  ;;  %v3282_v18 = vrot.slane %v3281_v19, 4  ;;  %v8129_v7 = vld [vmem:[%s8837_s2] ss:$0 sm:$0xff] }
 0x292   : > { %v3636_v16 = vsel %vm3512_vm3, %v3189_v2, -inf  ;;  %v3264_v33 = vmax.f32 %v3262_v50, %v3263_v52  ;;  %v3639_v53 = vsel %vm3512_vm3, %v3196_v10, -inf  ;;  %v3277_v61 = vrot.slane %v3276_v59, 2 }
 0x293   : > { %v3203_v55 = vmax.f32 %v3201_v28, %v3202_v22  ;;  %v3638_v29 = vmax.f32 %v3636_v16, %v3637_v57  ;;  %v3813_v30 = vmax.f32 %v8082_v42, 0.0  ;;  %v3814_v36 = vmax.f32 %v8079_v15, 0.0 }
 0x294   : > { %v3641_v9 = vmax.f32 %v3639_v53, %v3640_v24  ;;  %v3752_v41 = vadd.f32 %v8129_v7, %v3635_v5  ;;  %v3271_v57 = vmax.f32 %v3269_v21, %v3270_v62  ;;  %v3283_v38 = vmax.f32 %v3281_v19, %v3282_v18 }
 0x295   : > { %v3642_v56 = vsel %vm3512_vm3, %v3203_v55, -inf  ;;  %v3753_v60 = vadd.f32 %v8129_v7, %v3638_v29  ;;  %v3815_v0 = vmax.f32 %v8093_v6, 0.0  ;;  %v3265_v15 = vrot.slane %v3264_v33, 1 }
 0x296   : > { %v3644_v46 = vmax.f32 %v3642_v56, %v3643_v8  ;;  %v3754_v42 = vadd.f32 %v8129_v7, %v3641_v9  ;;  %v3278_v17 = vmax.f32 %v3276_v59, %v3277_v61  ;;  %v3284_v34 = vrot.slane %v3283_v38, 2 }
 0x297   : > { %v3817_v24 = vmax.f32 %v3753_v60, 0.0  ;;  %v2300_v20 = vcombine.high %v7826_v63, %v7826_v63  ;;  %v3977_v50 = vrot.slane %v3813_v30, 3  ;;  %v3979_v31 = vrot.slane %v3814_v36, 2 }
 0x298   : > { %v3755_v25 = vadd.f32 %v8129_v7, %v3644_v46  ;;  %v3818_v28 = vmax.f32 %v3754_v42, 0.0  ;;  %v3816_v2 = vmax.f32 %v3752_v41, 0.0  ;;  %v3272_v19 = vrot.slane %v3271_v57, 1 }
 0x299   : > { %v3983_v21 = vrot.slane %v3817_v24, 7  ;;  %v2307_v6 = vrot.slane %v7826_v63, %v7364_v49  ;;  %v3266_v10 = vmax.f32 %v3264_v33, %v3265_v15  ;;  %v2314_v59 = vrot.slane %v2300_v20, %v7364_v49 }
 0x29a   : > { %v3819_v11 = vmax.f32 %v3755_v25, 0.0  ;;  %v3985_v52 = vrot.slane %v3818_v28, 6  ;;  %v3279_v5 = vrot.slane %v3278_v17, 1  ;;  %v3285_v62 = vmax.f32 %v3283_v38, %v3284_v34 }
 0x29b   : > { %v3984_v22 = vsel %vm3907_vm4, %v3983_v21, %v3816_v2  ;;  %v2315_v8 = vcombine.high %v2307_v6, %v2307_v6  ;;  %v2316_v55 = vcombine.high %v2314_v59, %v2314_v59  ;;  %v3204_v29 = vsel %vm2615_vm15, %v2307_v6, -inf }
 0x29c   : > { %v3986_v16 = vsel %vm3910_vm5, %v3985_v52, %v3984_v22  ;;  %v3987_v18 = vrot.slane %v3819_v11, 5  ;;  %v3273_v53 = vmax.f32 %v3271_v57, %v3272_v19  ;;  %v3205_v61 = vrot.slane %v3204_v29, 4 }
 0x29d   : > { %v3211_v63 = vsel %vm2615_vm15, %v2315_v8, -inf  ;;  %v3218_v30 = vsel %vm2615_vm15, %v2314_v59, -inf  ;;  %v3225_v9 = vsel %vm2615_vm15, %v2316_v55, -inf  ;;  %v3286_v56 = vrot.slane %v3285_v62, 1 }
 0x29e   : > { %v3212_v33 = vrot.slane %v3211_v63, 4  ;;  %v3219_v36 = vrot.slane %v3218_v30, 4  ;;  %v8149_v41 = vsel %vm3913_vm6, %v3987_v18, %v3986_v16  ;;  %v3206_v60 = vmax.f32 %v3204_v29, %v3205_v61 }
 0x29f   : > { %v3226_v38 = vrot.slane %v3225_v9, 4  ;;  %v3978_v46 = vsel %vm3919_vm8, %v3977_v50, %v8086_v26  ;;  %v3981_v24 = vrot.slane %v3815_v0, 1  ;;  %v3280_v34 = vmax.f32 %v3278_v17, %v3279_v5 }
 0x2a0   : > { %v3213_v42 = vmax.f32 %v3211_v63, %v3212_v33  ;;  %v3220_v57 = vmax.f32 %v3218_v30, %v3219_v36  ;;  %v3980_v15 = vsel %vm3922_vm9, %v3979_v31, %v3978_v46  ;;  %v3646_v20 = vsel %vm3512_vm3, %v3266_v10, -inf }
 0x2a1   : > { %v3207_v25 = vrot.slane %v3206_v60, 2  ;;  %v3227_v28 = vmax.f32 %v3225_v9, %v3226_v38  ;;  %v3649_v2 = vsel %vm3512_vm3, %v3273_v53, -inf  ;;  %v8157_v6 = vsel %vm3925_vm10, %v3981_v24, %v3980_v15 }
 0x2a2   : > { %v3214_v21 = vrot.slane %v3213_v42, 2  ;;  %v3221_v19 = vrot.slane %v3220_v57, 2  ;;  %v8161_v26 = vpack.i.bf16 %v8157_v6, %v8024_v43  ;;  %v4074_v0 = vrot.slane %v8157_v6, 1 }
 0x2a3   : > { %v3208_v11 = vmax.f32 %v3206_v60, %v3207_v25  ;;  %v3228_v52 = vrot.slane %v3227_v28, 2  ;;  %v3287_v17 = vmax.f32 %v3285_v62, %v3286_v56  ;;  %v4037_v10 = vrot.slane %v8157_v6, 7 }
 0x2a4   : > { %v3215_v50 = vmax.f32 %v3213_v42, %v3214_v21  ;;  %v3222_v31 = vmax.f32 %v3220_v57, %v3221_v19  ;;  %v3652_v59 = vsel %vm3512_vm3, %v3280_v34, -inf  ;;  %5949 = vrot.lane.b32.xlu1 %v8161_v26, %s6130_s13  ;;  %v4081_v8 = vsel %vm442_vm2, %v4073_v4, %v4074_v0 }
 0x2a5   : > { %v3209_v22 = vrot.slane %v3208_v11, 1  ;;  %v3229_v5 = vmax.f32 %v3227_v28, %v3228_v52  ;;  %v8176_v18 = vsel %vm4068_vm11, %v4081_v8, 0.0  ;;  %v4043_v55 = vsel %vm298_vm0, %v4036_v37, %v4037_v10 }
 0x2a6   : > { %v3216_v16 = vrot.slane %v3215_v50, 1  ;;  %v3223_v62 = vrot.slane %v3222_v31, 1  ;;  %v5953_v61 = vpack.i.bf16 %v8176_v18, %v8049_v13  ;;  %v8188_v4 = vsel %vm261_vm1, %v4043_v55, 0.0 }
 0x2a7   : > { %v3210_v29 = vmax.f32 %v3208_v11, %v3209_v22  ;;  %v3230_v53 = vrot.slane %v3229_v5, 1  ;;  %v8191_v63 = vsel %vm3512_vm3, %v3287_v17, -inf  ;;  %v5958_v43 = vpack.i.bf16 %v8188_v4, %v8057_v27 }
 0x2a8   : > { %v3217_v30 = vmax.f32 %v3215_v50, %v3216_v16  ;;  %v3224_v33 = vmax.f32 %v3222_v31, %v3223_v62  ;;  %5954 = vrot.lane.b32.xlu1 %v5953_v61, %s6131_s14  ;;  %v2385_v13 = vcombine.high %v7926_v48, %v7926_v48  ;;  %v2392_v9 = vrot.slane %v7926_v48, %v7364_v49 }
 0x2a9   : > { %v3231_v36 = vmax.f32 %v3229_v5, %v3230_v53  ;;  %v3645_v37 = vsel %vm3512_vm3, %v3210_v29, -inf  ;;  %5959 = vrot.lane.b32.xlu0 %v5958_v43, %s6132_s15  ;;  %v2351_v16 = vcombine.high %v7931_v47, %v7931_v47  ;;  %vm4326_vm12 = vcmask 654336  }
 0x2aa   : > { %v3647_v56 = vmax.f32 %v3645_v37, %v3646_v20  ;;  %v3648_v60 = vsel %vm3512_vm3, %v3217_v30, -inf  ;;  %v3651_v38 = vsel %vm3512_vm3, %v3224_v33, -inf  ;;  %v2399_v15 = vrot.slane %v2385_v13, %v7364_v49 }
 0x2ab   : > { %v3650_v46 = vmax.f32 %v3648_v60, %v3649_v2  ;;  %v3653_v42 = vmax.f32 %v3651_v38, %v3652_v59  ;;  %v8205_v57 = vsel %vm3512_vm3, %v3231_v36, -inf  ;;  %v2400_v48 = vcombine.high %v2392_v9, %v2392_v9 }
 0x2ac   : > { %v3656_v24 = vmax.f32 %v8205_v57, %v8191_v63  ;;  %v3756_v34 = vadd.f32 %v8129_v7, %v3647_v56  ;;  %v3344_v20 = vsel %vm2615_vm15, %v2392_v9, -inf  ;;  %v2401_v21 = vcombine.high %v2399_v15, %v2399_v15 }
 0x2ad   : > { %v3757_v25 = vadd.f32 %v8129_v7, %v3650_v46  ;;  %v3758_v28 = vadd.f32 %v8129_v7, %v3653_v42  ;;  %v3345_v2 = vrot.slane %v3344_v20, 4  ;;  %v3351_v11 = vsel %vm2615_vm15, %v2400_v48, -inf }
 0x2ae   : > { %v3820_v19 = vmax.f32 %v3756_v34, 0.0  ;;  %v3358_v52 = vsel %vm2615_vm15, %v2399_v15, -inf  ;;  %v3352_v59 = vrot.slane %v3351_v11, 4  ;;  %v3365_v8 = vsel %vm2615_vm15, %v2401_v21, -inf }
 0x2af   : > { %v3821_v17 = vmax.f32 %v3757_v25, 0.0  ;;  %v3822_v50 = vmax.f32 %v3758_v28, 0.0  ;;  %v3346_v31 = vmax.f32 %v3344_v20, %v3345_v2  ;;  %v3359_v5 = vrot.slane %v3358_v52, 4 }
 0x2b0   : > { %v3989_v22 = vrot.slane %v3820_v19, 4  ;;  %v3353_v29 = vmax.f32 %v3351_v11, %v3352_v59  ;;  %v3366_v33 = vrot.slane %v3365_v8, 4  ;;  %v2358_v13 = vrot.slane %v7931_v47, %v7364_v49 }
 0x2b1   : > { %v3991_v62 = vrot.slane %v3821_v17, 3  ;;  %v3347_v55 = vrot.slane %v3346_v31, 2  ;;  %v3993_v61 = vrot.slane %v3822_v50, 2  ;;  %v3360_v30 = vmax.f32 %v3358_v52, %v3359_v5 }
 0x2b2   : > { %v3990_v53 = vsel %vm3916_vm7, %v3989_v22, %v8149_v41  ;;  %v3354_v37 = vrot.slane %v3353_v29, 2  ;;  %v3367_v60 = vmax.f32 %v3365_v8, %v3366_v33  ;;  %v2365_v38 = vrot.slane %v2351_v16, %v7364_v49 }
 0x2b3   : > { %v3992_v43 = vsel %vm3919_vm8, %v3991_v62, %v3990_v53  ;;  %v3348_v36 = vmax.f32 %v3346_v31, %v3347_v55  ;;  %v3361_v56 = vrot.slane %v3360_v30, 2  ;;  %v2366_v41 = vcombine.high %v2358_v13, %v2358_v13 }
 0x2b4   : > { %v8225_v9 = vsel %vm3922_vm9, %v3993_v61, %v3992_v43  ;;  %v3355_v42 = vmax.f32 %v3353_v29, %v3354_v37  ;;  %v3288_v15 = vsel %vm2615_vm15, %v2358_v13, -inf  ;;  %v3368_v48 = vrot.slane %v3367_v60, 2 }
 0x2b5   : > { %v3349_v46 = vrot.slane %v3348_v36, 1  ;;  %v3362_v34 = vmax.f32 %v3360_v30, %v3361_v56  ;;  %v2367_v20 = vcombine.high %v2365_v38, %v2365_v38  ;;  %v3289_v25 = vrot.slane %v3288_v15, 4 }
 0x2b6   : > { %v3356_v21 = vrot.slane %v3355_v42, 1  ;;  %v3295_v47 = vsel %vm2615_vm15, %v2366_v41, -inf  ;;  %v3302_v2 = vsel %vm2615_vm15, %v2365_v38, -inf  ;;  %v3369_v11 = vmax.f32 %v3367_v60, %v3368_v48 }
 0x2b7   : > { %v3350_v28 = vmax.f32 %v3348_v36, %v3349_v46  ;;  %v3363_v19 = vrot.slane %v3362_v34, 1  ;;  %v3290_v52 = vmax.f32 %v3288_v15, %v3289_v25  ;;  %v3296_v17 = vrot.slane %v3295_v47, 4 }
 0x2b8   : > { %v3357_v50 = vmax.f32 %v3355_v42, %v3356_v21  ;;  %v3303_v31 = vrot.slane %v3302_v2, 4  ;;  %v3309_v59 = vsel %vm2615_vm15, %v2367_v20, -inf  ;;  %v3370_v5 = vrot.slane %v3369_v11, 1 }
 0x2b9   : > { %v3364_v22 = vmax.f32 %v3362_v34, %v3363_v19  ;;  %v3291_v8 = vrot.slane %v3290_v52, 2  ;;  %v3297_v16 = vmax.f32 %v3295_v47, %v3296_v17  ;;  %v3310_v55 = vrot.slane %v3309_v59, 4 }
 0x2ba   : > { %v3304_v62 = vmax.f32 %v3302_v2, %v3303_v31  ;;  %v2402_v29 = vcombine.high %v7949_v12, %v7949_v12  ;;  %v3658_v53 = vsel %vm3512_vm3, %v3350_v28, -inf  ;;  %v3661_v61 = vsel %vm3512_vm3, %v3357_v50, -inf }
 0x2bb   : > { %v3292_v30 = vmax.f32 %v3290_v52, %v3291_v8  ;;  %v3298_v33 = vrot.slane %v3297_v16, 2  ;;  %v3311_v36 = vmax.f32 %v3309_v59, %v3310_v55  ;;  %v2409_v37 = vrot.slane %v7949_v12, %v7364_v49 }
 0x2bc   : > { %v3305_v43 = vrot.slane %v3304_v62, 2  ;;  %v2416_v13 = vrot.slane %v2402_v29, %v7364_v49  ;;  %v3371_v56 = vmax.f32 %v3369_v11, %v3370_v5  ;;  %v3664_v60 = vsel %vm3512_vm3, %v3364_v22, -inf }
 0x2bd   : > { %v3293_v38 = vrot.slane %v3292_v30, 1  ;;  %v3299_v46 = vmax.f32 %v3297_v16, %v3298_v33  ;;  %v3312_v41 = vrot.slane %v3311_v36, 2  ;;  %v2417_v15 = vcombine.high %v2409_v37, %v2409_v37 }
 0x2be   : > { %v3306_v42 = vmax.f32 %v3304_v62, %v3305_v43  ;;  %v2418_v34 = vcombine.high %v2416_v13, %v2416_v13  ;;  %v3372_v25 = vsel %vm2615_vm15, %v2409_v37, -inf  ;;  %v3386_v28 = vsel %vm2615_vm15, %v2416_v13, -inf }
 0x2bf   : > { %v3294_v48 = vmax.f32 %v3292_v30, %v3293_v38  ;;  %v3300_v20 = vrot.slane %v3299_v46, 1  ;;  %v3313_v47 = vmax.f32 %v3311_v36, %v3312_v41  ;;  %v3373_v12 = vrot.slane %v3372_v25, 4 }
 0x2c0   : > { %v3307_v21 = vrot.slane %v3306_v42, 1  ;;  %v3379_v2 = vsel %vm2615_vm15, %v2417_v15, -inf  ;;  %v3387_v17 = vrot.slane %v3386_v28, 4  ;;  %v3759_v5 = vadd.f32 %v8129_v7, %v3656_v24 }
 0x2c1   : > { %v3301_v19 = vmax.f32 %v3299_v46, %v3300_v20  ;;  %v3657_v11 = vsel %vm3512_vm3, %v3294_v48, -inf  ;;  %v3380_v52 = vrot.slane %v3379_v2, 4  ;;  %v3314_v31 = vrot.slane %v3313_v47, 1 }
 0x2c2   : > { %v3308_v50 = vmax.f32 %v3306_v42, %v3307_v21  ;;  %v3659_v59 = vmax.f32 %v3657_v11, %v3658_v53  ;;  %v3374_v22 = vmax.f32 %v3372_v25, %v3373_v12  ;;  %v3667_v8 = vsel %vm3512_vm3, %v3371_v56, -inf }
 0x2c3   : > { %v3660_v16 = vsel %vm3512_vm3, %v3301_v19, -inf  ;;  %v3393_v62 = vsel %vm2615_vm15, %v2418_v34, -inf  ;;  %v3315_v55 = vmax.f32 %v3313_v47, %v3314_v31  ;;  %v3381_v33 = vmax.f32 %v3379_v2, %v3380_v52 }
 0x2c4   : > { %v3662_v29 = vmax.f32 %v3660_v16, %v3661_v61  ;;  %v3663_v30 = vsel %vm3512_vm3, %v3308_v50, -inf  ;;  %v3760_v53 = vadd.f32 %v8129_v7, %v3659_v59  ;;  %v3388_v36 = vmax.f32 %v3386_v28, %v3387_v17 }
 0x2c5   : > { %v3665_v43 = vmax.f32 %v3663_v30, %v3664_v60  ;;  %v2368_v63 = vcombine.high %v7966_v58, %v7966_v58  ;;  %v3666_v57 = vsel %vm3512_vm3, %v3315_v55, -inf  ;;  %v3375_v37 = vrot.slane %v3374_v22, 2 }
 0x2c6   : > { %v3761_v24 = vadd.f32 %v8129_v7, %v3662_v29  ;;  %v3394_v13 = vrot.slane %v3393_v62, 4  ;;  %v3823_v56 = vmax.f32 %v3759_v5, 0.0  ;;  %v3668_v38 = vmax.f32 %v3666_v57, %v3667_v8 }
 0x2c7   : > { %v3762_v61 = vadd.f32 %v8129_v7, %v3665_v43  ;;  %v3382_v42 = vrot.slane %v3381_v33, 2  ;;  %v2375_v60 = vrot.slane %v7966_v58, %v7364_v49  ;;  %v3824_v34 = vmax.f32 %v3760_v53, 0.0 }
 0x2c8   : > { %v3825_v46 = vmax.f32 %v3761_v24, 0.0  ;;  %v3395_v41 = vmax.f32 %v3393_v62, %v3394_v13  ;;  %v3763_v15 = vadd.f32 %v8129_v7, %v3668_v38  ;;  %v3389_v20 = vrot.slane %v3388_v36, 2 }
 0x2c9   : > { %v3826_v48 = vmax.f32 %v3762_v61, 0.0  ;;  %v3376_v28 = vmax.f32 %v3374_v22, %v3375_v37  ;;  %v2382_v47 = vrot.slane %v2368_v63, %v7364_v49  ;;  %v3383_v11 = vmax.f32 %v3381_v33, %v3382_v42 }
 0x2ca   : > { %v3997_v25 = vrot.slane %v3825_v46, 7  ;;  %v3396_v21 = vrot.slane %v3395_v41, 2  ;;  %v3827_v12 = vmax.f32 %v3763_v15, 0.0  ;;  %v2383_v52 = vcombine.high %v2375_v60, %v2375_v60 }
 0x2cb   : > { %v3999_v2 = vrot.slane %v3826_v48, 6  ;;  %v3995_v17 = vrot.slane %v3823_v56, 1  ;;  %v3390_v31 = vmax.f32 %v3388_v36, %v3389_v20  ;;  %v3377_v59 = vrot.slane %v3376_v28, 1 }
 0x2cc   : > { %v3998_v19 = vsel %vm3907_vm4, %v3997_v25, %v3824_v34  ;;  %v4001_v58 = vrot.slane %v3827_v12, 5  ;;  %v3397_v5 = vmax.f32 %v3395_v41, %v3396_v21  ;;  %v2384_v8 = vcombine.high %v2382_v47, %v2382_v47 }
 0x2cd   : > { %v4000_v50 = vsel %vm3910_vm5, %v3999_v2, %v3998_v19  ;;  %v3316_v16 = vsel %vm2615_vm15, %v2375_v60, -inf  ;;  %v3323_v62 = vsel %vm2615_vm15, %v2383_v52, -inf  ;;  %v3330_v55 = vsel %vm2615_vm15, %v2382_v47, -inf }
 0x2ce   : > { %v3317_v22 = vrot.slane %v3316_v16, 4  ;;  %v8268_v29 = vsel %vm3913_vm6, %v4001_v58, %v4000_v50  ;;  %v3384_v30 = vrot.slane %v3383_v11, 1  ;;  %v3324_v33 = vrot.slane %v3323_v62, 4 }
 0x2cf   : > { %v3331_v43 = vrot.slane %v3330_v55, 4  ;;  %v3337_v53 = vsel %vm2615_vm15, %v2384_v8, -inf  ;;  %v3391_v63 = vrot.slane %v3390_v31, 1  ;;  %v8273_v24 = vsel %vm3925_vm10, %v3995_v17, %v8225_v9 }
 0x2d0   : > { %v3318_v36 = vmax.f32 %v3316_v16, %v3317_v22  ;;  %v3338_v57 = vrot.slane %v3337_v53, 4  ;;  %v3325_v37 = vmax.f32 %v3323_v62, %v3324_v33  ;;  %v4075_v56 = vrot.slane %v8273_v24, 1 }
 0x2d1   : > { %v3332_v13 = vmax.f32 %v3330_v55, %v3331_v43  ;;  %v3378_v38 = vmax.f32 %v3376_v28, %v3377_v59  ;;  %v3398_v61 = vrot.slane %v3397_v5, 1  ;;  %v3385_v41 = vmax.f32 %v3383_v11, %v3384_v30 }
 0x2d2   : > { %v3319_v46 = vrot.slane %v3318_v36, 2  ;;  %v3339_v42 = vmax.f32 %v3337_v53, %v3338_v57  ;;  %v3326_v60 = vrot.slane %v3325_v37, 2  ;;  %v4080_v34 = vsel %vm442_vm2, %v4074_v0, %v4075_v56 }
 0x2d3   : > { %v3333_v15 = vrot.slane %v3332_v13, 2  ;;  %v3392_v9 = vmax.f32 %v3390_v31, %v3391_v63  ;;  %v8284_v25 = vsel %vm4068_vm11, %v4080_v34, 0.0  ;;  %v3399_v12 = vmax.f32 %v3397_v5, %v3398_v61 }
 0x2d4   : > { %v3320_v48 = vmax.f32 %v3318_v36, %v3319_v46  ;;  %v3340_v20 = vrot.slane %v3339_v42, 2  ;;  %v3327_v28 = vmax.f32 %v3325_v37, %v3326_v60  ;;  %v5973_v47 = vpack.i.bf16 %v8284_v25, %v8176_v18 }
 0x2d5   : > { %v3334_v21 = vmax.f32 %v3332_v13, %v3333_v15  ;;  %v3670_v11 = vsel %vm3512_vm3, %v3378_v38, -inf  ;;  %v3673_v52 = vsel %vm3512_vm3, %v3385_v41, -inf  ;;  %v3676_v50 = vsel %vm3512_vm3, %v3392_v9, -inf }
 0x2d6   : > { %v3321_v2 = vrot.slane %v3320_v48, 1  ;;  %v3341_v19 = vmax.f32 %v3339_v42, %v3340_v20  ;;  %v3328_v0 = vrot.slane %v3327_v28, 1  ;;  %5974 = vrot.lane.b32.xlu1 %v5973_v47, %s6129_s10  ;;  %v2453_v59 = vcombine.high %v8097_v39, %v8097_v39 }
 0x2d7   : > { %v3335_v17 = vrot.slane %v3334_v21, 1  ;;  %v5983_v5 = vpack.i.bf16 %v8273_v24, %v8157_v6  ;;  %v2460_v22 = vrot.slane %v8097_v39, %v7364_v49  ;;  %v8299_v62 = vsel %vm3512_vm3, %v3399_v12, -inf }
 0x2d8   : > { %v3322_v58 = vmax.f32 %v3320_v48, %v3321_v2  ;;  %v3342_v31 = vrot.slane %v3341_v19, 1  ;;  %v3329_v8 = vmax.f32 %v3327_v28, %v3328_v0  ;;  %v2467_v33 = vrot.slane %v2453_v59, %v7364_v49 }
 0x2d9   : > { %v3336_v16 = vmax.f32 %v3334_v21, %v3335_v17  ;;  %v2468_v36 = vcombine.high %v2460_v22, %v2460_v22  ;;  %v3456_v46 = vsel %vm2615_vm15, %v2460_v22, -inf  ;;  %v2419_v28 = vcombine.high %v8101_v32, %v8101_v32 }
 0x2da   : > { %v3343_v55 = vmax.f32 %v3341_v19, %v3342_v31  ;;  %v3669_v30 = vsel %vm3512_vm3, %v3322_v58, -inf  ;;  %v3672_v53 = vsel %vm3512_vm3, %v3329_v8, -inf  ;;  %5984 = vrot.lane.b32.xlu1 %v5983_v5, %s6128_s9  ;;  %v2469_v13 = vcombine.high %v2467_v33, %v2467_v33 }
 0x2db   : > { %v3671_v43 = vmax.f32 %v3669_v30, %v3670_v11  ;;  %v3675_v63 = vsel %vm3512_vm3, %v3336_v16, -inf  ;;  %v3674_v57 = vmax.f32 %v3672_v53, %v3673_v52  ;;  %v3463_v42 = vsel %vm2615_vm15, %v2468_v36, -inf }
 0x2dc   : > { %v3677_v37 = vmax.f32 %v3675_v63, %v3676_v50  ;;  %v3678_v39 = vsel %vm3512_vm3, %v3343_v55, -inf  ;;  %v3457_v15 = vrot.slane %v3456_v46, 4  ;;  %v3464_v34 = vrot.slane %v3463_v42, 4 }
 0x2dd   : > { %v3680_v38 = vmax.f32 %v3678_v39, %v8299_v62  ;;  %v3764_v61 = vadd.f32 %v8129_v7, %v3671_v43  ;;  %v3765_v41 = vadd.f32 %v8129_v7, %v3674_v57  ;;  %v3470_v48 = vsel %vm2615_vm15, %v2467_v33, -inf }
 0x2de   : > { %v3766_v60 = vadd.f32 %v8129_v7, %v3677_v37  ;;  %v3477_v20 = vsel %vm2615_vm15, %v2469_v13, -inf  ;;  %v3458_v12 = vmax.f32 %v3456_v46, %v3457_v15  ;;  %v3465_v2 = vmax.f32 %v3463_v42, %v3464_v34 }
 0x2df   : > { %v3828_v9 = vmax.f32 %v3764_v61, 0.0  ;;  %v3829_v21 = vmax.f32 %v3765_v41, 0.0  ;;  %v3471_v11 = vrot.slane %v3470_v48, 4  ;;  %v3478_v52 = vrot.slane %v3477_v20, 4 }
 0x2e0   : > { %v3830_v47 = vmax.f32 %v3766_v60, 0.0  ;;  %v2426_v0 = vrot.slane %v8101_v32, %v7364_v49  ;;  %v3459_v50 = vrot.slane %v3458_v12, 2  ;;  %v3466_v58 = vrot.slane %v3465_v2, 2 }
 0x2e1   : > { %v4003_v19 = vrot.slane %v3828_v9, 4  ;;  %v4005_v17 = vrot.slane %v3829_v21, 3  ;;  %v3472_v8 = vmax.f32 %v3470_v48, %v3471_v11  ;;  %v3479_v16 = vmax.f32 %v3477_v20, %v3478_v52 }
 0x2e2   : > { %v4007_v59 = vrot.slane %v3830_v47, 2  ;;  %v3460_v22 = vmax.f32 %v3458_v12, %v3459_v50  ;;  %v3467_v62 = vmax.f32 %v3465_v2, %v3466_v58  ;;  %v2433_v55 = vrot.slane %v2419_v28, %v7364_v49 }
 0x2e3   : > { %v4004_v31 = vsel %vm3916_vm7, %v4003_v19, %v8268_v29  ;;  %v3473_v33 = vrot.slane %v3472_v8, 2  ;;  %v3480_v32 = vrot.slane %v3479_v16, 2  ;;  %v2434_v43 = vcombine.high %v2426_v0, %v2426_v0 }
 0x2e4   : > { %v4006_v5 = vsel %vm3919_vm8, %v4005_v17, %v4004_v31  ;;  %v3461_v53 = vrot.slane %v3460_v22, 1  ;;  %v3468_v63 = vrot.slane %v3467_v62, 1  ;;  %v2435_v36 = vcombine.high %v2433_v55, %v2433_v55 }
 0x2e5   : > { %v8324_v30 = vsel %vm3922_vm9, %v4007_v59, %v4006_v5  ;;  %v3400_v29 = vsel %vm2615_vm15, %v2426_v0, -inf  ;;  %v3474_v57 = vmax.f32 %v3472_v8, %v3473_v33  ;;  %v3481_v37 = vmax.f32 %v3479_v16, %v3480_v32 }
 0x2e6   : > { %v3401_v39 = vrot.slane %v3400_v29, 4  ;;  %v3407_v13 = vsel %vm2615_vm15, %v2434_v43, -inf  ;;  %v3462_v61 = vmax.f32 %v3460_v22, %v3461_v53  ;;  %v3469_v46 = vmax.f32 %v3467_v62, %v3468_v63 }
 0x2e7   : > { %v3408_v42 = vrot.slane %v3407_v13, 4  ;;  %v3414_v41 = vsel %vm2615_vm15, %v2433_v55, -inf  ;;  %v3475_v60 = vrot.slane %v3474_v57, 1  ;;  %v3482_v15 = vrot.slane %v3481_v37, 1 }
 0x2e8   : > { %v3402_v34 = vmax.f32 %v3400_v29, %v3401_v39  ;;  %v3415_v9 = vrot.slane %v3414_v41, 4  ;;  %v8330_v48 = vadd.f32 %v8129_v7, %v3680_v38  ;;  %v3682_v20 = vsel %vm3512_vm3, %v3462_v61, -inf }
 0x2e9   : > { %v3409_v28 = vmax.f32 %v3407_v13, %v3408_v42  ;;  %v3421_v21 = vsel %vm2615_vm15, %v2435_v36, -inf  ;;  %v3476_v47 = vmax.f32 %v3474_v57, %v3475_v60  ;;  %v3483_v12 = vmax.f32 %v3481_v37, %v3482_v15 }
 0x2ea   : > { %v3403_v2 = vrot.slane %v3402_v34, 2  ;;  %v3416_v19 = vmax.f32 %v3414_v41, %v3415_v9  ;;  %v3422_v52 = vrot.slane %v3421_v21, 4  ;;  %v2470_v0 = vcombine.high %v8105_v40, %v8105_v40 }
 0x2eb   : > { %v3410_v11 = vrot.slane %v3409_v28, 2  ;;  %v2477_v17 = vrot.slane %v8105_v40, %v7364_v49  ;;  %v3685_v38 = vsel %vm3512_vm3, %v3469_v46, -inf  ;;  %v3688_v50 = vsel %vm3512_vm3, %v3476_v47, -inf }
 0x2ec   : > { %v3404_v58 = vmax.f32 %v3402_v34, %v3403_v2  ;;  %v3417_v31 = vrot.slane %v3416_v19, 2  ;;  %v3423_v8 = vmax.f32 %v3421_v21, %v3422_v52  ;;  %v2484_v16 = vrot.slane %v2470_v0, %v7364_v49 }
 0x2ed   : > { %v3411_v59 = vmax.f32 %v3409_v28, %v3410_v11  ;;  %v2485_v5 = vcombine.high %v2477_v17, %v2477_v17  ;;  %v3691_v22 = vsel %vm3512_vm3, %v3483_v12, -inf  ;;  %v3484_v33 = vsel %vm2615_vm15, %v2477_v17, -inf }
 0x2ee   : > { %v3405_v62 = vrot.slane %v3404_v58, 1  ;;  %v3418_v55 = vmax.f32 %v3416_v19, %v3417_v31  ;;  %v3424_v43 = vrot.slane %v3423_v8, 2  ;;  %v2486_v40 = vcombine.high %v2484_v16, %v2484_v16 }
 0x2ef   : > { %v3412_v32 = vrot.slane %v3411_v59, 1  ;;  %v3485_v53 = vrot.slane %v3484_v33, 4  ;;  %v3491_v29 = vsel %vm2615_vm15, %v2485_v5, -inf  ;;  %v3498_v57 = vsel %vm2615_vm15, %v2484_v16, -inf }
 0x2f0   : > { %v3406_v63 = vmax.f32 %v3404_v58, %v3405_v62  ;;  %v3419_v36 = vrot.slane %v3418_v55, 1  ;;  %v3425_v39 = vmax.f32 %v3423_v8, %v3424_v43  ;;  %v3492_v61 = vrot.slane %v3491_v29, 4 }
 0x2f1   : > { %v3413_v37 = vmax.f32 %v3411_v59, %v3412_v32  ;;  %v3486_v13 = vmax.f32 %v3484_v33, %v3485_v53  ;;  %v3499_v41 = vrot.slane %v3498_v57, 4  ;;  %v3505_v60 = vsel %vm2615_vm15, %v2486_v40, -inf }
 0x2f2   : > { %v3420_v46 = vmax.f32 %v3418_v55, %v3419_v36  ;;  %v3681_v42 = vsel %vm3512_vm3, %v3406_v63, -inf  ;;  %v3426_v15 = vrot.slane %v3425_v39, 1  ;;  %v3493_v12 = vmax.f32 %v3491_v29, %v3492_v61 }
 0x2f3   : > { %v3683_v34 = vmax.f32 %v3681_v42, %v3682_v20  ;;  %v3684_v9 = vsel %vm3512_vm3, %v3413_v37, -inf  ;;  %v3487_v28 = vrot.slane %v3486_v13, 2  ;;  %v3500_v2 = vmax.f32 %v3498_v57, %v3499_v41 }
 0x2f4   : > { %v3686_v21 = vmax.f32 %v3684_v9, %v3685_v38  ;;  %v3687_v47 = vsel %vm3512_vm3, %v3420_v46, -inf  ;;  %v3427_v19 = vmax.f32 %v3425_v39, %v3426_v15  ;;  %v3494_v58 = vrot.slane %v3493_v12, 2 }
 0x2f5   : > { %v3689_v11 = vmax.f32 %v3687_v47, %v3688_v50  ;;  %v3768_v52 = vadd.f32 %v8129_v7, %v3683_v34  ;;  %v3488_v0 = vmax.f32 %v3486_v13, %v3487_v28  ;;  %v3501_v31 = vrot.slane %v3500_v2, 2 }
 0x2f6   : > { %v3769_v17 = vadd.f32 %v8129_v7, %v3686_v21  ;;  %v3506_v59 = vrot.slane %v3505_v60, 4  ;;  %v3690_v20 = vsel %vm3512_vm3, %v3427_v19, -inf  ;;  %v2436_v38 = vcombine.high %v8107_v14, %v8107_v14 }
 0x2f7   : > { %v3770_v8 = vadd.f32 %v8129_v7, %v3689_v11  ;;  %v3831_v16 = vmax.f32 %v8330_v48, 0.0  ;;  %v3692_v5 = vmax.f32 %v3690_v20, %v3691_v22  ;;  %v3832_v62 = vmax.f32 %v3768_v52, 0.0 }
 0x2f8   : > { %v3833_v50 = vmax.f32 %v3769_v17, 0.0  ;;  %v3495_v33 = vmax.f32 %v3493_v12, %v3494_v58  ;;  %v3507_v32 = vmax.f32 %v3505_v60, %v3506_v59  ;;  %v2443_v43 = vrot.slane %v8107_v14, %v7364_v49 }
 0x2f9   : > { %v3834_v55 = vmax.f32 %v3770_v8, 0.0  ;;  %v3771_v40 = vadd.f32 %v8129_v7, %v3692_v5  ;;  %v3489_v63 = vrot.slane %v3488_v0, 1  ;;  %v3502_v36 = vmax.f32 %v3500_v2, %v3501_v31 }
 0x2fa   : > { %v4011_v53 = vrot.slane %v3833_v50, 7  ;;  %v3508_v57 = vrot.slane %v3507_v32, 2  ;;  %v2450_v37 = vrot.slane %v2436_v38, %v7364_v49  ;;  %v4009_v39 = vrot.slane %v3831_v16, 1 }
 0x2fb   : > { %v4013_v29 = vrot.slane %v3834_v55, 6  ;;  %v3835_v48 = vmax.f32 %v3771_v40, 0.0  ;;  %v3496_v61 = vrot.slane %v3495_v33, 1  ;;  %v2451_v46 = vcombine.high %v2443_v43, %v2443_v43 }
 0x2fc   : > { %v4012_v22 = vsel %vm3907_vm4, %v4011_v53, %v3832_v62  ;;  %v2452_v42 = vcombine.high %v2450_v37, %v2450_v37  ;;  %v3490_v14 = vmax.f32 %v3488_v0, %v3489_v63  ;;  %v3503_v60 = vrot.slane %v3502_v36, 1 }
 0x2fd   : > { %v4014_v13 = vsel %vm3910_vm5, %v4013_v29, %v4012_v22  ;;  %v4015_v41 = vrot.slane %v3835_v48, 5  ;;  %v3428_v15 = vsel %vm2615_vm15, %v2443_v43, -inf  ;;  %v3509_v34 = vmax.f32 %v3507_v32, %v3508_v57 }
 0x2fe   : > { %v3429_v9 = vrot.slane %v3428_v15, 4  ;;  %v3435_v28 = vsel %vm2615_vm15, %v2451_v46, -inf  ;;  %v3442_v21 = vsel %vm2615_vm15, %v2450_v37, -inf  ;;  %v3449_v2 = vsel %vm2615_vm15, %v2452_v42, -inf }
 0x2ff   : > { %v3436_v47 = vrot.slane %v3435_v28, 4  ;;  %v3443_v12 = vrot.slane %v3442_v21, 4  ;;  %v8367_v19 = vsel %vm3913_vm6, %v4015_v41, %v4014_v13  ;;  %v3497_v11 = vmax.f32 %v3495_v33, %v3496_v61 }
 0x300   : > { %v3430_v52 = vmax.f32 %v3428_v15, %v3429_v9  ;;  %v3450_v17 = vrot.slane %v3449_v2, 4  ;;  %v8371_v0 = vsel %vm3925_vm10, %v4009_v39, %v8324_v30  ;;  %v4038_v59 = vrot.slane %v8273_v24, 7 }
 0x301   : > { %v3437_v58 = vmax.f32 %v3435_v28, %v3436_v47  ;;  %v3444_v31 = vmax.f32 %v3442_v21, %v3443_v12  ;;  %v4039_v20 = vrot.slane %v8371_v0, 7  ;;  %v3510_v8 = vrot.slane %v3509_v34, 1 }
 0x302   : > { %v3431_v38 = vrot.slane %v3430_v52, 2  ;;  %v3451_v16 = vmax.f32 %v3449_v2, %v3450_v17  ;;  %v8377_v5 = vpack.i.bf16 %v8371_v0, %v8273_v24  ;;  %v4042_v55 = vsel %vm298_vm0, %v4037_v10, %v4038_v59  ;;  %v6040_v24 = vld [vmem:[%s8838_s3] sm:$0xff]  }
 0x303   : > { %v3438_v62 = vrot.slane %v3437_v58, 2  ;;  %v3445_v50 = vrot.slane %v3444_v31, 2  ;;  %v4041_v30 = vsel %vm298_vm0, %v4038_v59, %v4039_v20  ;;  %v8389_v43 = vsel %vm261_vm1, %v4042_v55, 0.0 }
 0x304   : > { %v3432_v33 = vmax.f32 %v3430_v52, %v3431_v38  ;;  %v3452_v32 = vrot.slane %v3451_v16, 2  ;;  %v8393_v40 = vsel %vm261_vm1, %v4041_v30, 0.0  ;;  %v3504_v53 = vmax.f32 %v3502_v36, %v3503_v60 }
 0x305   : > { %v3439_v63 = vmax.f32 %v3437_v58, %v3438_v62  ;;  %v3446_v29 = vmax.f32 %v3444_v31, %v3445_v50  ;;  %v5993_v57 = vpack.i.bf16 %v8393_v40, %v8389_v43  ;;  %v3511_v6 = vmax.f32 %v3509_v34, %v3510_v8 }
 0x306   : > { %v3433_v37 = vrot.slane %v3432_v33, 1  ;;  %v3453_v39 = vmax.f32 %v3451_v16, %v3452_v32  ;;  %v3694_v22 = vsel %vm3512_vm3, %v3490_v14, -inf  ;;  %v3697_v46 = vsel %vm3512_vm3, %v3497_v11, -inf }
 0x307   : > { %v3440_v10 = vrot.slane %v3439_v63, 1  ;;  %v3447_v48 = vrot.slane %v3446_v29, 1  ;;  %5994 = vrot.lane.b32.xlu1 %v5993_v57, %s6132_s15  ;;  %v3700_v36 = vsel %vm3512_vm3, %v3504_v53, -inf  ;;  %v3703_v60 = vsel %vm3512_vm3, %v3511_v6, -inf }
 0x308   : > { %v3434_v13 = vmax.f32 %v3432_v33, %v3433_v37  ;;  %v3454_v61 = vrot.slane %v3453_v39, 1  ;;  %v4076_v9 = vrot.slane %v8371_v0, 1  ;;  %v6134_v53 = vmov 0  }
 0x309   : > { %v3441_v42 = vmax.f32 %v3439_v63, %v3440_v10  ;;  %v3448_v41 = vmax.f32 %v3446_v29, %v3447_v48  ;;  %4445 = vmatprep.subr.bf16.mxu1 %v6134_v53  ;;  %v6041_v29 = vld [vmem:[%s8838_s3 + $0x8] sm:$0xff]   ;;  %v6042_v10 = vld [vmem:[%s8838_s3 + $0x10] sm:$0xff]   ;;  %vm4335_vm13 = vcmask 785408   ;;  %vm4344_vm14 = vcmask 916480  }
 0x30a   : > { %v3455_v15 = vmax.f32 %v3453_v39, %v3454_v61  ;;  %v3693_v34 = vsel %vm3512_vm3, %v3434_v13, -inf  ;;  %v4079_v17 = vsel %vm442_vm2, %v4075_v56, %v4076_v9  ;;  %4446 = vmatpush1.bf16.msra.mxu1 %v6040_v24  ;;  %v8881_v61 = vrot.slane %v7608_v51, 1 }
 0x30b   : > { %v3695_v28 = vmax.f32 %v3693_v34, %v3694_v22  ;;  %v3696_v21 = vsel %vm3512_vm3, %v3441_v42, -inf  ;;  %v3699_v14 = vsel %vm3512_vm3, %v3448_v41, -inf  ;;  %6004 = vrot.lane.b32.xlu1 %v8377_v5, %s6127_s8  ;;  %v8418_v59 = vsel %vm4068_vm11, %v4079_v17, 0.0  ;;  %4447 = vmatprep.subr.bf16.mxu1 %v6134_v53  ;;  %v6043_v41 = vld [vmem:[%s8838_s3 + $0x18] sm:$0xff]  }
 0x30c   : > { %v3698_v47 = vmax.f32 %v3696_v21, %v3697_v46  ;;  %v3701_v12 = vmax.f32 %v3699_v14, %v3700_v36  ;;  %v3702_v2 = vsel %vm3512_vm3, %v3455_v15, -inf  ;;  %v5988_v16 = vpack.i.bf16 %v8418_v59, %v8284_v25  ;;  %v6048_v21 = vld [vmem:[%s8838_s3 + $0x40] sm:$0xff]  }
 0x30d   : > { %v3704_v11 = vmax.f32 %v3702_v2, %v3703_v60  ;;  %v3772_v52 = vadd.f32 %v8129_v7, %v3695_v28  ;;  %v6044_v60 = vld [vmem:[%s8838_s3 + $0x20] sm:$0xff]   ;;  %v5978_v34 = vpack.i.bf16 %v8389_v43, %v8188_v4  ;;  %v6047_v28 = vld [vmem:[%s8838_s3 + $0x38] sm:$0xff]   ;;  %v5900_v2 = vpop.permute.xlu0 %5899  ;;  %vm4686_vm15 = vcmask 254976  }
 0x30e   : > { %v3773_v58 = vadd.f32 %v8129_v7, %v3698_v47  ;;  %v3774_v31 = vadd.f32 %v8129_v7, %v3701_v12  ;;  %4448 = vmatpush1.bf16.msra.mxu1 %v6041_v29  ;;  %v5905_v47 = vpop.permute.xlu1 %5904  ;;  %v5901_v24 = vunpack.i.l.bf16 %v5900_v2 }
 0x30f   : > { %v3775_v8 = vadd.f32 %v8129_v7, %v3704_v11  ;;  %v3836_v38 = vmax.f32 %v3772_v52, 0.0  ;;  %4449 = vmatprep.subr.bf16.mxu1 %v6134_v53 }
 0x310   : > { %v3837_v62 = vmax.f32 %v3773_v58, 0.0  ;;  %v3838_v50 = vmax.f32 %v3774_v31, 0.0 }
 0x311   : > { %v3839_v56 = vmax.f32 %v3775_v8, 0.0  ;;  %v4017_v30 = vrot.slane %v3836_v38, 4  ;;  %v8510_v11 = vpop.permute.xlu0 %5914 }
 0x312   : > { %v4019_v55 = vrot.slane %v3837_v62, 3  ;;  %v4021_v32 = vrot.slane %v3838_v50, 2  ;;  %4450 = vmatpush1.bf16.msra.mxu1 %v6042_v10  ;;  %v5910_v12 = vpop.permute.xlu1 %5909  ;;  %v5906_v10 = vunpack.i.l.bf16 %v5905_v47 }
 0x313   : > { %v4018_v33 = vsel %vm3916_vm7, %v4017_v30, %v8367_v19  ;;  %v4023_v63 = vrot.slane %v3839_v56, 1  ;;  %4451 = vmatprep.subr.bf16.mxu1 %v6134_v53 }
 0x314   : > { %v4020_v7 = vsel %vm3919_vm8, %v4019_v55, %v4018_v33  ;;  %v5911_v55 = vunpack.i.l.bf16 %v5910_v12  ;;  %v5902_v33 = vunpack.i.h.bf16 %v5900_v2 }
 0x315   : > { %v4022_v57 = vsel %vm3922_vm9, %v4021_v32, %v4020_v7  ;;  %v8514_v17 = vpop.permute.xlu0 %5924 }
 0x316   : > { %v4024_v6 = vsel %vm3925_vm10, %v4023_v63, %v4022_v57  ;;  %4452 = vmatpush1.bf16.msra.mxu1 %v6043_v41 }
 0x317   : > { %v4040_v37 = vrot.slane %v4024_v6, 7  ;;  %v4077_v39 = vrot.slane %v4024_v6, 1  ;;  %v6008_v19 = vpack.i.bf16 %v4024_v6, %v8371_v0  ;;  %4453 = vmatprep.subr.bf16.mxu1 %v6134_v53  ;;  %v6033_v15 = vpack.i.bf16 %v8876_v44, %v4024_v6 }
 0x318   : > { %v4291_v6 = vsel %vm3512_vm3, 0.0, %v5901_v24 }
 0x319   : > { %v4094_v48 = vsel %vm298_vm0, %v4039_v20, %v4040_v37  ;;  %v4047_v22 = vsel %vm298_vm0, %v4040_v37, %v4033_v45  ;;  %v4078_v13 = vsel %vm442_vm2, %v4076_v9, %v4077_v39  ;;  %v4096_v46 = vsel %vm442_vm2, %v4077_v39, %v8881_v61  ;;  %v6045_v9 = vld [vmem:[%s8838_s3 + $0x28] sm:$0xff]   ;;  %v5935_v31 = vpop.permute.xlu0 %5934 }
 0x31a   : > { %v4095_v0 = vsel %vm261_vm1, %v4094_v48, 0.0  ;;  %v8456_v20 = vsel %vm261_vm1, %v4047_v22, 0.0  ;;  %v8460_v36 = vsel %vm4068_vm11, %v4078_v13, 0.0  ;;  %v8464_v45 = vsel %vm4068_vm11, %v4096_v46, 0.0  ;;  %4454 = vmatpush1.bf16.msra.mxu1 %v6044_v60 }
 0x31b   : > { %v6018_v51 = vpack.i.bf16 %v4095_v0, %v8393_v40  ;;  %v5963_v1 = vpack.i.bf16 %v7909_v35, %v8456_v20  ;;  %v6023_v42 = vpack.i.bf16 %v8464_v45, %v8460_v36  ;;  %v6013_v3 = vpack.i.bf16 %v8460_v36, %v8418_v59  ;;  %4455 = vmatprep.subr.bf16.mxu1 %v6134_v53 }
 0x31c   : > { %v4358_v23 = vpack.c.bf16 %v8460_v36, %v8418_v59  ;;  %v6028_v14 = vpack.i.bf16 %v8876_v44, %v4095_v0  ;;  %vm4299_vm0 = vcmask 261120   ;;  %vm4308_vm1 = vcmask 392192  }
 0x31d   : > { %6019 = vrot.lane.b32.xlu1 %v6018_v51, %s6133_s16  ;;  %5964 = vrot.lane.b32.xlu0 %v5963_v1, %s6133_s16  ;;  %v5940_v38 = vpop.permute.xlu0 %5939  ;;  %v5912_v48 = vunpack.i.h.bf16 %v5910_v12  ;;  %v4300_v22 = vsel %vm4299_vm0, %v4291_v6, %v5911_v55  ;;  %v5916_v13 = vunpack.i.l.bf16 %v8510_v11  ;;  %v4292_v61 = vsel %vm3512_vm3, %v8456_v20, %v5902_v33 }
 0x31e   : > { %4456 = vmatpush1.bf16.msra.mxu1 %v6045_v9  ;;  %v5942_v56 = vunpack.i.h.bf16 %v5940_v38  ;;  %v5941_v30 = vunpack.i.l.bf16 %v5940_v38  ;;  %v5926_v46 = vunpack.i.l.bf16 %v8514_v17  ;;  %vm4317_vm2 = vcmask 523264  }
 0x31f   : > { %4457 = vmatprep.subr.bf16.mxu1 %v6134_v53  ;;  %v5936_v9 = vunpack.i.l.bf16 %v5935_v31  ;;  %v4360_v59 = vpack.c.bf16 %v8876_v44, %v8464_v45 }
 0x321   : > { %6024 = vrot.lane.b32.xlu1 %v6023_v42, %s6131_s14  ;;  %5969 = vrot.lane.b32.xlu0 %v8161_v26, %s6127_s8  ;;  %v6046_v26 = vld [vmem:[%s8838_s3 + $0x30] sm:$0xff]   ;;  %v5960_v57 = vpop.permute.xlu0 %5959  ;;  %s6135_s8 = smov [#allocation2]  }
 0x322   : > { %4458 = vmatpush1.bf16.msra.mxu1 %v6046_v26  ;;  %v4301_v26 = vsel %vm4299_vm0, %v4292_v61, %v5912_v48  ;;  %v5961_v38 = vunpack.i.l.bf16 %v5960_v57  ;;  %s6056_s11 = sshll.u32 %s6135_s8, 4  ;;  %s6057_s11 = int_to_ptr.vmem [resolvable:$false] %s6056_s11 }
 0x323   : > { %4459 = vmatprep.subr.bf16.mxu1 %v6134_v53 }
 0x325   : > { %6034 = vrot.lane.b32.xlu1 %v6033_v15, %s6130_s13  ;;  %5979 = vrot.lane.b32.xlu0 %v5978_v34, %s6133_s16  ;;  %v5937_v34 = vunpack.i.h.bf16 %v5935_v31  ;;  %s6058_s16 = scalar_lea.vmem %s6057_s11, 512 }
 0x326   : > { %4460 = vmatpush1.bf16.msra.mxu1 %v6047_v28 }
 0x327   : > { %4461 = vmatprep.subr.bf16.mxu1 %v6134_v53 }
 0x329   : > { %5989 = vrot.lane.b32.xlu0 %v5988_v16, %s6131_s14  ;;  %s215_s14 = sand.u32 1, %s6106_s19  }
 0x32a   : > { %4462 = vmatpush1.bf16.msra.mxu1 %v6048_v21  ;;  %s8792_s22 = scalar_lea.sflag [#allocation3], %s215_s14 }
 0x32d   : > { %5999 = vrot.lane.b32.xlu0 %v8377_v5, %s6130_s13  ;;  %v5920_v5 = vpop.permute.xlu1 %5919 }
 0x32e   : > { %v5922_v62 = vunpack.i.h.bf16 %v5920_v5  ;;  %v5921_v50 = vunpack.i.l.bf16 %v5920_v5 }
 0x330   : > { %v4293_v53 = vsel %vm3512_vm3, %v7909_v35, %v5921_v50  ;;  %v4294_v7 = vsel %vm3512_vm3, %v7915_v54, %v5922_v62  ;;  %v5917_v35 = vunpack.i.h.bf16 %v8510_v11  ;;  %v5927_v54 = vunpack.i.h.bf16 %v8514_v17 }
 0x331   : > { %6009 = vrot.lane.b32.xlu0 %v6008_v19, %s6128_s9  ;;  %v8512_v52 = vpop.permute.xlu1 %5929  ;;  %v4303_v37 = vsel %vm4299_vm0, %v4294_v7, %v5942_v56  ;;  %v4302_v39 = vsel %vm4299_vm0, %v4293_v53, %v5941_v30  ;;  %v5907_v19 = vunpack.i.h.bf16 %v5905_v47 }
 0x332   : > { %v5932_v20 = vunpack.i.h.bf16 %v8512_v52  ;;  %v5931_v28 = vunpack.i.l.bf16 %v8512_v52  ;;  %v5962_v52 = vunpack.i.h.bf16 %v5960_v57  ;;  %v4356_v57 = vpack.c.bf16 %v8284_v25, %v8176_v18 }
 0x335   : > { %6014 = vrot.lane.b32.xlu0 %v6013_v3, %s6129_s10  ;;  %v5945_v58 = vpop.permute.xlu1 %5944 }
 0x336   : > { %v5947_v63 = vunpack.i.h.bf16 %v5945_v58  ;;  %v5946_v29 = vunpack.i.l.bf16 %v5945_v58 }
 0x338   : > { %v4312_v0 = vsel %vm4308_vm1, %v4303_v37, %v5947_v63  ;;  %v4311_v51 = vsel %vm4308_vm1, %v4302_v39, %v5946_v29 }
 0x339   : > { %6029 = vrot.lane.b32.xlu0 %v6028_v14, %s6132_s15  ;;  %v8516_v8 = vpop.permute.xlu1 %5949  ;;  %v4320_v47 = vsel %vm4317_vm2, %v4311_v51, %v5936_v9  ;;  %v4321_v12 = vsel %vm4317_vm2, %v4312_v0, %v5937_v34  ;;  %s5127_s15 = sshll.u32 %s215_s14, 4 }
 0x33a   : > { %v5952_v48 = vunpack.i.h.bf16 %v8516_v8  ;;  %s8747_s17 = scalar_lea.vmem [#allocation2], %s5127_s15 }
 0x33b   : > { %s5061_s25 = sshll.u32 %s8747_s17, 4  ;;  %s8785_s25 = int_to_ptr.vmem [resolvable:$true] %s5061_s25 }
 0x33c   : > { %s6052_s7 = scalar_lea.vmem %s8785_s25, 256  ;;  %p6059_p0 = scmp.lt.s32.totalorder %s8785_s25, %s6057_s11 }
 0x33d   : > { %v5955_v16 = vpop.permute.xlu1 %5954  ;;  %p6053_p11 = scmp.ne.s32.totalorder %s8785_s25, %s6052_s7  ;;  %p6060_p1 = scmp.lt.s32.totalorder %s6058_s16, %s6052_s7 }
 0x33e   : > { %v5957_v42 = vunpack.i.h.bf16 %v5955_v16  ;;  %v5956_v3 = vunpack.i.l.bf16 %v5955_v16 }
 0x33f   : > { %p6054_p12 = pnand %p6053_p11, %p6205_p5  ;;  %p6061_p2 = por %p6060_p1, %p6059_p0 }
 0x340   : > { %v4330_v17 = vsel %vm4326_vm12, %v4321_v12, %v5957_v42  ;;  %v4329_v58 = vsel %vm4326_vm12, %v4320_v47, %v5956_v3 }
 0x341   : > { %v4339_v7 = vsel %vm4335_vm13, %v4330_v17, %v5962_v52  ;;  %v4338_v63 = vsel %vm4335_vm13, %v4329_v58, %v5961_v38  ;;  %p6055_p13 = pneg %p6054_p12 }
 0x342   : > { %v4348_v25 = vsel %vm4344_vm14, %v4339_v7, %v5952_v48 }
 0x343   : > { %p6062_p3 = pnand %p6061_p2, %p6055_p13 }
 0x348   : > { %v8518_v32 = vpop.permute.xlu1 %5974 }
 0x34c   : > { %v8536_v41 = vpop.permute.xlu1 %5984 }
 0x379   : > { %v5995_v31 = vpop.permute.xlu1 %5994 }
 0x37d   : > { %v6005_v6 = vpop.permute.xlu1 %6004 }
 0x37e   : > { %v6007_v47 = vunpack.i.h.bf16 %v6005_v6 }
 0x38f   : > { %v5965_v1 = vpop.permute.xlu0 %5964  ;;  %v6020_v61 = vpop.permute.xlu1 %6019 }
 0x390   : > { %v5967_v60 = vunpack.i.h.bf16 %v5965_v1  ;;  %v5966_v15 = vunpack.i.l.bf16 %v5965_v1  ;;  %v5986_v1 = vunpack.i.l.bf16 %v8536_v41 }
 0x392   : > { %v4309_v21 = vsel %vm4308_vm1, %v4300_v22, %v5966_v15  ;;  %v4310_v14 = vsel %vm4308_vm1, %v4301_v26, %v5967_v60  ;;  %v5951_v22 = vunpack.i.l.bf16 %v8516_v8 }
 0x393   : > { %v4318_v2 = vsel %vm4317_vm2, %v4309_v21, %v5906_v10  ;;  %v4319_v5 = vsel %vm4317_vm2, %v4310_v14, %v5907_v19  ;;  %v5970_v11 = vpop.permute.xlu0 %5969  ;;  %v5996_v21 = vunpack.i.l.bf16 %v5995_v31  ;;  %v6025_v12 = vpop.permute.xlu1 %6024 }
 0x394   : > { %v4327_v16 = vsel %vm4326_vm12, %v4318_v2, %v5926_v46  ;;  %v4328_v62 = vsel %vm4326_vm12, %v4319_v5, %v5927_v54  ;;  %v5972_v50 = vunpack.i.h.bf16 %v5970_v11  ;;  %v5971_v24 = vunpack.i.l.bf16 %v5970_v11 }
 0x395   : > { %v4336_v56 = vsel %vm4335_vm13, %v4327_v16, %v5931_v28  ;;  %v4337_v30 = vsel %vm4335_vm13, %v4328_v62, %v5932_v20  ;;  %v5997_v28 = vunpack.i.h.bf16 %v5995_v31  ;;  %v4298_v31 = vsel %vm3512_vm3, %v8393_v40, %v6007_v47 }
 0x396   : > { %v4345_v33 = vsel %vm4344_vm14, %v4336_v56, %v5916_v13  ;;  %v4346_v53 = vsel %vm4344_vm14, %v4337_v30, %v5917_v35  ;;  %v4296_v37 = vsel %vm3512_vm3, %v8188_v4, %v5972_v50  ;;  %v4295_v39 = vsel %vm3512_vm3, %v8057_v27, %v5971_v24 }
 0x397   : > { %v5980_v55 = vpop.permute.xlu0 %5979  ;;  %v4353_v29 = vpack.c.bf16 %v4346_v53, %v4345_v33  ;;  %v5977_v35 = vunpack.i.h.bf16 %v8518_v32  ;;  %v5976_v13 = vunpack.i.l.bf16 %v8518_v32  ;;  %v4347_v27 = vsel %vm4344_vm14, %v4338_v63, %v5951_v22  ;;  %v6035_v50 = vpop.permute.xlu1 %6034 }
 0x398   : > { %v5982_v19 = vunpack.i.h.bf16 %v5980_v55  ;;  %v5981_v10 = vunpack.i.l.bf16 %v5980_v55  ;;  %v5987_v32 = vunpack.i.h.bf16 %v8536_v41  ;;  %v4355_v15 = vpack.c.bf16 %v4348_v25, %v4347_v27 }
 0x399   : > { %4478 = vmatmul.mubr.bf16.vlgmr.msra.gmra.mrb[0].mxu1 %v4353_v29  ;;  %v4304_v18 = vsel %vm4299_vm0, %v4295_v39, %v5976_v13  ;;  %v4305_v4 = vsel %vm4299_vm0, %v4296_v37, %v5977_v35  ;;  %v6006_v41 = vunpack.i.l.bf16 %v6005_v6  ;;  %v6021_v16 = vunpack.i.l.bf16 %v6020_v61 }
 0x39a   : > { %5159 = vmatprep.mubr.msk.bf16.mxu1 %vm3512_vm3, %v4356_v57  ;;  %v4313_v46 = vsel %vm4308_vm1, %v4304_v18, %v5981_v10  ;;  %v4314_v8 = vsel %vm4308_vm1, %v4305_v4, %v5982_v19  ;;  %v6027_v33 = vunpack.i.h.bf16 %v6025_v12  ;;  %v6026_v40 = vunpack.i.l.bf16 %v6025_v12 }
 0x39b   : > { %v5990_v54 = vpop.permute.xlu0 %5989  ;;  %v4322_v3 = vsel %vm4317_vm2, %v4313_v46, %v5986_v1  ;;  %v4323_v60 = vsel %vm4317_vm2, %v4314_v8, %v5987_v32  ;;  %v4297_v36 = vsel %vm3512_vm3, %v8389_v43, %v6006_v41  ;;  %v6037_v57 = vunpack.i.h.bf16 %v6035_v50 }
 0x39c   : > { %v5992_v0 = vunpack.i.h.bf16 %v5990_v54  ;;  %v5991_v51 = vunpack.i.l.bf16 %v5990_v54  ;;  %v6036_v6 = vunpack.i.l.bf16 %v6035_v50 }
 0x39e   : > { %v4331_v34 = vsel %vm4326_vm12, %v4322_v3, %v5991_v51  ;;  %v4332_v9 = vsel %vm4326_vm12, %v4323_v60, %v5992_v0 }
 0x39f   : > { %v6000_v42 = vpop.permute.xlu0 %5999  ;;  %v4340_v2 = vsel %vm4335_vm13, %v4331_v34, %v5996_v21  ;;  %v4341_v5 = vsel %vm4335_vm13, %v4332_v9, %v5997_v28 }
 0x3a0   : > { %v6002_v26 = vunpack.i.h.bf16 %v6000_v42  ;;  %v6001_v20 = vunpack.i.l.bf16 %v6000_v42 }
 0x3a1   : > { %4486 = vmatmul.mubr.bf16.gmra.mrb[4].mxu1 %v4355_v15 }
 0x3a2   : > { %5160 = vmatprep.mubr.msk.bf16.mxu1 %vm3512_vm3, %v4358_v23  ;;  %v4349_v11 = vsel %vm4344_vm14, %v4340_v2, %v6001_v20  ;;  %v4350_v17 = vsel %vm4344_vm14, %v4341_v5, %v6002_v26  ;;  %v6022_v23 = vunpack.i.h.bf16 %v6020_v61 }
 0x3a3   : > { %v6010_v14 = vpop.permute.xlu0 %6009  ;;  %v4357_v62 = vpack.c.bf16 %v4350_v17, %v4349_v11 }
 0x3a4   : > { %v6012_v24 = vunpack.i.h.bf16 %v6010_v14  ;;  %v6011_v56 = vunpack.i.l.bf16 %v6010_v14 }
 0x3a7   : > { %v6015_v58 = vpop.permute.xlu0 %6014 }
 0x3a8   : > { %v6017_v52 = vunpack.i.h.bf16 %v6015_v58  ;;  %v6016_v38 = vunpack.i.l.bf16 %v6015_v58 }
 0x3a9   : > { %4494 = vmatmul.mubr.bf16.gmra.mrb[8].mxu1 %v4357_v62 }
 0x3aa   : > { %v4307_v30 = vsel %vm4299_vm0, %v4298_v31, %v6017_v52  ;;  %v4306_v55 = vsel %vm4299_vm0, %v4297_v36, %v6016_v38  ;;  %5161 = vmatprep.mubr.msk.bf16.mxu1 %vm3512_vm3, %v4360_v59  ;;  %vm5042_vm3 = vcmask 257024  }
 0x3ab   : > { %v4316_v53 = vsel %vm4308_vm1, %v4307_v30, %v6022_v23  ;;  %v4315_v7 = vsel %vm4308_vm1, %v4306_v55, %v6021_v16  ;;  %v6030_v44 = vpop.permute.xlu0 %6029 }
 0x3ac   : > { %v6032_v43 = vunpack.i.h.bf16 %v6030_v44  ;;  %v6031_v45 = vunpack.i.l.bf16 %v6030_v44  ;;  %v4324_v63 = vsel %vm4317_vm2, %v4315_v7, %v6011_v56  ;;  %v4325_v29 = vsel %vm4317_vm2, %v4316_v53, %v6012_v24 }
 0x3ad   : > { %v4333_v37 = vsel %vm4326_vm12, %v4324_v63, %v6026_v40  ;;  %v4334_v39 = vsel %vm4326_vm12, %v4325_v29, %v6027_v33 }
 0x3ae   : > { %v4342_v19 = vsel %vm4335_vm13, %v4333_v37, %v6031_v45  ;;  %v4343_v10 = vsel %vm4335_vm13, %v4334_v39, %v6032_v43 }
 0x3af   : > { %v4351_v48 = vsel %vm4344_vm14, %v4342_v19, %v6036_v6  ;;  %v4352_v22 = vsel %vm4344_vm14, %v4343_v10, %v6037_v57 }
 0x3b0   : > { %v4359_v35 = vpack.c.bf16 %v4352_v22, %v4351_v48 }
 0x3b2   : > { %4502 = vmatmul.mubr.bf16.gmra.mrb[12].mxu1 %v4359_v35 }
 0x46c   : > { %v4479_v13 = vpop.f32.mrb[0].mxu1 }
 0x46d   : > { %v4518_v54 = vcombine.high %v4479_v13, %v4479_v13  ;;  %v4525_v18 = vrot.slane %v4479_v13, %v7364_v49  ;;  %v4481_v4 = vpop.f32.mrb[1].mxu1 }
 0x46e   : > { %v4482_v27 = vpop.f32.mrb[2].mxu1 }
 0x46f   : > { %v4532_v25 = vrot.slane %v4518_v54, %v7364_v49  ;;  %v4533_v61 = vcombine.high %v4525_v18, %v4525_v18  ;;  %v4687_v46 = vsel %vm4686_vm15, %v4525_v18, -inf  ;;  %v4535_v8 = vcombine.high %v4482_v27, %v4482_v27  ;;  %v4484_v0 = vpop.f32.mrb[3].mxu1 }
 0x470   : > { %v4688_v51 = vrot.slane %v4687_v46, 4  ;;  %v4542_v32 = vrot.slane %v4482_v27, %v7364_v49 }
 0x471   : > { %v4534_v1 = vcombine.high %v4532_v25, %v4532_v25  ;;  %v4694_v42 = vsel %vm4686_vm15, %v4533_v61, -inf  ;;  %v4701_v3 = vsel %vm4686_vm15, %v4532_v25, -inf  ;;  %v4549_v60 = vrot.slane %v4535_v8, %v7364_v49 }
 0x472   : > { %v4689_v15 = vmax.f32 %v4687_v46, %v4688_v51  ;;  %v4695_v34 = vrot.slane %v4694_v42, 4  ;;  %v4702_v9 = vrot.slane %v4701_v3, 4  ;;  %v4550_v26 = vcombine.high %v4542_v32, %v4542_v32 }
 0x473   : > { %v4708_v20 = vsel %vm4686_vm15, %v4534_v1, -inf  ;;  %v4551_v28 = vcombine.high %v4549_v60, %v4549_v60  ;;  %v4715_v21 = vsel %vm4686_vm15, %v4542_v32, -inf  ;;  %v4729_v14 = vsel %vm4686_vm15, %v4549_v60, -inf }
 0x474   : > { %v4690_v47 = vrot.slane %v4689_v15, 2  ;;  %v4696_v12 = vmax.f32 %v4694_v42, %v4695_v34  ;;  %v4703_v41 = vmax.f32 %v4701_v3, %v4702_v9  ;;  %v4709_v2 = vrot.slane %v4708_v20, 4  ;;  %v4487_v5 = vpop.f32.mrb[4].mxu1 }
 0x475   : > { %v4716_v11 = vrot.slane %v4715_v21, 4  ;;  %v4722_v17 = vsel %vm4686_vm15, %v4550_v26, -inf  ;;  %v4730_v58 = vrot.slane %v4729_v14, 4  ;;  %v4736_v31 = vsel %vm4686_vm15, %v4551_v28, -inf  ;;  %v4489_v52 = vpop.f32.mrb[5].mxu1 }
 0x476   : > { %v4691_v38 = vmax.f32 %v4689_v15, %v4690_v47  ;;  %v4697_v59 = vrot.slane %v4696_v12, 2  ;;  %v4704_v36 = vrot.slane %v4703_v41, 2  ;;  %v4710_v23 = vmax.f32 %v4708_v20, %v4709_v2  ;;  %v8619_v16 = vpop.f32.mrb[6].mxu1 }
 0x477   : > { %v4717_v62 = vmax.f32 %v4715_v21, %v4716_v11  ;;  %v4723_v50 = vrot.slane %v4722_v17, 4  ;;  %v4731_v24 = vmax.f32 %v4729_v14, %v4730_v58  ;;  %v4737_v56 = vrot.slane %v4736_v31, 4  ;;  %v4492_v30 = vpop.f32.mrb[7].mxu1 }
 0x478   : > { %v4692_v55 = vrot.slane %v4691_v38, 1  ;;  %v4698_v33 = vmax.f32 %v4696_v12, %v4697_v59  ;;  %v4705_v40 = vmax.f32 %v4703_v41, %v4704_v36  ;;  %v4711_v53 = vrot.slane %v4710_v23, 2 }
 0x479   : > { %v4718_v7 = vrot.slane %v4717_v62, 2  ;;  %v4724_v44 = vmax.f32 %v4722_v17, %v4723_v50  ;;  %v4732_v43 = vrot.slane %v4731_v24, 2  ;;  %v4738_v45 = vmax.f32 %v4736_v31, %v4737_v56 }
 0x47a   : > { %v4693_v63 = vmax.f32 %v4691_v38, %v4692_v55  ;;  %v4699_v29 = vrot.slane %v4698_v33, 1  ;;  %v4706_v57 = vrot.slane %v4705_v40, 1  ;;  %v4712_v6 = vmax.f32 %v4710_v23, %v4711_v53 }
 0x47b   : > { %v4719_v37 = vmax.f32 %v4717_v62, %v4718_v7  ;;  %v4725_v39 = vrot.slane %v4724_v44, 2  ;;  %v4733_v19 = vmax.f32 %v4731_v24, %v4732_v43  ;;  %v4739_v10 = vrot.slane %v4738_v45, 2 }
 0x47c   : > { %v4700_v48 = vmax.f32 %v4698_v33, %v4699_v29  ;;  %v4707_v22 = vmax.f32 %v4705_v40, %v4706_v57  ;;  %v4713_v35 = vrot.slane %v4712_v6, 1  ;;  %v8621_v13 = vpop.f32.mrb[8].mxu1  ;;  %v4911_v46 = vsel %vm4299_vm0, %v4693_v63, -inf }
 0x47d   : > { %v4720_v54 = vrot.slane %v4719_v37, 1  ;;  %v4726_v18 = vmax.f32 %v4724_v44, %v4725_v39  ;;  %v4734_v4 = vrot.slane %v4733_v19, 1  ;;  %v4740_v27 = vmax.f32 %v4738_v45, %v4739_v10  ;;  %v4497_v25 = vpop.f32.mrb[9].mxu1 }
 0x47e   : > { %v4714_v61 = vmax.f32 %v4712_v6, %v4713_v35  ;;  %v4914_v8 = vsel %vm4299_vm0, %v4700_v48, -inf  ;;  %v4552_v0 = vcombine.high %v4487_v5, %v4487_v5  ;;  %v8625_v51 = vpop.f32.mrb[10].mxu1  ;;  %v4917_v15 = vsel %vm4299_vm0, %v4707_v22, -inf }
 0x47f   : > { %v4721_v32 = vmax.f32 %v4719_v37, %v4720_v54  ;;  %v4727_v1 = vrot.slane %v4726_v18, 1  ;;  %v4735_v42 = vmax.f32 %v4733_v19, %v4734_v4  ;;  %v4741_v3 = vrot.slane %v4740_v27, 1  ;;  %v4500_v60 = vpop.f32.mrb[11].mxu1 }
 0x480   : > { %v8629_v34 = vsel %vm4299_vm0, %v4714_v61, -inf  ;;  %v4559_v9 = vrot.slane %v4487_v5, %v7364_v49  ;;  %v4566_v26 = vrot.slane %v4552_v0, %v7364_v49  ;;  %v8642_v5 = vld [vmem:[%s8839_s4] ss:$0 sm:$0xff]  ;;  %v4569_v40 = vcombine.high %v8619_v16, %v8619_v16 }
 0x481   : > { %v4728_v20 = vmax.f32 %v4726_v18, %v4727_v1  ;;  %v4742_v28 = vmax.f32 %v4740_v27, %v4741_v3  ;;  %v4912_v21 = vsel %vm4299_vm0, %v4721_v32, -inf  ;;  %v4918_v14 = vsel %vm4299_vm0, %v4735_v42, -inf }
 0x482   : > { %v4913_v47 = vmax.f32 %v4911_v46, %v4912_v21  ;;  %v4919_v12 = vmax.f32 %v4917_v15, %v4918_v14  ;;  %v4567_v41 = vcombine.high %v4559_v9, %v4559_v9  ;;  %v4568_v2 = vcombine.high %v4566_v26, %v4566_v26 }
 0x483   : > { %v4915_v11 = vsel %vm4299_vm0, %v4728_v20, -inf  ;;  %v8637_v17 = vsel %vm4299_vm0, %v4742_v28, -inf  ;;  %v4743_v58 = vsel %vm4686_vm15, %v4559_v9, -inf  ;;  %v4757_v31 = vsel %vm4686_vm15, %v4566_v26, -inf }
 0x484   : > { %v4916_v52 = vmax.f32 %v4914_v8, %v4915_v11  ;;  %v4922_v38 = vmax.f32 %v8629_v34, %v8637_v17  ;;  %v4968_v59 = vadd.f32 %v8642_v5, %v4919_v12  ;;  %v4744_v23 = vrot.slane %v4743_v58, 4 }
 0x485   : > { %v8649_v36 = vpop.f32.mrb[12].mxu1  ;;  %v4750_v62 = vsel %vm4686_vm15, %v4567_v41, -inf  ;;  %v4758_v50 = vrot.slane %v4757_v31, 4  ;;  %v4764_v24 = vsel %vm4686_vm15, %v4568_v2, -inf  ;;  %v4966_v30 = vadd.f32 %v8642_v5, %v4913_v47 }
 0x486   : > { %v4505_v56 = vpop.f32.mrb[13].mxu1  ;;  %v4967_v55 = vadd.f32 %v8642_v5, %v4916_v52  ;;  %v4984_v33 = vmax.f32 %v4968_v59, 0.0  ;;  %v4745_v7 = vmax.f32 %v4743_v58, %v4744_v23  ;;  %v4751_v44 = vrot.slane %v4750_v62, 4 }
 0x487   : > { %v8657_v53 = vpop.f32.mrb[14].mxu1  ;;  %v4759_v43 = vmax.f32 %v4757_v31, %v4758_v50  ;;  %v4765_v45 = vrot.slane %v4764_v24, 4  ;;  %v4576_v6 = vrot.slane %v8619_v16, %v7364_v49  ;;  %v4982_v48 = vmax.f32 %v4966_v30, 0.0 }
 0x488   : > { %v4508_v63 = vpop.f32.mrb[15].mxu1  ;;  %v4983_v29 = vmax.f32 %v4967_v55, 0.0  ;;  %v5016_v57 = vrot.slane %v4984_v33, 6  ;;  %v4746_v37 = vrot.slane %v4745_v7, 2  ;;  %v4752_v39 = vmax.f32 %v4750_v62, %v4751_v44 }
 0x489   : > { %v4760_v19 = vrot.slane %v4759_v43, 2  ;;  %v4766_v10 = vmax.f32 %v4764_v24, %v4765_v45  ;;  %v4583_v35 = vrot.slane %v4569_v40, %v7364_v49  ;;  %v4584_v54 = vcombine.high %v4576_v6, %v4576_v6 }
 0x48a   : > { %v5014_v22 = vrot.slane %v4983_v29, 7  ;;  %v4747_v18 = vmax.f32 %v4745_v7, %v4746_v37  ;;  %v4753_v4 = vrot.slane %v4752_v39, 2  ;;  %v4771_v8 = vsel %vm4686_vm15, %v4576_v6, -inf }
 0x48b   : > { %v4761_v27 = vmax.f32 %v4759_v43, %v4760_v19  ;;  %v4767_v25 = vrot.slane %v4766_v10, 2  ;;  %v4585_v46 = vcombine.high %v4583_v35, %v4583_v35  ;;  %v4778_v16 = vsel %vm4686_vm15, %v4584_v54, -inf }
 0x48c   : > { %v5015_v61 = vsel %vm3907_vm4, %v5014_v22, %v4982_v48  ;;  %v4748_v32 = vrot.slane %v4747_v18, 1  ;;  %v4754_v1 = vmax.f32 %v4752_v39, %v4753_v4  ;;  %v4772_v60 = vrot.slane %v4771_v8, 4 }
 0x48d   : > { %v8666_v0 = vsel %vm3910_vm5, %v5016_v57, %v5015_v61  ;;  %v4762_v42 = vrot.slane %v4761_v27, 1  ;;  %v4768_v3 = vmax.f32 %v4766_v10, %v4767_v25  ;;  %v4779_v15 = vrot.slane %v4778_v16, 4 }
 0x48e   : > { %v4785_v9 = vsel %vm4686_vm15, %v4583_v35, -inf  ;;  %v4749_v26 = vmax.f32 %v4747_v18, %v4748_v32  ;;  %v4755_v20 = vrot.slane %v4754_v1, 1  ;;  %v4773_v47 = vmax.f32 %v4771_v8, %v4772_v60 }
 0x48f   : > { %v4763_v28 = vmax.f32 %v4761_v27, %v4762_v42  ;;  %v4786_v21 = vrot.slane %v4785_v9, 4  ;;  %v4769_v14 = vrot.slane %v4768_v3, 1  ;;  %v4780_v12 = vmax.f32 %v4778_v16, %v4779_v15 }
 0x490   : > { %v4792_v41 = vsel %vm4686_vm15, %v4585_v46, -inf  ;;  %v4756_v2 = vmax.f32 %v4754_v1, %v4755_v20  ;;  %v4923_v58 = vsel %vm4299_vm0, %v4749_v26, -inf  ;;  %v4774_v31 = vrot.slane %v4773_v47, 2 }
 0x491   : > { %v4787_v11 = vmax.f32 %v4785_v9, %v4786_v21  ;;  %v4781_v52 = vrot.slane %v4780_v12, 2  ;;  %v4793_v59 = vrot.slane %v4792_v41, 4  ;;  %v4929_v23 = vsel %vm4299_vm0, %v4763_v28, -inf }
 0x492   : > { %v4586_v50 = vcombine.high %v8621_v13, %v8621_v13  ;;  %v4593_v24 = vrot.slane %v8621_v13, %v7364_v49  ;;  %v4770_v56 = vmax.f32 %v4768_v3, %v4769_v14  ;;  %v4775_v30 = vmax.f32 %v4773_v47, %v4774_v31 }
 0x493   : > { %v4788_v62 = vrot.slane %v4787_v11, 2  ;;  %v4782_v55 = vmax.f32 %v4780_v12, %v4781_v52  ;;  %v4794_v33 = vmax.f32 %v4792_v41, %v4793_v59  ;;  %v4926_v35 = vsel %vm4299_vm0, %v4756_v2, -inf }
 0x494   : > { %v4600_v7 = vrot.slane %v4586_v50, %v7364_v49  ;;  %v4601_v44 = vcombine.high %v4593_v24, %v4593_v24  ;;  %v4799_v43 = vsel %vm4686_vm15, %v4593_v24, -inf  ;;  %v4776_v45 = vrot.slane %v4775_v30, 1 }
 0x495   : > { %v4789_v40 = vmax.f32 %v4787_v11, %v4788_v62  ;;  %v4783_v63 = vrot.slane %v4782_v55, 1  ;;  %v4795_v29 = vrot.slane %v4794_v33, 2  ;;  %v4800_v57 = vrot.slane %v4799_v43, 4 }
 0x496   : > { %v4602_v37 = vcombine.high %v4600_v7, %v4600_v7  ;;  %v4806_v39 = vsel %vm4686_vm15, %v4601_v44, -inf  ;;  %v4813_v13 = vsel %vm4686_vm15, %v4600_v7, -inf  ;;  %v4777_v19 = vmax.f32 %v4775_v30, %v4776_v45 }
 0x497   : > { %v4790_v6 = vrot.slane %v4789_v40, 1  ;;  %v4784_v10 = vmax.f32 %v4782_v55, %v4783_v63  ;;  %v4796_v48 = vmax.f32 %v4794_v33, %v4795_v29  ;;  %v4801_v22 = vmax.f32 %v4799_v43, %v4800_v57 }
 0x498   : > { %v4807_v18 = vrot.slane %v4806_v39, 4  ;;  %v4814_v4 = vrot.slane %v4813_v13, 4  ;;  %v4924_v25 = vsel %vm4299_vm0, %v4777_v19, -inf  ;;  %v4820_v1 = vsel %vm4686_vm15, %v4602_v37, -inf }
 0x499   : > { %v4791_v54 = vmax.f32 %v4789_v40, %v4790_v6  ;;  %v4797_v27 = vrot.slane %v4796_v48, 1  ;;  %v4927_v61 = vsel %vm4299_vm0, %v4784_v10, -inf  ;;  %v4802_v46 = vrot.slane %v4801_v22, 2 }
 0x49a   : > { %v4925_v8 = vmax.f32 %v4923_v58, %v4924_v25  ;;  %v4928_v16 = vmax.f32 %v4926_v35, %v4927_v61  ;;  %v4808_v15 = vmax.f32 %v4806_v39, %v4807_v18  ;;  %v4815_v20 = vmax.f32 %v4813_v13, %v4814_v4 }
 0x49b   : > { %v4930_v32 = vsel %vm4299_vm0, %v4791_v54, -inf  ;;  %v4798_v42 = vmax.f32 %v4796_v48, %v4797_v27  ;;  %v4803_v60 = vmax.f32 %v4801_v22, %v4802_v46  ;;  %v4932_v28 = vsel %vm4299_vm0, %v4770_v56, -inf }
 0x49c   : > { %v4931_v3 = vmax.f32 %v4929_v23, %v4930_v32  ;;  %v4970_v9 = vadd.f32 %v8642_v5, %v4925_v8  ;;  %v4971_v26 = vadd.f32 %v8642_v5, %v4928_v16  ;;  %v4821_v47 = vrot.slane %v4820_v1, 4 }
 0x49d   : > { %v4933_v21 = vsel %vm4299_vm0, %v4798_v42, -inf  ;;  %v8694_v2 = vadd.f32 %v8642_v5, %v4922_v38  ;;  %v4804_v58 = vrot.slane %v4803_v60, 1  ;;  %v4809_v31 = vrot.slane %v4808_v15, 2 }
 0x49e   : > { %v4972_v14 = vadd.f32 %v8642_v5, %v4931_v3  ;;  %v4934_v12 = vmax.f32 %v4932_v28, %v4933_v21  ;;  %v4987_v41 = vmax.f32 %v4971_v26, 0.0  ;;  %v4986_v52 = vmax.f32 %v4970_v9, 0.0 }
 0x49f   : > { %v4816_v23 = vrot.slane %v4815_v20, 2  ;;  %v4603_v62 = vcombine.high %v8625_v51, %v8625_v51  ;;  %v4822_v24 = vmax.f32 %v4820_v1, %v4821_v47  ;;  %v4610_v30 = vrot.slane %v8625_v51, %v7364_v49 }
 0x4a0   : > { %v4988_v11 = vmax.f32 %v4972_v14, 0.0  ;;  %v5020_v59 = vrot.slane %v4987_v41, 7  ;;  %v4985_v34 = vmax.f32 %v8694_v2, 0.0  ;;  %v4810_v38 = vmax.f32 %v4808_v15, %v4809_v31 }
 0x4a1   : > { %v4617_v55 = vrot.slane %v4603_v62, %v7364_v49  ;;  %v4805_v33 = vmax.f32 %v4803_v60, %v4804_v58  ;;  %v4817_v40 = vmax.f32 %v4815_v20, %v4816_v23  ;;  %v4618_v7 = vcombine.high %v4610_v30, %v4610_v30 }
 0x4a2   : > { %v5022_v50 = vrot.slane %v4988_v11, 6  ;;  %v5021_v56 = vsel %vm3907_vm4, %v5020_v59, %v4986_v52  ;;  %v4827_v44 = vsel %vm4686_vm15, %v4610_v30, -inf  ;;  %v8708_v43 = vadd.f32 %v8642_v5, %v4934_v12 }
 0x4a3   : > { %v4823_v45 = vrot.slane %v4822_v24, 2  ;;  %v4619_v63 = vcombine.high %v4617_v55, %v4617_v55  ;;  %v4828_v29 = vrot.slane %v4827_v44, 4  ;;  %v4834_v51 = vsel %vm4686_vm15, %v4618_v7, -inf }
 0x4a4   : > { %v8703_v17 = vsel %vm3910_vm5, %v5022_v50, %v5021_v56  ;;  %v4841_v57 = vsel %vm4686_vm15, %v4617_v55, -inf  ;;  %v4620_v6 = vcombine.high %v8649_v36, %v8649_v36  ;;  %v4627_v37 = vrot.slane %v8649_v36, %v7364_v49 }
 0x4a5   : > { %v4811_v39 = vrot.slane %v4810_v38, 1  ;;  %v4829_v13 = vmax.f32 %v4827_v44, %v4828_v29  ;;  %v4835_v19 = vrot.slane %v4834_v51, 4  ;;  %v4842_v10 = vrot.slane %v4841_v57, 4 }
 0x4a6   : > { %v4818_v48 = vrot.slane %v4817_v40, 1  ;;  %v4848_v22 = vsel %vm4686_vm15, %v4619_v63, -inf  ;;  %v4634_v35 = vrot.slane %v4620_v6, %v7364_v49  ;;  %v4635_v54 = vcombine.high %v4627_v37, %v4627_v37 }
 0x4a7   : > { %v4830_v18 = vrot.slane %v4829_v13, 2  ;;  %v4836_v4 = vmax.f32 %v4834_v51, %v4835_v19  ;;  %v4843_v27 = vmax.f32 %v4841_v57, %v4842_v10  ;;  %v4855_v25 = vsel %vm4686_vm15, %v4627_v37, -inf }
 0x4a8   : > { %v4824_v61 = vmax.f32 %v4822_v24, %v4823_v45  ;;  %v4935_v46 = vsel %vm4299_vm0, %v4805_v33, -inf  ;;  %v4849_v8 = vrot.slane %v4848_v22, 4  ;;  %v4862_v36 = vsel %vm4686_vm15, %v4635_v54, -inf }
 0x4a9   : > { %v4812_v16 = vmax.f32 %v4810_v38, %v4811_v39  ;;  %v4831_v32 = vmax.f32 %v4829_v13, %v4830_v18  ;;  %v4837_v1 = vrot.slane %v4836_v4, 2  ;;  %v4844_v42 = vrot.slane %v4843_v27, 2 }
 0x4aa   : > { %v4850_v3 = vmax.f32 %v4848_v22, %v4849_v8  ;;  %v4636_v60 = vcombine.high %v4634_v35, %v4634_v35  ;;  %v4856_v15 = vrot.slane %v4855_v25, 4  ;;  %v4869_v9 = vsel %vm4686_vm15, %v4634_v35, -inf }
 0x4ab   : > { %v4832_v26 = vrot.slane %v4831_v32, 1  ;;  %v4838_v20 = vmax.f32 %v4836_v4, %v4837_v1  ;;  %v4845_v28 = vmax.f32 %v4843_v27, %v4844_v42  ;;  %v4863_v21 = vrot.slane %v4862_v36, 4 }
 0x4ac   : > { %v4989_v14 = vmax.f32 %v8708_v43, 0.0  ;;  %v4819_v47 = vmax.f32 %v4817_v40, %v4818_v48  ;;  %v4825_v12 = vrot.slane %v4824_v61, 1  ;;  %v4851_v41 = vrot.slane %v4850_v3, 2 }
 0x4ad   : > { %v4833_v11 = vmax.f32 %v4831_v32, %v4832_v26  ;;  %v4839_v58 = vrot.slane %v4838_v20, 1  ;;  %v4846_v31 = vrot.slane %v4845_v28, 1  ;;  %v4870_v52 = vrot.slane %v4869_v9, 4 }
 0x4ae   : > { %v4938_v59 = vsel %vm4299_vm0, %v4812_v16, -inf  ;;  %v4852_v23 = vmax.f32 %v4850_v3, %v4851_v41  ;;  %v4857_v62 = vmax.f32 %v4855_v25, %v4856_v15  ;;  %v4876_v50 = vsel %vm4686_vm15, %v4636_v60, -inf }
 0x4af   : > { %v4840_v24 = vmax.f32 %v4838_v20, %v4839_v58  ;;  %v4847_v56 = vmax.f32 %v4845_v28, %v4846_v31  ;;  %v4936_v30 = vsel %vm4299_vm0, %v4833_v11, -inf  ;;  %v4864_v38 = vmax.f32 %v4862_v36, %v4863_v21 }
 0x4b0   : > { %v4826_v55 = vmax.f32 %v4824_v61, %v4825_v12  ;;  %v4941_v33 = vsel %vm4299_vm0, %v4819_v47, -inf  ;;  %v4853_v40 = vrot.slane %v4852_v23, 1  ;;  %v4937_v7 = vmax.f32 %v4935_v46, %v4936_v30 }
 0x4b1   : > { %v4939_v44 = vsel %vm4299_vm0, %v4840_v24, -inf  ;;  %v4942_v43 = vsel %vm4299_vm0, %v4847_v56, -inf  ;;  %v4871_v45 = vmax.f32 %v4869_v9, %v4870_v52  ;;  %v4877_v63 = vrot.slane %v4876_v50, 4 }
 0x4b2   : > { %v4854_v29 = vmax.f32 %v4852_v23, %v4853_v40  ;;  %v4940_v51 = vmax.f32 %v4938_v59, %v4939_v44  ;;  %v4943_v57 = vmax.f32 %v4941_v33, %v4942_v43  ;;  %v4858_v6 = vrot.slane %v4857_v62, 2 }
 0x4b3   : > { %v5018_v37 = vrot.slane %v4985_v34, 5  ;;  %v4974_v39 = vadd.f32 %v8642_v5, %v4937_v7  ;;  %v4865_v13 = vrot.slane %v4864_v38, 2  ;;  %v4944_v19 = vsel %vm4299_vm0, %v4826_v55, -inf }
 0x4b4   : > { %v4945_v10 = vsel %vm4299_vm0, %v4854_v29, -inf  ;;  %v4975_v48 = vadd.f32 %v8642_v5, %v4940_v51  ;;  %v4976_v22 = vadd.f32 %v8642_v5, %v4943_v57  ;;  %v5024_v35 = vrot.slane %v4989_v14, 5 }
 0x4b5   : > { %v4946_v54 = vmax.f32 %v4944_v19, %v4945_v10  ;;  %v4872_v18 = vrot.slane %v4871_v45, 2  ;;  %v4878_v4 = vmax.f32 %v4876_v50, %v4877_v63  ;;  %v4859_v27 = vmax.f32 %v4857_v62, %v4858_v6 }
 0x4b6   : > { %v4991_v2 = vmax.f32 %v4975_v48, 0.0  ;;  %v4992_v34 = vmax.f32 %v4976_v22, 0.0  ;;  %v4637_v25 = vcombine.high %v8657_v53, %v8657_v53  ;;  %v4990_v46 = vmax.f32 %v4974_v39, 0.0 }
 0x4b7   : > { %v4977_v61 = vadd.f32 %v8642_v5, %v4946_v54  ;;  %v4866_v8 = vmax.f32 %v4864_v38, %v4865_v13  ;;  %v4644_v36 = vrot.slane %v8657_v53, %v7364_v49  ;;  %v5019_v42 = vsel %vm3913_vm6, %v5018_v37, %v8666_v0 }
 0x4b8   : > { %v5026_v16 = vrot.slane %v4991_v2, 7  ;;  %v5028_v32 = vrot.slane %v4992_v34, 6  ;;  %v4651_v1 = vrot.slane %v4637_v25, %v7364_v49  ;;  %v4873_v60 = vmax.f32 %v4871_v45, %v4872_v18  ;;  %5043 = vst.msk [vmem:[%s8747_s17] sm:$0xf] %vm5042_vm3, %v5019_v42 }
 0x4b9   : > { %v4993_v3 = vmax.f32 %v4977_v61, 0.0  ;;  %v4879_v15 = vrot.slane %v4878_v4, 2  ;;  %v4652_v9 = vcombine.high %v4644_v36, %v4644_v36  ;;  %v4883_v20 = vsel %vm4686_vm15, %v4644_v36, -inf }
 0x4ba   : > { %v5027_v26 = vsel %vm3907_vm4, %v5026_v16, %v4990_v46  ;;  %v4653_v53 = vcombine.high %v4651_v1, %v4651_v1  ;;  %v4897_v49 = vsel %vm4686_vm15, %v4651_v1, -inf  ;;  %v4884_v21 = vrot.slane %v4883_v20, 4 }
 0x4bb   : > { %v5029_v0 = vsel %vm3910_vm5, %v5028_v32, %v5027_v26  ;;  %v5030_v28 = vrot.slane %v4993_v3, 5  ;;  %v4890_v14 = vsel %vm4686_vm15, %v4652_v9, -inf  ;;  %v4898_v12 = vrot.slane %v4897_v49, 4 }
 0x4bc   : > { %v4891_v47 = vrot.slane %v4890_v14, 4  ;;  %v4904_v41 = vsel %vm4686_vm15, %v4653_v53, -inf  ;;  %v5025_v11 = vsel %vm3913_vm6, %v5024_v35, %v8703_v17  ;;  %v4880_v58 = vmax.f32 %v4878_v4, %v4879_v15 }
 0x4bd   : > { %v4885_v31 = vmax.f32 %v4883_v20, %v4884_v21  ;;  %v4905_v52 = vrot.slane %v4904_v41, 4  ;;  %v5031_v59 = vsel %vm3913_vm6, %v5030_v28, %v5029_v0  ;;  %5044 = vst.msk [vmem:[%s8747_s17 + $0x4] sm:$0xf] %vm5042_vm3, %v5025_v11  ;;  %v4899_v62 = vmax.f32 %v4897_v49, %v4898_v12 }
 0x4be   : > { %v4892_v23 = vmax.f32 %v4890_v14, %v4891_v47  ;;  %5045 = vst.msk [vmem:[%s8747_s17 + $0x8] sm:$0xf] %vm5042_vm3, %v5031_v59  ;;  %v4860_v50 = vrot.slane %v4859_v27, 1  ;;  %v4867_v24 = vrot.slane %v4866_v8, 1  ;;  %v4874_v38 = vrot.slane %v4873_v60, 1 }
 0x4bf   : > { %v4886_v56 = vrot.slane %v4885_v31, 2  ;;  %v4906_v30 = vmax.f32 %v4904_v41, %v4905_v52  ;;  %v4900_v33 = vrot.slane %v4899_v62, 2  ;;  %v4881_v40 = vrot.slane %v4880_v58, 1 }
 0x4c0   : > { %v4893_v55 = vrot.slane %v4892_v23, 2  ;;  %v4861_v45 = vmax.f32 %v4859_v27, %v4860_v50  ;;  %v4868_v63 = vmax.f32 %v4866_v8, %v4867_v24  ;;  %v4875_v57 = vmax.f32 %v4873_v60, %v4874_v38 }
 0x4c1   : > { %v4887_v17 = vmax.f32 %v4885_v31, %v4886_v56  ;;  %v4907_v7 = vrot.slane %v4906_v30, 2  ;;  %v4901_v43 = vmax.f32 %v4899_v62, %v4900_v33  ;;  %v4882_v39 = vmax.f32 %v4880_v58, %v4881_v40 }
 0x4c2   : > { %v4894_v44 = vmax.f32 %v4892_v23, %v4893_v55  ;;  %v4947_v22 = vsel %vm4299_vm0, %v4861_v45, -inf  ;;  %v4950_v35 = vsel %vm4299_vm0, %v4868_v63, -inf  ;;  %v4953_v4 = vsel %vm4299_vm0, %v4875_v57, -inf }
 0x4c3   : > { %v4888_v29 = vrot.slane %v4887_v17, 1  ;;  %v4908_v51 = vmax.f32 %v4906_v30, %v4907_v7  ;;  %v4902_v37 = vrot.slane %v4901_v43, 1  ;;  %v4956_v25 = vsel %vm4299_vm0, %v4882_v39, -inf }
 0x4c4   : > { %v4895_v6 = vrot.slane %v4894_v44, 1 }
 0x4c5   : > { %v4889_v13 = vmax.f32 %v4887_v17, %v4888_v29  ;;  %v4909_v19 = vrot.slane %v4908_v51, 1  ;;  %v4903_v48 = vmax.f32 %v4901_v43, %v4902_v37 }
 0x4c6   : > { %v4896_v10 = vmax.f32 %v4894_v44, %v4895_v6 }
 0x4c7   : > { %v4910_v54 = vmax.f32 %v4908_v51, %v4909_v19  ;;  %v4948_v18 = vsel %vm4299_vm0, %v4889_v13, -inf  ;;  %v4954_v27 = vsel %vm4299_vm0, %v4903_v48, -inf }
 0x4c8   : > { %v4949_v2 = vmax.f32 %v4947_v22, %v4948_v18  ;;  %v4951_v34 = vsel %vm4299_vm0, %v4896_v10, -inf  ;;  %v4955_v46 = vmax.f32 %v4953_v4, %v4954_v27 }
 0x4c9   : > { %v4952_v61 = vmax.f32 %v4950_v35, %v4951_v34  ;;  %v4957_v8 = vsel %vm4299_vm0, %v4910_v54, -inf }
 0x4ca   : > { %v4958_v36 = vmax.f32 %v4956_v25, %v4957_v8  ;;  %v4978_v16 = vadd.f32 %v8642_v5, %v4949_v2  ;;  %v4980_v1 = vadd.f32 %v8642_v5, %v4955_v46 }
 0x4cb   : > { %v4979_v32 = vadd.f32 %v8642_v5, %v4952_v61 }
 0x4cc   : > { %v4981_v42 = vadd.f32 %v8642_v5, %v4958_v36  ;;  %v4996_v60 = vmax.f32 %v4980_v1, 0.0  ;;  %v4994_v9 = vmax.f32 %v4978_v16, 0.0 }
 0x4cd   : > { %v4995_v3 = vmax.f32 %v4979_v32, 0.0 }
 0x4ce   : > { %v4997_v15 = vmax.f32 %v4981_v42, 0.0  ;;  %v5034_v53 = vrot.slane %v4996_v60, 6 }
 0x4cf   : > { %v5032_v26 = vrot.slane %v4995_v3, 7 }
 0x4d0   : > { %v5036_v20 = vrot.slane %v4997_v15, 5 }
 0x4d1   : > { %v5033_v49 = vsel %vm3907_vm4, %v5032_v26, %v4994_v9 }
 0x4d2   : > { %v5035_v5 = vsel %vm3910_vm5, %v5034_v53, %v5033_v49 }
 0x4d3   : > { %v5037_v0 = vsel %vm3913_vm6, %v5036_v20, %v5035_v5 }
 0x4d4   : > { %5046 = vst.msk [vmem:[%s8747_s17 + $0xc] sm:$0xf] %vm5042_vm3, %v5037_v0 }
 0x4d5   : > { %6065 = shalt.err (!%p6062_p3)
}
 0x4d6   : > { %s6066_s12 = scalar_lea.hbm %s8782_s6, 256  ;;  %s6070_s14 = scalar_lea.hbm %s8840_s5, 512 }
 0x4d7   : > { %p6067_p4 = scmp.ne.s32.totalorder %s8782_s6, %s6066_s12  ;;  %p6071_p9 = scmp.lt.u32.totalorder %s8782_s6, %s8840_s5 }
 0x4d8   : > { %p6072_p10 = scmp.lt.u32.totalorder %s6070_s14, %s6066_s12  ;;  %p6074_p12 = scmp.lt.u32.totalorder %s6066_s12, %s8782_s6 }
 0x4d9   : > { %p6068_p7 = pnand %p6067_p4, %p6205_p5 }
 0x4da   : > { %p6073_p11 = por %p6072_p10, %p6071_p9 }
 0x4db   : > { %p6069_p8 = pneg %p6068_p7 }
 0x4dc   : > { %p6075_p13 = por %p6074_p12, %p6073_p11 }
 0x4de   : > { %p6076_p0 = pnand %p6075_p13, %p6069_p8 }
 0x4e0   : > { %6079 = shalt.err (!%p6076_p0)
}
 0x4e1   : > { %s6136_s23 = smov 4  }
 0x4e2   : > { %5224 = dma.vmem_to_hbm [thread:$0]  (%p6205_p5), %s8785_s25, 256, %s8782_s6, %s8792_s22, %s6128_s9, %s6128_s9, %s6136_s23  }
 0x4e3 PF: > { %p5230_p1 = scmp.ge.s32.totalorder %s6114_s21, 2  ;;  %s5076_s26 = sand.u32 1, %s6102_s18  }
 0x4e4   : > { %s5077_s30 = scalar_lea.sflag [#allocation3], %s5076_s26 }
 0x4e5   : > { %p5227_p2 = pnand %p5230_p1, %p6209_p6 }
 0x4e7   : > { %6097 = dma.done.wait (!%p5227_p2), %s5077_s30, 256  }
 0x4e8   : > { %6099 = vsyncadd (!%p5227_p2), %s5077_s30, 4294967040  ;;  %p15_p3 = scmp.ge.s32.totalorder %s6192_s24, 4   ;;  %s8882_s18 = smov %s6106_s19 }
 0x4e9   : > { %s8883_s19 = smov %s6110_s20  ;;  %s8884_s20 = smov %s6203_s27 }
 0x4ea   : > { %s8885_s21 = smov %s6192_s24  ;;  %17 = sbr.rel (!%p15_p3) target bundleno = 3 (0x3), region = 75 }
 0x4f1   :  { %5082 = vsyncpa [#allocation3], 1 }
 0x4f2   :  { %5084 = vsyncpa [#allocation3 + $0x1], 1 }

</bundles_post_ra>
